<compile_context>
chip_gen: v6e
topology: v6e:2x2x1
jax: 0.10.0
libtpu: 0.0.40
codegen_flags: <defaults>
</compile_context>

<pallas_src>
import functools

import jax
import jax.numpy as jnp
from jax import lax
from jax.experimental import pallas as pl
from jax.experimental.pallas import tpu as pltpu


def _fused_conv_kernel(x_ref, w1_ref, b1_ref, w2_ref, b2_ref, o_ref, *, H, W):
    """Whole batch in one grid step.

    x_ref : (Cin,  N*H*W)   input; channels on sublanes, (batch, spatial) on lanes
    w1_ref: (Cmid, 9*Cin)   conv1 weight matrix, column order (kh, kw, cin)
    b1_ref: (Cmid, 1)
    w2_ref: (9, Cout, Cmid) conv2 weights, tap-major (tap = kh*3 + kw)
    b2_ref: (Cout, 1)
    o_ref : (Cout, N*H*W)
    """
    NP = x_ref.shape[1]
    P = H * W
    Cout = w2_ref.shape[1]

    # Per-image flattened position -> (row, col); avoid vector integer
    # division when the extents are powers of two.
    pos = lax.broadcasted_iota(jnp.int32, (1, NP), 1)
    p_img = (pos & (P - 1)) if P & (P - 1) == 0 else pos % P
    if W & (W - 1) == 0:
        row, col = p_img >> (W.bit_length() - 1), p_img & (W - 1)
    else:
        row, col = p_img // W, p_img % W

    # 3x3 "same" taps: static lane shift of dh*W+dw plus a border-validity
    # mask (zero padding).  The mask also zeroes roll wrap-around across
    # image boundaries, so folding batch onto the lane axis is exact.
    offsets, masks = [], []
    for dh in (-1, 0, 1):
        for dw in (-1, 0, 1):
            offsets.append(dh * W + dw)
            masks.append((row + dh >= 0) & (row + dh < H) &
                         (col + dw >= 0) & (col + dw < W))

    def tap(a, s, m):
        shifted = a if s == 0 else pltpu.roll(a, (-s) % NP, axis=1)
        return jnp.where(m, shifted, 0.0)

    # Conv1: one K=27 im2col matmul (the (27, NP) im2col is tiny, ~55 KB).
    x = x_ref[...]
    col1 = jnp.concatenate([tap(x, s, m) for s, m in zip(offsets, masks)],
                           axis=0)                                    # (27, NP)
    h = jnp.dot(w1_ref[...], col1,
                preferred_element_type=jnp.float32) + b1_ref[...]     # (64, NP)

    # Conv2: 9 accumulated tap matmuls; never materializes im2col(h).
    acc = jnp.zeros((Cout, NP), jnp.float32)
    for t, (s, m) in enumerate(zip(offsets, masks)):
        acc = acc + jnp.dot(w2_ref[t], tap(h, s, m),
                            preferred_element_type=jnp.float32)       # (3, NP)

    o_ref[...] = jnp.tanh(acc + b2_ref[...]).astype(o_ref.dtype)


def dummy_model_forward(x_nchw, params):
    """Matches DummyModel.forward: NCHW in / NCHW out, PyTorch OIHW params."""
    N, Cin, H, W = x_nchw.shape
    P, NP = H * W, N * H * W
    w1, b1, w2, b2 = params["w1"], params["b1"], params["w2"], params["b2"]
    Cmid, Cout = w1.shape[0], w2.shape[0]

    # NCHW -> (Cin, N*H*W): fold batch into the lane axis.  At these sizes
    # this transpose is a few-KB copy; at scale keep batch on a "parallel"
    # grid axis (v7x 2-TC split) or strip-tile H instead.
    x_flat = jnp.transpose(x_nchw.reshape(N, Cin, P), (1, 0, 2)).reshape(Cin, NP)

    # Param-only reshapes (constant-folded under jit).
    w1m = jnp.transpose(w1, (0, 2, 3, 1)).reshape(Cmid, 9 * Cin)   # cols (kh,kw,cin)
    w2t = jnp.transpose(w2, (2, 3, 0, 1)).reshape(9, Cout, Cmid)   # tap-major
    b1c = b1.reshape(Cmid, 1)
    b2c = b2.reshape(Cout, 1)

    kernel = functools.partial(_fused_conv_kernel, H=H, W=W)

    out_flat = pl.pallas_call(
        kernel,
        out_shape=jax.ShapeDtypeStruct((Cout, NP), x_nchw.dtype),
        grid=(1,),  # whole batch in one step; kernel is fixed-overhead bound here
        in_specs=[
            pl.BlockSpec((Cin, NP), lambda i: (0, 0)),          # x, lane-dense
            pl.BlockSpec((Cmid, 9 * Cin), lambda i: (0, 0)),    # w1 matrix
            pl.BlockSpec((Cmid, 1), lambda i: (0, 0)),          # b1
            pl.BlockSpec((9, Cout, Cmid), lambda i: (0, 0, 0)), # w2 taps
            pl.BlockSpec((Cout, 1), lambda i: (0, 0)),          # b2
        ],
        out_specs=pl.BlockSpec((Cout, NP), lambda i: (0, 0)),
        compiler_params=pltpu.CompilerParams(
            dimension_semantics=("arbitrary",)),
    )(x_flat, w1m, b1c, w2t, b2c)

    # (Cout, N*H*W) -> NCHW (tiny copy).
    return jnp.transpose(out_flat.reshape(Cout, N, P), (1, 0, 2)).reshape(
        N, Cout, H, W)


def init_params(key):
    """PyTorch-layout (OIHW) params, uniform +-1/sqrt(fan_in) like nn.Conv2d."""
    k1, k2, k3, k4 = jax.random.split(key, 4)

    def uinit(k, shape, fan_in):
        bound = 1.0 / jnp.sqrt(float(fan_in))
        return jax.random.uniform(k, shape, jnp.float32, -bound, bound)

    w1 = uinit(k1, (64, 3, 3, 3), 3 * 3 * 3)     # Conv2d(3, 64, 3)
    b1 = uinit(k2, (64,), 3 * 3 * 3)
    w2 = uinit(k3, (3, 64, 3, 3), 64 * 3 * 3)    # Conv2d(64, 3, 3)
    b2 = uinit(k4, (3,), 64 * 3 * 3)
    return dict(w1=w1, b1=b1, w2=w2, b2=b2)


def _reference_forward(x_nchw, params):
    """Pure-JAX reference (lax conv, NCHW/OIHW) for correctness checking."""
    dn = ("NCHW", "OIHW", "NCHW")
    h = lax.conv_general_dilated(x_nchw, params["w1"], (1, 1), "SAME",
                                 dimension_numbers=dn)
    h = h + params["b1"][None, :, None, None]
    y = lax.conv_general_dilated(h, params["w2"], (1, 1), "SAME",
                                 dimension_numbers=dn)
    y = y + params["b2"][None, :, None, None]
    return jnp.tanh(y)


if __name__ == "__main__":
    key = jax.random.PRNGKey(0)
    kx, kp = jax.random.split(key)

    # Small shapes consistent with the module: batch=2, channels=3, spatial=16.
    x = jax.random.normal(kx, (2, 3, 16, 16), jnp.float32)   # NCHW, like PyTorch
    params = init_params(kp)

    out = jax.jit(dummy_model_forward)(x, params)
    out = jax.block_until_ready(out)

    ref = _reference_forward(x, params)
    assert out.shape == (2, 3, 16, 16), out.shape
    err = float(jnp.max(jnp.abs(out - ref)))
    assert jnp.allclose(out, ref, atol=1e-4, rtol=1e-4), f"mismatch vs reference: {err}"

    print("KERNEL_OK")
</pallas_src>

<mosaic_0001>
module attributes {stable_mosaic.version = 11 : i64} {
  func.func @_fused_conv_kernel(%arg0: i32, %arg1: memref<3x512xf32, #tpu.memory_space<vmem>>, %arg2: memref<64x27xf32, #tpu.memory_space<vmem>>, %arg3: memref<64x1xf32, #tpu.memory_space<vmem>>, %arg4: memref<9x3x64xf32, #tpu.memory_space<vmem>>, %arg5: memref<3x1xf32, #tpu.memory_space<vmem>>, %arg6: memref<3x512xf32, #tpu.memory_space<vmem>>) attributes {dimension_semantics = [#tpu.dimension_semantics<arbitrary>], iteration_bounds = array<i64: 1>, scalar_prefetch = 0 : i64, scratch_operands = 0 : i64, tpu.core_type = #tpu.core_type<tc>, window_params = [{pipeline_mode = #tpu.pipeline_mode<synchronous>, transform_indices = @transform_0, window_bounds = array<i64: 3, 512>}, {pipeline_mode = #tpu.pipeline_mode<synchronous>, transform_indices = @transform_1, window_bounds = array<i64: 64, 27>}, {pipeline_mode = #tpu.pipeline_mode<synchronous>, transform_indices = @transform_2, window_bounds = array<i64: 64, 1>}, {pipeline_mode = #tpu.pipeline_mode<synchronous>, transform_indices = @transform_3, window_bounds = array<i64: 9, 3, 64>}, {pipeline_mode = #tpu.pipeline_mode<synchronous>, transform_indices = @transform_4, window_bounds = array<i64: 3, 1>}, {pipeline_mode = #tpu.pipeline_mode<synchronous>, transform_indices = @transform_5, window_bounds = array<i64: 3, 512>}]} {
    %0 = tpu.iota {dimensions = array<i32: 1>} : vector<1x512xi32>
    %c255_i32 = arith.constant 255 : i32
    %1 = vector.broadcast %c255_i32 : i32 to vector<1x512xi32>
    %2 = arith.andi %0, %1 : vector<1x512xi32>
    %c4_i32 = arith.constant 4 : i32
    %3 = vector.broadcast %c4_i32 : i32 to vector<1x512xi32>
    %4 = arith.shrsi %2, %3 : vector<1x512xi32>
    %c15_i32 = arith.constant 15 : i32
    %5 = vector.broadcast %c15_i32 : i32 to vector<1x512xi32>
    %6 = arith.andi %2, %5 : vector<1x512xi32>
    %c-1_i32 = arith.constant -1 : i32
    %7 = vector.broadcast %c-1_i32 : i32 to vector<1x512xi32>
    %8 = arith.addi %4, %7 : vector<1x512xi32>
    %c0_i32 = arith.constant 0 : i32
    %9 = vector.broadcast %c0_i32 : i32 to vector<1x512xi32>
    %10 = arith.cmpi sge, %8, %9 : vector<1x512xi32>
    %c-1_i32_0 = arith.constant -1 : i32
    %11 = vector.broadcast %c-1_i32_0 : i32 to vector<1x512xi32>
    %12 = arith.addi %4, %11 : vector<1x512xi32>
    %c16_i32 = arith.constant 16 : i32
    %13 = vector.broadcast %c16_i32 : i32 to vector<1x512xi32>
    %14 = arith.cmpi slt, %12, %13 : vector<1x512xi32>
    %15 = arith.andi %10, %14 : vector<1x512xi1>
    %c-1_i32_1 = arith.constant -1 : i32
    %16 = vector.broadcast %c-1_i32_1 : i32 to vector<1x512xi32>
    %17 = arith.addi %6, %16 : vector<1x512xi32>
    %c0_i32_2 = arith.constant 0 : i32
    %18 = vector.broadcast %c0_i32_2 : i32 to vector<1x512xi32>
    %19 = arith.cmpi sge, %17, %18 : vector<1x512xi32>
    %20 = arith.andi %15, %19 : vector<1x512xi1>
    %c-1_i32_3 = arith.constant -1 : i32
    %21 = vector.broadcast %c-1_i32_3 : i32 to vector<1x512xi32>
    %22 = arith.addi %6, %21 : vector<1x512xi32>
    %c16_i32_4 = arith.constant 16 : i32
    %23 = vector.broadcast %c16_i32_4 : i32 to vector<1x512xi32>
    %24 = arith.cmpi slt, %22, %23 : vector<1x512xi32>
    %25 = arith.andi %20, %24 : vector<1x512xi1>
    %c-1_i32_5 = arith.constant -1 : i32
    %26 = vector.broadcast %c-1_i32_5 : i32 to vector<1x512xi32>
    %27 = arith.addi %4, %26 : vector<1x512xi32>
    %c0_i32_6 = arith.constant 0 : i32
    %28 = vector.broadcast %c0_i32_6 : i32 to vector<1x512xi32>
    %29 = arith.cmpi sge, %27, %28 : vector<1x512xi32>
    %c-1_i32_7 = arith.constant -1 : i32
    %30 = vector.broadcast %c-1_i32_7 : i32 to vector<1x512xi32>
    %31 = arith.addi %4, %30 : vector<1x512xi32>
    %c16_i32_8 = arith.constant 16 : i32
    %32 = vector.broadcast %c16_i32_8 : i32 to vector<1x512xi32>
    %33 = arith.cmpi slt, %31, %32 : vector<1x512xi32>
    %34 = arith.andi %29, %33 : vector<1x512xi1>
    %c0_i32_9 = arith.constant 0 : i32
    %35 = vector.broadcast %c0_i32_9 : i32 to vector<1x512xi32>
    %36 = arith.addi %6, %35 : vector<1x512xi32>
    %c0_i32_10 = arith.constant 0 : i32
    %37 = vector.broadcast %c0_i32_10 : i32 to vector<1x512xi32>
    %38 = arith.cmpi sge, %36, %37 : vector<1x512xi32>
    %39 = arith.andi %34, %38 : vector<1x512xi1>
    %c0_i32_11 = arith.constant 0 : i32
    %40 = vector.broadcast %c0_i32_11 : i32 to vector<1x512xi32>
    %41 = arith.addi %6, %40 : vector<1x512xi32>
    %c16_i32_12 = arith.constant 16 : i32
    %42 = vector.broadcast %c16_i32_12 : i32 to vector<1x512xi32>
    %43 = arith.cmpi slt, %41, %42 : vector<1x512xi32>
    %44 = arith.andi %39, %43 : vector<1x512xi1>
    %c-1_i32_13 = arith.constant -1 : i32
    %45 = vector.broadcast %c-1_i32_13 : i32 to vector<1x512xi32>
    %46 = arith.addi %4, %45 : vector<1x512xi32>
    %c0_i32_14 = arith.constant 0 : i32
    %47 = vector.broadcast %c0_i32_14 : i32 to vector<1x512xi32>
    %48 = arith.cmpi sge, %46, %47 : vector<1x512xi32>
    %c-1_i32_15 = arith.constant -1 : i32
    %49 = vector.broadcast %c-1_i32_15 : i32 to vector<1x512xi32>
    %50 = arith.addi %4, %49 : vector<1x512xi32>
    %c16_i32_16 = arith.constant 16 : i32
    %51 = vector.broadcast %c16_i32_16 : i32 to vector<1x512xi32>
    %52 = arith.cmpi slt, %50, %51 : vector<1x512xi32>
    %53 = arith.andi %48, %52 : vector<1x512xi1>
    %c1_i32 = arith.constant 1 : i32
    %54 = vector.broadcast %c1_i32 : i32 to vector<1x512xi32>
    %55 = arith.addi %6, %54 : vector<1x512xi32>
    %c0_i32_17 = arith.constant 0 : i32
    %56 = vector.broadcast %c0_i32_17 : i32 to vector<1x512xi32>
    %57 = arith.cmpi sge, %55, %56 : vector<1x512xi32>
    %58 = arith.andi %53, %57 : vector<1x512xi1>
    %c1_i32_18 = arith.constant 1 : i32
    %59 = vector.broadcast %c1_i32_18 : i32 to vector<1x512xi32>
    %60 = arith.addi %6, %59 : vector<1x512xi32>
    %c16_i32_19 = arith.constant 16 : i32
    %61 = vector.broadcast %c16_i32_19 : i32 to vector<1x512xi32>
    %62 = arith.cmpi slt, %60, %61 : vector<1x512xi32>
    %63 = arith.andi %58, %62 : vector<1x512xi1>
    %c0_i32_20 = arith.constant 0 : i32
    %64 = vector.broadcast %c0_i32_20 : i32 to vector<1x512xi32>
    %65 = arith.addi %4, %64 : vector<1x512xi32>
    %c0_i32_21 = arith.constant 0 : i32
    %66 = vector.broadcast %c0_i32_21 : i32 to vector<1x512xi32>
    %67 = arith.cmpi sge, %65, %66 : vector<1x512xi32>
    %c0_i32_22 = arith.constant 0 : i32
    %68 = vector.broadcast %c0_i32_22 : i32 to vector<1x512xi32>
    %69 = arith.addi %4, %68 : vector<1x512xi32>
    %c16_i32_23 = arith.constant 16 : i32
    %70 = vector.broadcast %c16_i32_23 : i32 to vector<1x512xi32>
    %71 = arith.cmpi slt, %69, %70 : vector<1x512xi32>
    %72 = arith.andi %67, %71 : vector<1x512xi1>
    %c-1_i32_24 = arith.constant -1 : i32
    %73 = vector.broadcast %c-1_i32_24 : i32 to vector<1x512xi32>
    %74 = arith.addi %6, %73 : vector<1x512xi32>
    %c0_i32_25 = arith.constant 0 : i32
    %75 = vector.broadcast %c0_i32_25 : i32 to vector<1x512xi32>
    %76 = arith.cmpi sge, %74, %75 : vector<1x512xi32>
    %77 = arith.andi %72, %76 : vector<1x512xi1>
    %c-1_i32_26 = arith.constant -1 : i32
    %78 = vector.broadcast %c-1_i32_26 : i32 to vector<1x512xi32>
    %79 = arith.addi %6, %78 : vector<1x512xi32>
    %c16_i32_27 = arith.constant 16 : i32
    %80 = vector.broadcast %c16_i32_27 : i32 to vector<1x512xi32>
    %81 = arith.cmpi slt, %79, %80 : vector<1x512xi32>
    %82 = arith.andi %77, %81 : vector<1x512xi1>
    %c0_i32_28 = arith.constant 0 : i32
    %83 = vector.broadcast %c0_i32_28 : i32 to vector<1x512xi32>
    %84 = arith.addi %4, %83 : vector<1x512xi32>
    %c0_i32_29 = arith.constant 0 : i32
    %85 = vector.broadcast %c0_i32_29 : i32 to vector<1x512xi32>
    %86 = arith.cmpi sge, %84, %85 : vector<1x512xi32>
    %c0_i32_30 = arith.constant 0 : i32
    %87 = vector.broadcast %c0_i32_30 : i32 to vector<1x512xi32>
    %88 = arith.addi %4, %87 : vector<1x512xi32>
    %c16_i32_31 = arith.constant 16 : i32
    %89 = vector.broadcast %c16_i32_31 : i32 to vector<1x512xi32>
    %90 = arith.cmpi slt, %88, %89 : vector<1x512xi32>
    %91 = arith.andi %86, %90 : vector<1x512xi1>
    %c0_i32_32 = arith.constant 0 : i32
    %92 = vector.broadcast %c0_i32_32 : i32 to vector<1x512xi32>
    %93 = arith.addi %6, %92 : vector<1x512xi32>
    %c0_i32_33 = arith.constant 0 : i32
    %94 = vector.broadcast %c0_i32_33 : i32 to vector<1x512xi32>
    %95 = arith.cmpi sge, %93, %94 : vector<1x512xi32>
    %96 = arith.andi %91, %95 : vector<1x512xi1>
    %c0_i32_34 = arith.constant 0 : i32
    %97 = vector.broadcast %c0_i32_34 : i32 to vector<1x512xi32>
    %98 = arith.addi %6, %97 : vector<1x512xi32>
    %c16_i32_35 = arith.constant 16 : i32
    %99 = vector.broadcast %c16_i32_35 : i32 to vector<1x512xi32>
    %100 = arith.cmpi slt, %98, %99 : vector<1x512xi32>
    %101 = arith.andi %96, %100 : vector<1x512xi1>
    %c0_i32_36 = arith.constant 0 : i32
    %102 = vector.broadcast %c0_i32_36 : i32 to vector<1x512xi32>
    %103 = arith.addi %4, %102 : vector<1x512xi32>
    %c0_i32_37 = arith.constant 0 : i32
    %104 = vector.broadcast %c0_i32_37 : i32 to vector<1x512xi32>
    %105 = arith.cmpi sge, %103, %104 : vector<1x512xi32>
    %c0_i32_38 = arith.constant 0 : i32
    %106 = vector.broadcast %c0_i32_38 : i32 to vector<1x512xi32>
    %107 = arith.addi %4, %106 : vector<1x512xi32>
    %c16_i32_39 = arith.constant 16 : i32
    %108 = vector.broadcast %c16_i32_39 : i32 to vector<1x512xi32>
    %109 = arith.cmpi slt, %107, %108 : vector<1x512xi32>
    %110 = arith.andi %105, %109 : vector<1x512xi1>
    %c1_i32_40 = arith.constant 1 : i32
    %111 = vector.broadcast %c1_i32_40 : i32 to vector<1x512xi32>
    %112 = arith.addi %6, %111 : vector<1x512xi32>
    %c0_i32_41 = arith.constant 0 : i32
    %113 = vector.broadcast %c0_i32_41 : i32 to vector<1x512xi32>
    %114 = arith.cmpi sge, %112, %113 : vector<1x512xi32>
    %115 = arith.andi %110, %114 : vector<1x512xi1>
    %c1_i32_42 = arith.constant 1 : i32
    %116 = vector.broadcast %c1_i32_42 : i32 to vector<1x512xi32>
    %117 = arith.addi %6, %116 : vector<1x512xi32>
    %c16_i32_43 = arith.constant 16 : i32
    %118 = vector.broadcast %c16_i32_43 : i32 to vector<1x512xi32>
    %119 = arith.cmpi slt, %117, %118 : vector<1x512xi32>
    %120 = arith.andi %115, %119 : vector<1x512xi1>
    %c1_i32_44 = arith.constant 1 : i32
    %121 = vector.broadcast %c1_i32_44 : i32 to vector<1x512xi32>
    %122 = arith.addi %4, %121 : vector<1x512xi32>
    %c0_i32_45 = arith.constant 0 : i32
    %123 = vector.broadcast %c0_i32_45 : i32 to vector<1x512xi32>
    %124 = arith.cmpi sge, %122, %123 : vector<1x512xi32>
    %c1_i32_46 = arith.constant 1 : i32
    %125 = vector.broadcast %c1_i32_46 : i32 to vector<1x512xi32>
    %126 = arith.addi %4, %125 : vector<1x512xi32>
    %c16_i32_47 = arith.constant 16 : i32
    %127 = vector.broadcast %c16_i32_47 : i32 to vector<1x512xi32>
    %128 = arith.cmpi slt, %126, %127 : vector<1x512xi32>
    %129 = arith.andi %124, %128 : vector<1x512xi1>
    %c-1_i32_48 = arith.constant -1 : i32
    %130 = vector.broadcast %c-1_i32_48 : i32 to vector<1x512xi32>
    %131 = arith.addi %6, %130 : vector<1x512xi32>
    %c0_i32_49 = arith.constant 0 : i32
    %132 = vector.broadcast %c0_i32_49 : i32 to vector<1x512xi32>
    %133 = arith.cmpi sge, %131, %132 : vector<1x512xi32>
    %134 = arith.andi %129, %133 : vector<1x512xi1>
    %c-1_i32_50 = arith.constant -1 : i32
    %135 = vector.broadcast %c-1_i32_50 : i32 to vector<1x512xi32>
    %136 = arith.addi %6, %135 : vector<1x512xi32>
    %c16_i32_51 = arith.constant 16 : i32
    %137 = vector.broadcast %c16_i32_51 : i32 to vector<1x512xi32>
    %138 = arith.cmpi slt, %136, %137 : vector<1x512xi32>
    %139 = arith.andi %134, %138 : vector<1x512xi1>
    %c1_i32_52 = arith.constant 1 : i32
    %140 = vector.broadcast %c1_i32_52 : i32 to vector<1x512xi32>
    %141 = arith.addi %4, %140 : vector<1x512xi32>
    %c0_i32_53 = arith.constant 0 : i32
    %142 = vector.broadcast %c0_i32_53 : i32 to vector<1x512xi32>
    %143 = arith.cmpi sge, %141, %142 : vector<1x512xi32>
    %c1_i32_54 = arith.constant 1 : i32
    %144 = vector.broadcast %c1_i32_54 : i32 to vector<1x512xi32>
    %145 = arith.addi %4, %144 : vector<1x512xi32>
    %c16_i32_55 = arith.constant 16 : i32
    %146 = vector.broadcast %c16_i32_55 : i32 to vector<1x512xi32>
    %147 = arith.cmpi slt, %145, %146 : vector<1x512xi32>
    %148 = arith.andi %143, %147 : vector<1x512xi1>
    %c0_i32_56 = arith.constant 0 : i32
    %149 = vector.broadcast %c0_i32_56 : i32 to vector<1x512xi32>
    %150 = arith.addi %6, %149 : vector<1x512xi32>
    %c0_i32_57 = arith.constant 0 : i32
    %151 = vector.broadcast %c0_i32_57 : i32 to vector<1x512xi32>
    %152 = arith.cmpi sge, %150, %151 : vector<1x512xi32>
    %153 = arith.andi %148, %152 : vector<1x512xi1>
    %c0_i32_58 = arith.constant 0 : i32
    %154 = vector.broadcast %c0_i32_58 : i32 to vector<1x512xi32>
    %155 = arith.addi %6, %154 : vector<1x512xi32>
    %c16_i32_59 = arith.constant 16 : i32
    %156 = vector.broadcast %c16_i32_59 : i32 to vector<1x512xi32>
    %157 = arith.cmpi slt, %155, %156 : vector<1x512xi32>
    %158 = arith.andi %153, %157 : vector<1x512xi1>
    %c1_i32_60 = arith.constant 1 : i32
    %159 = vector.broadcast %c1_i32_60 : i32 to vector<1x512xi32>
    %160 = arith.addi %4, %159 : vector<1x512xi32>
    %c0_i32_61 = arith.constant 0 : i32
    %161 = vector.broadcast %c0_i32_61 : i32 to vector<1x512xi32>
    %162 = arith.cmpi sge, %160, %161 : vector<1x512xi32>
    %c1_i32_62 = arith.constant 1 : i32
    %163 = vector.broadcast %c1_i32_62 : i32 to vector<1x512xi32>
    %164 = arith.addi %4, %163 : vector<1x512xi32>
    %c16_i32_63 = arith.constant 16 : i32
    %165 = vector.broadcast %c16_i32_63 : i32 to vector<1x512xi32>
    %166 = arith.cmpi slt, %164, %165 : vector<1x512xi32>
    %167 = arith.andi %162, %166 : vector<1x512xi1>
    %c1_i32_64 = arith.constant 1 : i32
    %168 = vector.broadcast %c1_i32_64 : i32 to vector<1x512xi32>
    %169 = arith.addi %6, %168 : vector<1x512xi32>
    %c0_i32_65 = arith.constant 0 : i32
    %170 = vector.broadcast %c0_i32_65 : i32 to vector<1x512xi32>
    %171 = arith.cmpi sge, %169, %170 : vector<1x512xi32>
    %172 = arith.andi %167, %171 : vector<1x512xi1>
    %c1_i32_66 = arith.constant 1 : i32
    %173 = vector.broadcast %c1_i32_66 : i32 to vector<1x512xi32>
    %174 = arith.addi %6, %173 : vector<1x512xi32>
    %c16_i32_67 = arith.constant 16 : i32
    %175 = vector.broadcast %c16_i32_67 : i32 to vector<1x512xi32>
    %176 = arith.cmpi slt, %174, %175 : vector<1x512xi32>
    %177 = arith.andi %172, %176 : vector<1x512xi1>
    %c0 = arith.constant 0 : index
    %c0_68 = arith.constant 0 : index
    %178 = vector.load %arg1[%c0, %c0_68] : memref<3x512xf32, #tpu.memory_space<vmem>>, vector<3x512xf32>
    %c17_i32 = arith.constant 17 : i32
    %179 = tpu.dynamic_rotate %178 by %c17_i32 dim 1 : vector<3x512xf32>, i32 -> vector<3x512xf32>
    %cst = arith.constant 0.000000e+00 : f32
    %180 = vector.shape_cast %25 : vector<1x512xi1> to vector<1x512xi1>
    %181 = vector.broadcast %180 : vector<1x512xi1> to vector<3x512xi1>
    %182 = vector.broadcast %cst : f32 to vector<3x512xf32>
    %183 = arith.select %181, %179, %182 : vector<3x512xi1>, vector<3x512xf32>
    %c16_i32_69 = arith.constant 16 : i32
    %184 = tpu.dynamic_rotate %178 by %c16_i32_69 dim 1 : vector<3x512xf32>, i32 -> vector<3x512xf32>
    %cst_70 = arith.constant 0.000000e+00 : f32
    %185 = vector.shape_cast %44 : vector<1x512xi1> to vector<1x512xi1>
    %186 = vector.broadcast %185 : vector<1x512xi1> to vector<3x512xi1>
    %187 = vector.broadcast %cst_70 : f32 to vector<3x512xf32>
    %188 = arith.select %186, %184, %187 : vector<3x512xi1>, vector<3x512xf32>
    %c15_i32_71 = arith.constant 15 : i32
    %189 = tpu.dynamic_rotate %178 by %c15_i32_71 dim 1 : vector<3x512xf32>, i32 -> vector<3x512xf32>
    %cst_72 = arith.constant 0.000000e+00 : f32
    %190 = vector.shape_cast %63 : vector<1x512xi1> to vector<1x512xi1>
    %191 = vector.broadcast %190 : vector<1x512xi1> to vector<3x512xi1>
    %192 = vector.broadcast %cst_72 : f32 to vector<3x512xf32>
    %193 = arith.select %191, %189, %192 : vector<3x512xi1>, vector<3x512xf32>
    %c1_i32_73 = arith.constant 1 : i32
    %194 = tpu.dynamic_rotate %178 by %c1_i32_73 dim 1 : vector<3x512xf32>, i32 -> vector<3x512xf32>
    %cst_74 = arith.constant 0.000000e+00 : f32
    %195 = vector.shape_cast %82 : vector<1x512xi1> to vector<1x512xi1>
    %196 = vector.broadcast %195 : vector<1x512xi1> to vector<3x512xi1>
    %197 = vector.broadcast %cst_74 : f32 to vector<3x512xf32>
    %198 = arith.select %196, %194, %197 : vector<3x512xi1>, vector<3x512xf32>
    %cst_75 = arith.constant 0.000000e+00 : f32
    %199 = vector.shape_cast %101 : vector<1x512xi1> to vector<1x512xi1>
    %200 = vector.broadcast %199 : vector<1x512xi1> to vector<3x512xi1>
    %201 = vector.broadcast %cst_75 : f32 to vector<3x512xf32>
    %202 = arith.select %200, %178, %201 : vector<3x512xi1>, vector<3x512xf32>
    %c511_i32 = arith.constant 511 : i32
    %203 = tpu.dynamic_rotate %178 by %c511_i32 dim 1 : vector<3x512xf32>, i32 -> vector<3x512xf32>
    %cst_76 = arith.constant 0.000000e+00 : f32
    %204 = vector.shape_cast %120 : vector<1x512xi1> to vector<1x512xi1>
    %205 = vector.broadcast %204 : vector<1x512xi1> to vector<3x512xi1>
    %206 = vector.broadcast %cst_76 : f32 to vector<3x512xf32>
    %207 = arith.select %205, %203, %206 : vector<3x512xi1>, vector<3x512xf32>
    %c497_i32 = arith.constant 497 : i32
    %208 = tpu.dynamic_rotate %178 by %c497_i32 dim 1 : vector<3x512xf32>, i32 -> vector<3x512xf32>
    %cst_77 = arith.constant 0.000000e+00 : f32
    %209 = vector.shape_cast %139 : vector<1x512xi1> to vector<1x512xi1>
    %210 = vector.broadcast %209 : vector<1x512xi1> to vector<3x512xi1>
    %211 = vector.broadcast %cst_77 : f32 to vector<3x512xf32>
    %212 = arith.select %210, %208, %211 : vector<3x512xi1>, vector<3x512xf32>
    %c496_i32 = arith.constant 496 : i32
    %213 = tpu.dynamic_rotate %178 by %c496_i32 dim 1 : vector<3x512xf32>, i32 -> vector<3x512xf32>
    %cst_78 = arith.constant 0.000000e+00 : f32
    %214 = vector.shape_cast %158 : vector<1x512xi1> to vector<1x512xi1>
    %215 = vector.broadcast %214 : vector<1x512xi1> to vector<3x512xi1>
    %216 = vector.broadcast %cst_78 : f32 to vector<3x512xf32>
    %217 = arith.select %215, %213, %216 : vector<3x512xi1>, vector<3x512xf32>
    %c495_i32 = arith.constant 495 : i32
    %218 = tpu.dynamic_rotate %178 by %c495_i32 dim 1 : vector<3x512xf32>, i32 -> vector<3x512xf32>
    %cst_79 = arith.constant 0.000000e+00 : f32
    %219 = vector.shape_cast %177 : vector<1x512xi1> to vector<1x512xi1>
    %220 = vector.broadcast %219 : vector<1x512xi1> to vector<3x512xi1>
    %221 = vector.broadcast %cst_79 : f32 to vector<3x512xf32>
    %222 = arith.select %220, %218, %221 : vector<3x512xi1>, vector<3x512xf32>
    %223 = tpu.concatenate %183, %188, %193, %198, %202, %207, %212, %217, %222 in 0 : vector<3x512xf32>, vector<3x512xf32>, vector<3x512xf32>, vector<3x512xf32>, vector<3x512xf32>, vector<3x512xf32>, vector<3x512xf32>, vector<3x512xf32>, vector<3x512xf32> -> vector<27x512xf32>
    %c0_80 = arith.constant 0 : index
    %c0_81 = arith.constant 0 : index
    %224 = vector.load %arg2[%c0_80, %c0_81] : memref<64x27xf32, #tpu.memory_space<vmem>>, vector<64x27xf32>
    %cst_82 = arith.constant dense<0.000000e+00> : vector<64x512xf32>
    %225 = tpu.matmul %224, %223, %cst_82 {dimension_numbers = #tpu.dot_dimension_numbers<[1], [0], [0], [1], [0, 0, 1, 1], [], []>} : vector<64x27xf32>, vector<27x512xf32>, vector<64x512xf32> -> vector<64x512xf32>
    %c0_83 = arith.constant 0 : index
    %c0_84 = arith.constant 0 : index
    %226 = vector.load %arg3[%c0_83, %c0_84] : memref<64x1xf32, #tpu.memory_space<vmem>>, vector<64x1xf32>
    %227 = vector.broadcast %226 : vector<64x1xf32> to vector<64x512xf32>
    %228 = arith.addf %225, %227 : vector<64x512xf32>
    %cst_85 = arith.constant 0.000000e+00 : f32
    %229 = vector.broadcast %cst_85 : f32 to vector<3x512xf32>
    %c0_86 = arith.constant 0 : index
    %c0_87 = arith.constant 0 : index
    %c0_88 = arith.constant 0 : index
    %230 = vector.load %arg4[%c0_86, %c0_87, %c0_88] : memref<9x3x64xf32, #tpu.memory_space<vmem>>, vector<1x3x64xf32>
    %231 = vector.shape_cast %230 : vector<1x3x64xf32> to vector<3x64xf32>
    %c17_i32_89 = arith.constant 17 : i32
    %232 = tpu.dynamic_rotate %228 by %c17_i32_89 dim 1 : vector<64x512xf32>, i32 -> vector<64x512xf32>
    %cst_90 = arith.constant 0.000000e+00 : f32
    %233 = vector.shape_cast %25 : vector<1x512xi1> to vector<1x512xi1>
    %234 = vector.broadcast %233 : vector<1x512xi1> to vector<64x512xi1>
    %235 = vector.broadcast %cst_90 : f32 to vector<64x512xf32>
    %236 = arith.select %234, %232, %235 : vector<64x512xi1>, vector<64x512xf32>
    %cst_91 = arith.constant dense<0.000000e+00> : vector<3x512xf32>
    %237 = tpu.matmul %231, %236, %cst_91 {dimension_numbers = #tpu.dot_dimension_numbers<[1], [0], [0], [1], [0, 0, 1, 1], [], []>} : vector<3x64xf32>, vector<64x512xf32>, vector<3x512xf32> -> vector<3x512xf32>
    %238 = arith.addf %229, %237 : vector<3x512xf32>
    %c1 = arith.constant 1 : index
    %c0_92 = arith.constant 0 : index
    %c0_93 = arith.constant 0 : index
    %239 = vector.load %arg4[%c1, %c0_92, %c0_93] : memref<9x3x64xf32, #tpu.memory_space<vmem>>, vector<1x3x64xf32>
    %240 = vector.shape_cast %239 : vector<1x3x64xf32> to vector<3x64xf32>
    %c16_i32_94 = arith.constant 16 : i32
    %241 = tpu.dynamic_rotate %228 by %c16_i32_94 dim 1 : vector<64x512xf32>, i32 -> vector<64x512xf32>
    %cst_95 = arith.constant 0.000000e+00 : f32
    %242 = vector.shape_cast %44 : vector<1x512xi1> to vector<1x512xi1>
    %243 = vector.broadcast %242 : vector<1x512xi1> to vector<64x512xi1>
    %244 = vector.broadcast %cst_95 : f32 to vector<64x512xf32>
    %245 = arith.select %243, %241, %244 : vector<64x512xi1>, vector<64x512xf32>
    %cst_96 = arith.constant dense<0.000000e+00> : vector<3x512xf32>
    %246 = tpu.matmul %240, %245, %cst_96 {dimension_numbers = #tpu.dot_dimension_numbers<[1], [0], [0], [1], [0, 0, 1, 1], [], []>} : vector<3x64xf32>, vector<64x512xf32>, vector<3x512xf32> -> vector<3x512xf32>
    %247 = arith.addf %238, %246 : vector<3x512xf32>
    %c2 = arith.constant 2 : index
    %c0_97 = arith.constant 0 : index
    %c0_98 = arith.constant 0 : index
    %248 = vector.load %arg4[%c2, %c0_97, %c0_98] : memref<9x3x64xf32, #tpu.memory_space<vmem>>, vector<1x3x64xf32>
    %249 = vector.shape_cast %248 : vector<1x3x64xf32> to vector<3x64xf32>
    %c15_i32_99 = arith.constant 15 : i32
    %250 = tpu.dynamic_rotate %228 by %c15_i32_99 dim 1 : vector<64x512xf32>, i32 -> vector<64x512xf32>
    %cst_100 = arith.constant 0.000000e+00 : f32
    %251 = vector.shape_cast %63 : vector<1x512xi1> to vector<1x512xi1>
    %252 = vector.broadcast %251 : vector<1x512xi1> to vector<64x512xi1>
    %253 = vector.broadcast %cst_100 : f32 to vector<64x512xf32>
    %254 = arith.select %252, %250, %253 : vector<64x512xi1>, vector<64x512xf32>
    %cst_101 = arith.constant dense<0.000000e+00> : vector<3x512xf32>
    %255 = tpu.matmul %249, %254, %cst_101 {dimension_numbers = #tpu.dot_dimension_numbers<[1], [0], [0], [1], [0, 0, 1, 1], [], []>} : vector<3x64xf32>, vector<64x512xf32>, vector<3x512xf32> -> vector<3x512xf32>
    %256 = arith.addf %247, %255 : vector<3x512xf32>
    %c3 = arith.constant 3 : index
    %c0_102 = arith.constant 0 : index
    %c0_103 = arith.constant 0 : index
    %257 = vector.load %arg4[%c3, %c0_102, %c0_103] : memref<9x3x64xf32, #tpu.memory_space<vmem>>, vector<1x3x64xf32>
    %258 = vector.shape_cast %257 : vector<1x3x64xf32> to vector<3x64xf32>
    %c1_i32_104 = arith.constant 1 : i32
    %259 = tpu.dynamic_rotate %228 by %c1_i32_104 dim 1 : vector<64x512xf32>, i32 -> vector<64x512xf32>
    %cst_105 = arith.constant 0.000000e+00 : f32
    %260 = vector.shape_cast %82 : vector<1x512xi1> to vector<1x512xi1>
    %261 = vector.broadcast %260 : vector<1x512xi1> to vector<64x512xi1>
    %262 = vector.broadcast %cst_105 : f32 to vector<64x512xf32>
    %263 = arith.select %261, %259, %262 : vector<64x512xi1>, vector<64x512xf32>
    %cst_106 = arith.constant dense<0.000000e+00> : vector<3x512xf32>
    %264 = tpu.matmul %258, %263, %cst_106 {dimension_numbers = #tpu.dot_dimension_numbers<[1], [0], [0], [1], [0, 0, 1, 1], [], []>} : vector<3x64xf32>, vector<64x512xf32>, vector<3x512xf32> -> vector<3x512xf32>
    %265 = arith.addf %256, %264 : vector<3x512xf32>
    %c4 = arith.constant 4 : index
    %c0_107 = arith.constant 0 : index
    %c0_108 = arith.constant 0 : index
    %266 = vector.load %arg4[%c4, %c0_107, %c0_108] : memref<9x3x64xf32, #tpu.memory_space<vmem>>, vector<1x3x64xf32>
    %267 = vector.shape_cast %266 : vector<1x3x64xf32> to vector<3x64xf32>
    %cst_109 = arith.constant 0.000000e+00 : f32
    %268 = vector.shape_cast %101 : vector<1x512xi1> to vector<1x512xi1>
    %269 = vector.broadcast %268 : vector<1x512xi1> to vector<64x512xi1>
    %270 = vector.broadcast %cst_109 : f32 to vector<64x512xf32>
    %271 = arith.select %269, %228, %270 : vector<64x512xi1>, vector<64x512xf32>
    %cst_110 = arith.constant dense<0.000000e+00> : vector<3x512xf32>
    %272 = tpu.matmul %267, %271, %cst_110 {dimension_numbers = #tpu.dot_dimension_numbers<[1], [0], [0], [1], [0, 0, 1, 1], [], []>} : vector<3x64xf32>, vector<64x512xf32>, vector<3x512xf32> -> vector<3x512xf32>
    %273 = arith.addf %265, %272 : vector<3x512xf32>
    %c5 = arith.constant 5 : index
    %c0_111 = arith.constant 0 : index
    %c0_112 = arith.constant 0 : index
    %274 = vector.load %arg4[%c5, %c0_111, %c0_112] : memref<9x3x64xf32, #tpu.memory_space<vmem>>, vector<1x3x64xf32>
    %275 = vector.shape_cast %274 : vector<1x3x64xf32> to vector<3x64xf32>
    %c511_i32_113 = arith.constant 511 : i32
    %276 = tpu.dynamic_rotate %228 by %c511_i32_113 dim 1 : vector<64x512xf32>, i32 -> vector<64x512xf32>
    %cst_114 = arith.constant 0.000000e+00 : f32
    %277 = vector.shape_cast %120 : vector<1x512xi1> to vector<1x512xi1>
    %278 = vector.broadcast %277 : vector<1x512xi1> to vector<64x512xi1>
    %279 = vector.broadcast %cst_114 : f32 to vector<64x512xf32>
    %280 = arith.select %278, %276, %279 : vector<64x512xi1>, vector<64x512xf32>
    %cst_115 = arith.constant dense<0.000000e+00> : vector<3x512xf32>
    %281 = tpu.matmul %275, %280, %cst_115 {dimension_numbers = #tpu.dot_dimension_numbers<[1], [0], [0], [1], [0, 0, 1, 1], [], []>} : vector<3x64xf32>, vector<64x512xf32>, vector<3x512xf32> -> vector<3x512xf32>
    %282 = arith.addf %273, %281 : vector<3x512xf32>
    %c6 = arith.constant 6 : index
    %c0_116 = arith.constant 0 : index
    %c0_117 = arith.constant 0 : index
    %283 = vector.load %arg4[%c6, %c0_116, %c0_117] : memref<9x3x64xf32, #tpu.memory_space<vmem>>, vector<1x3x64xf32>
    %284 = vector.shape_cast %283 : vector<1x3x64xf32> to vector<3x64xf32>
    %c497_i32_118 = arith.constant 497 : i32
    %285 = tpu.dynamic_rotate %228 by %c497_i32_118 dim 1 : vector<64x512xf32>, i32 -> vector<64x512xf32>
    %cst_119 = arith.constant 0.000000e+00 : f32
    %286 = vector.shape_cast %139 : vector<1x512xi1> to vector<1x512xi1>
    %287 = vector.broadcast %286 : vector<1x512xi1> to vector<64x512xi1>
    %288 = vector.broadcast %cst_119 : f32 to vector<64x512xf32>
    %289 = arith.select %287, %285, %288 : vector<64x512xi1>, vector<64x512xf32>
    %cst_120 = arith.constant dense<0.000000e+00> : vector<3x512xf32>
    %290 = tpu.matmul %284, %289, %cst_120 {dimension_numbers = #tpu.dot_dimension_numbers<[1], [0], [0], [1], [0, 0, 1, 1], [], []>} : vector<3x64xf32>, vector<64x512xf32>, vector<3x512xf32> -> vector<3x512xf32>
    %291 = arith.addf %282, %290 : vector<3x512xf32>
    %c7 = arith.constant 7 : index
    %c0_121 = arith.constant 0 : index
    %c0_122 = arith.constant 0 : index
    %292 = vector.load %arg4[%c7, %c0_121, %c0_122] : memref<9x3x64xf32, #tpu.memory_space<vmem>>, vector<1x3x64xf32>
    %293 = vector.shape_cast %292 : vector<1x3x64xf32> to vector<3x64xf32>
    %c496_i32_123 = arith.constant 496 : i32
    %294 = tpu.dynamic_rotate %228 by %c496_i32_123 dim 1 : vector<64x512xf32>, i32 -> vector<64x512xf32>
    %cst_124 = arith.constant 0.000000e+00 : f32
    %295 = vector.shape_cast %158 : vector<1x512xi1> to vector<1x512xi1>
    %296 = vector.broadcast %295 : vector<1x512xi1> to vector<64x512xi1>
    %297 = vector.broadcast %cst_124 : f32 to vector<64x512xf32>
    %298 = arith.select %296, %294, %297 : vector<64x512xi1>, vector<64x512xf32>
    %cst_125 = arith.constant dense<0.000000e+00> : vector<3x512xf32>
    %299 = tpu.matmul %293, %298, %cst_125 {dimension_numbers = #tpu.dot_dimension_numbers<[1], [0], [0], [1], [0, 0, 1, 1], [], []>} : vector<3x64xf32>, vector<64x512xf32>, vector<3x512xf32> -> vector<3x512xf32>
    %300 = arith.addf %291, %299 : vector<3x512xf32>
    %c8 = arith.constant 8 : index
    %c0_126 = arith.constant 0 : index
    %c0_127 = arith.constant 0 : index
    %301 = vector.load %arg4[%c8, %c0_126, %c0_127] : memref<9x3x64xf32, #tpu.memory_space<vmem>>, vector<1x3x64xf32>
    %302 = vector.shape_cast %301 : vector<1x3x64xf32> to vector<3x64xf32>
    %c495_i32_128 = arith.constant 495 : i32
    %303 = tpu.dynamic_rotate %228 by %c495_i32_128 dim 1 : vector<64x512xf32>, i32 -> vector<64x512xf32>
    %cst_129 = arith.constant 0.000000e+00 : f32
    %304 = vector.shape_cast %177 : vector<1x512xi1> to vector<1x512xi1>
    %305 = vector.broadcast %304 : vector<1x512xi1> to vector<64x512xi1>
    %306 = vector.broadcast %cst_129 : f32 to vector<64x512xf32>
    %307 = arith.select %305, %303, %306 : vector<64x512xi1>, vector<64x512xf32>
    %cst_130 = arith.constant dense<0.000000e+00> : vector<3x512xf32>
    %308 = tpu.matmul %302, %307, %cst_130 {dimension_numbers = #tpu.dot_dimension_numbers<[1], [0], [0], [1], [0, 0, 1, 1], [], []>} : vector<3x64xf32>, vector<64x512xf32>, vector<3x512xf32> -> vector<3x512xf32>
    %309 = arith.addf %300, %308 : vector<3x512xf32>
    %c0_131 = arith.constant 0 : index
    %c0_132 = arith.constant 0 : index
    %310 = vector.load %arg5[%c0_131, %c0_132] : memref<3x1xf32, #tpu.memory_space<vmem>>, vector<3x1xf32>
    %311 = vector.broadcast %310 : vector<3x1xf32> to vector<3x512xf32>
    %312 = arith.addf %309, %311 : vector<3x512xf32>
    %313 = math.tanh %312 : vector<3x512xf32>
    %c0_133 = arith.constant 0 : index
    %c0_134 = arith.constant 0 : index
    %314 = vector.load %arg6[%c0_133, %c0_134] : memref<3x512xf32, #tpu.memory_space<vmem>>, vector<3x512xf32>
    tpu.vector_store %arg6[%c0_133, %c0_134], %313 {strides = array<i32>} : memref<3x512xf32, #tpu.memory_space<vmem>>, vector<3x512xf32>,
    return
  }
  func.func @transform_0(%arg0: i32) -> (i32, i32) {
    %c0_i32 = arith.constant 0 : i32
    %c0_i32_0 = arith.constant 0 : i32
    %c0_i32_1 = arith.constant 0 : i32
    return %c0_i32, %c0_i32_0 : i32, i32
  }
  func.func @transform_1(%arg0: i32) -> (i32, i32) {
    %c0_i32 = arith.constant 0 : i32
    %c0_i32_0 = arith.constant 0 : i32
    %c0_i32_1 = arith.constant 0 : i32
    return %c0_i32, %c0_i32_0 : i32, i32
  }
  func.func @transform_2(%arg0: i32) -> (i32, i32) {
    %c0_i32 = arith.constant 0 : i32
    %c0_i32_0 = arith.constant 0 : i32
    %c0_i32_1 = arith.constant 0 : i32
    return %c0_i32, %c0_i32_0 : i32, i32
  }
  func.func @transform_3(%arg0: i32) -> (i32, i32, i32) {
    %c0_i32 = arith.constant 0 : i32
    %c0_i32_0 = arith.constant 0 : i32
    %c0_i32_1 = arith.constant 0 : i32
    %c0_i32_2 = arith.constant 0 : i32
    return %c0_i32, %c0_i32_0, %c0_i32_1 : i32, i32, i32
  }
  func.func @transform_4(%arg0: i32) -> (i32, i32) {
    %c0_i32 = arith.constant 0 : i32
    %c0_i32_0 = arith.constant 0 : i32
    %c0_i32_1 = arith.constant 0 : i32
    return %c0_i32, %c0_i32_0 : i32, i32
  }
  func.func @transform_5(%arg0: i32) -> (i32, i32) {
    %c0_i32 = arith.constant 0 : i32
    %c0_i32_0 = arith.constant 0 : i32
    %c0_i32_1 = arith.constant 0 : i32
    return %c0_i32, %c0_i32_0 : i32, i32
  }
}

</mosaic_0001>

<bundles_post_ra>
// kernel: dummy_model_forward.1
= control target key start
LH: loop header
LB: loop body
LE: loop exit
PB: predicated region body
PF: predicated region fallthrough
CT: control target
= control target key end

     0   :  { %s3634_s22 = smov 127   ;;  %s3636_s23 = smov 15   ;;  %v7116_v4 = vmov 0.0   ;;  %v3643_v5 = vmov 0   ;;  %v20_v14 = vlaneseq  ;;  %v7372_v39 = vmov 0  ;;  %s7078_s0 = inlined_call_operand.vmem [shape: f32[3,512], index: 0, kind: input, shape index: {}]   ;;  %s7079_s2 = inlined_call_operand.vmem [shape: f32[64,1], index: 2, kind: input, shape index: {}]   ;;  %s7080_s1 = inlined_call_operand.vmem [shape: f32[64,27], index: 1, kind: input, shape index: {}]   ;;  %s7081_s3 = inlined_call_operand.vmem [shape: f32[9,3,64], index: 3, kind: input, shape index: {}]   ;;  %s7082_s4 = inlined_call_operand.vmem [shape: f32[3,1], index: 4, kind: input, shape index: {}]   ;;  %s7083_s5 = inlined_call_operand.vmem [shape: f32[3,512], index: 5, kind: output, shape index: {}]  }
   0x1   :  { %v3677_v0 = vld [vmem:[%s7078_s0 + $0x8] sm:$0x77]  ;;  %v3682_v1 = vld [vmem:[%s7078_s0] sm:$0x77]  ;;  %s3635_s0 = smov 113   ;;  %s3637_s24 = smov 1   ;;  %681 = vmatprep.mubr.f32.mxu0 %v7116_v4  ;;  %794 = vmatprep.mubr.f32.mxu1 %v7116_v4 }
   0x2   :  { %309 = vrot.lane.b32.xlu1 %v3677_v0, %s3634_s22  ;;  %305 = vrot.lane.b32.xlu0 %v3682_v1, %s3634_s22  ;;  %v3690_v2 = vcombine.high %v3677_v0, %v3677_v0  ;;  %v3694_v3 = vcombine.high %v3682_v1, %v3682_v1  ;;  %s3638_s25 = smov 112   ;;  %s3639_s26 = smov 111   ;;  %v532_v6 = vld [vmem:[%s7079_s2] sm:$0xff]  ;;  %v533_v7 = vld [vmem:[%s7079_s2 + $0x8] sm:$0xff]  ;;  %v3782_v15 = vand.u32 127, %v20_v14  ;;  %v7375_v41 = vmov 0 }
   0x3   :  { %s3640_s27 = smov 16   ;;  %s3642_s28 = smov 17   ;;  %3622 = vset.pattern.permute.xlu0 %v3643_v5  ;;  %3623 = vset.pattern.permute.xlu1 %v3643_v5  ;;  %v535_v8 = vld [vmem:[%s7079_s2 + $0x18] sm:$0xff]  ;;  %v534_v9 = vld [vmem:[%s7079_s2 + $0x10] sm:$0xff]  ;;  %v537_v10 = vld [vmem:[%s7079_s2 + $0x28] sm:$0xff]  ;;  %v7382_v52 = vmov 0 }
   0x4   :  { %v536_v11 = vld [vmem:[%s7079_s2 + $0x20] sm:$0xff]  ;;  %v539_v12 = vld [vmem:[%s7079_s2 + $0x38] sm:$0xff]  ;;  %v538_v13 = vld [vmem:[%s7079_s2 + $0x30] sm:$0xff]  ;;  %v23_v16 = vadd.s32 256, %v3782_v15  ;;  %v24_v17 = vadd.s32 384, %v3782_v15  ;;  %v22_v20 = vadd.s32 128, %v3782_v15 }
   0x5   :  { %v25_v29 = vand.u32 255, %v3782_v15  ;;  %v7385_v54 = vmov 0  ;;  %v7390_v56 = vmov 0  ;;  %v7395_v60 = vmov 0 }
   0x6   :  { %311 = vrot.lane.b32.xlu1 %v3690_v2, %s3634_s22  ;;  %307 = vrot.lane.b32.xlu0 %v3694_v3, %s3634_s22  ;;  %v27_v18 = vand.u32 255, %v23_v16  ;;  %v28_v19 = vand.u32 255, %v24_v17  ;;  %v26_v27 = vand.u32 255, %v22_v20  ;;  %v7399_v61 = vmov 0 }
   0x7   :  { %v33_v40 = vand.u32 15, %v25_v29  ;;  %v29_v42 = vshra.s32 %v25_v29, 4  ;;  %v7403_v62 = vmov 0  ;;  %v7429_v14 = vmov 0 }
   0x8   :  { %v3787_v21 = vand.u32 15, %v27_v18  ;;  %v31_v22 = vshra.s32 %v27_v18, 4  ;;  %v36_v23 = vand.u32 15, %v28_v19  ;;  %v32_v24 = vshra.s32 %v28_v19, 4 }
   0x9   :  { %v30_v36 = vshra.s32 %v26_v27, 4  ;;  %v34_v37 = vand.u32 15, %v26_v27  ;;  %v37_v45 = vadd.s32 4294967295, %v29_v42  ;;  %v3835_v50 = vadd.s32 1, %v33_v40 }
   0xa   :  { %332 = vrot.lane.b32.xlu1 %v3694_v3, %s3635_s0  ;;  %330 = vrot.lane.b32.xlu0 %v3682_v1, %s3635_s0  ;;  %v3794_v28 = vadd.s32 1, %v3787_v21  ;;  %v39_v30 = vadd.s32 4294967295, %v31_v22  ;;  %v3797_v31 = vadd.s32 1, %v36_v23  ;;  %vm111_vm0 = vcmp.ge.s32.totalorder %v31_v22, 0 }
   0xb   :  { %vm115_vm1 = vcmp.lt.s32.totalorder %v31_v22, 16  ;;  %v40_v32 = vadd.s32 4294967295, %v32_v24  ;;  %vm112_vm2 = vcmp.ge.s32.totalorder %v32_v24, 0  ;;  %vm116_vm3 = vcmp.lt.s32.totalorder %v32_v24, 16 }
   0xc   :  { %v147_v33 = vadd.s32 1, %v31_v22  ;;  %v148_v34 = vadd.s32 1, %v32_v24  ;;  %vm7084_vm4 = vcmp.ge.s32.totalorder %v3794_v28, 0  ;;  %vm3804_vm5 = vmand %vm111_vm0, %vm115_vm1  ;;  %vm7085_vm7 = vcmp.ge.s32.totalorder %v3797_v31, 0 }
   0xd   :  { %v7373_v39 = vsel %vm3804_vm5, 4294967295, %v7372_v39  ;;  %vm3809_vm8 = vmand %vm112_vm2, %vm116_vm3  ;;  %v38_v43 = vadd.s32 4294967295, %v30_v36  ;;  %v3821_v46 = vadd.s32 1, %v34_v37  ;;  %v146_v51 = vadd.s32 1, %v30_v36 }
   0xe   :  { %336 = vrot.lane.b32.xlu1 %v3690_v2, %s3635_s0  ;;  %334 = vrot.lane.b32.xlu0 %v3677_v0, %s3635_s0  ;;  %7374 = vst [vmem:[#allocation2_spill] sm:$0xff] %v7373_v39  ;;  %v7376_v41 = vsel %vm3809_vm8, 4294967295, %v7375_v41  ;;  %vm151_vm11 = vcmp.ge.s32.totalorder %v147_v33, 0  ;;  %vm155_vm12 = vcmp.lt.s32.totalorder %v147_v33, 16  ;;  %vm3817_vm13 = vmand %vm3804_vm5, %vm7084_vm4  ;;  %vm152_vm14 = vcmp.ge.s32.totalorder %v148_v34, 0 }
   0xf   :  { %7377 = vst [vmem:[#allocation3_spill] sm:$0xff] %v7376_v41  ;;  %vm156_vm15 = vcmp.lt.s32.totalorder %v148_v34, 16  ;;  %vm3831_vm0 = vmand %vm3809_vm8, %vm7085_vm7  ;;  %v145_v53 = vadd.s32 1, %v29_v42  ;;  %v3849_v55 = vadd.s32 4294967295, %v36_v23  ;;  %vm7388_vm5 = vcmp.lt.s32.totalorder %v30_v36, 16 }
  0x10   :  { %vm3838_vm4 = vmand %vm151_vm11, %vm155_vm12  ;;  %vm7389_vm9 = vcmp.ge.s32.totalorder %v30_v36, 0  ;;  %v3860_v58 = vadd.s32 4294967295, %v34_v37  ;;  %vm7397_vm3 = vcmp.lt.s32.totalorder %v38_v43, 16  ;;  %vm7398_vm11 = vcmp.ge.s32.totalorder %v38_v43, 0 }
  0x11   :  { %v7383_v52 = vsel %vm3838_vm4, 4294967295, %v7382_v52  ;;  %vm3845_vm7 = vmand %vm152_vm14, %vm156_vm15  ;;  %vm7393_vm14 = vcmp.lt.s32.totalorder %v39_v30, 16  ;;  %vm7394_vm15 = vcmp.ge.s32.totalorder %v39_v30, 0  ;;  %vm150_vm1 = vcmp.ge.s32.totalorder %v146_v51, 0 }
  0x12   :  { %245 = vrot.lane.b32.xlu1 %v3694_v3, %s3636_s23  ;;  %243 = vrot.lane.b32.xlu0 %v3682_v1, %s3636_s23  ;;  %7384 = vst [vmem:[#allocation4_spill] sm:$0xff] %v7383_v52  ;;  %v7386_v54 = vsel %vm3845_vm7, 4294967295, %v7385_v54  ;;  %vm3854_vm6 = vmand %vm7389_vm9, %vm7388_vm5  ;;  %vm154_vm2 = vcmp.lt.s32.totalorder %v146_v51, 16  ;;  %vm7401_vm8 = vcmp.lt.s32.totalorder %v29_v42, 16  ;;  %vm7402_vm4 = vcmp.ge.s32.totalorder %v29_v42, 0 }
  0x13   :  { %7387 = vst [vmem:[#allocation5_spill] sm:$0xff] %v7386_v54  ;;  %v7391_v56 = vsel %vm3854_vm6, 4294967295, %v7390_v56  ;;  %vm3866_vm10 = vmand %vm7394_vm15, %vm7393_vm14  ;;  %vm153_vm15 = vcmp.lt.s32.totalorder %v145_v53, 16  ;;  %v3884_v63 = vadd.s32 4294967295, %v33_v40  ;;  %v3887_v5 = vadd.s32 4294967295, %v3787_v21 }
  0x14   :  { %7392 = vst [vmem:[#allocation6_spill] sm:$0xff] %v7391_v56  ;;  %v7396_v60 = vsel %vm3866_vm10, 4294967295, %v7395_v60  ;;  %vm3873_vm5 = vmand %vm7398_vm11, %vm7397_vm3  ;;  %vm7406_vm3 = vcmp.lt.s32.totalorder %v40_v32, 16  ;;  %vm7407_vm11 = vcmp.ge.s32.totalorder %v40_v32, 0  ;;  %vm7410_vm9 = vcmp.lt.s32.totalorder %v37_v45, 16 }
  0x15   :  { %v7400_v61 = vsel %vm3873_vm5, 4294967295, %v7399_v61  ;;  %vm3880_vm7 = vmand %vm7402_vm4, %vm7401_vm8  ;;  %vm7411_vm10 = vcmp.ge.s32.totalorder %v37_v45, 0  ;;  %vm7414_vm4 = vcmp.ge.s32.totalorder %v3821_v46, 0  ;;  %v7433_v16 = vmov 0 }
  0x16   :  { %249 = vrot.lane.b32.xlu1 %v3690_v2, %s3636_s23  ;;  %247 = vrot.lane.b32.xlu0 %v3677_v0, %s3636_s23  ;;  %v7404_v62 = vsel %vm3880_vm7, 4294967295, %v7403_v62  ;;  %vm3891_vm12 = vmand %vm7407_vm11, %vm7406_vm3  ;;  %vm7428_vm11 = vcmp.lt.s32.totalorder %v3835_v50, 16  ;;  %v7440_v17 = vmov 0  ;;  %v7444_v20 = vmov 0 }
  0x17   :  { %7405 = vst [vmem:[#allocation7_spill] sm:$0xff] %v7404_v62  ;;  %vm3897_vm5 = vmand %vm7411_vm10, %vm7410_vm9  ;;  %vm7420_vm10 = vcmp.lt.s32.totalorder %v3794_v28, 16  ;;  %v7447_v21 = vmov 0  ;;  %v7452_v22 = vmov 0  ;;  %v7457_v23 = vmov 0 }
  0x18   :  { %vm3905_vm8 = vmand %vm3854_vm6, %vm7414_vm4  ;;  %vm7424_vm4 = vcmp.lt.s32.totalorder %v3797_v31, 16  ;;  %v302_v40 = vsel %vm3854_vm6, %v3694_v3, 0.0 }
  0x19   :  { %vm3910_vm3 = vmand %vm150_vm1, %vm154_vm2  ;;  %vm7436_vm2 = vcmp.ge.s32.totalorder %v3849_v55, 0 }
  0x1a   :  { %270 = vrot.lane.b32.xlu1 %v3694_v3, %s3637_s24  ;;  %268 = vrot.lane.b32.xlu0 %v3682_v1, %s3637_s24  ;;  %vm3923_vm9 = vmand %vm3817_vm13, %vm7420_vm10  ;;  %vm7432_vm13 = vcmp.ge.s32.totalorder %v145_v53, 0 }
  0x1b   :  { %vm3931_vm1 = vmand %vm3831_vm0, %vm7424_vm4  ;;  %vm7103_vm4 = vcmp.lt.s32.totalorder %v3849_v55, 16 }
  0x1c   :  { %vm3940_vm14 = vmand %vm3880_vm7, %vm7428_vm11  ;;  %vm7106_vm11 = vcmp.ge.s32.totalorder %v3887_v5, 0 }
  0x1d   :  { %v7430_v14 = vsel %vm3940_vm14, 4294967295, %v7429_v14  ;;  %vm3946_vm10 = vmand %vm7432_vm13, %vm153_vm15  ;;  %vm7438_vm14 = vcmp.ge.s32.totalorder %v3860_v58, 0  ;;  %vm7439_vm13 = vcmp.lt.s32.totalorder %v3821_v46, 16 }
  0x1e   :  { %274 = vrot.lane.b32.xlu1 %v3690_v2, %s3637_s24  ;;  %272 = vrot.lane.b32.xlu0 %v3677_v0, %s3637_s24  ;;  %7431 = vst [vmem:[#allocation11_spill] sm:$0xff] %v7430_v14  ;;  %v7434_v16 = vsel %vm3946_vm10, 4294967295, %v7433_v16  ;;  %vm162_vm15 = vmand %vm3910_vm3, %vm7438_vm14 }
  0x1f   :  { %7435 = vst [vmem:[#allocation12_spill] sm:$0xff] %v7434_v16  ;;  %vm3966_vm0 = vmand %vm3905_vm8, %vm7439_vm13  ;;  %vm7107_vm8 = vcmp.lt.s32.totalorder %v3887_v5, 16  ;;  %vm7450_vm13 = vnez %v7383_v52 }
  0x20   :  { %v7441_v17 = vsel %vm3966_vm0, 4294967295, %v7440_v17 }
  0x21   :  { %7442 = vst [vmem:[#allocation13_spill] sm:$0xff] %v7441_v17 }
  0x22   :  { %357 = vrot.lane.b32.xlu1 %v3694_v3, %s3638_s25  ;;  %355 = vrot.lane.b32.xlu0 %v3682_v1, %s3638_s25 }
  0x26   :  { %361 = vrot.lane.b32.xlu1 %v3690_v2, %s3638_s25  ;;  %359 = vrot.lane.b32.xlu0 %v3677_v0, %s3638_s25 }
  0x2a   :  { %382 = vrot.lane.b32.xlu1 %v3694_v3, %s3639_s26  ;;  %380 = vrot.lane.b32.xlu0 %v3682_v1, %s3639_s26 }
  0x2e   :  { %386 = vrot.lane.b32.xlu1 %v3690_v2, %s3639_s26  ;;  %384 = vrot.lane.b32.xlu0 %v3677_v0, %s3639_s26 }
  0x32   :  { %220 = vrot.lane.b32.xlu1 %v3694_v3, %s3640_s27  ;;  %218 = vrot.lane.b32.xlu0 %v3682_v1, %s3640_s27 }
  0x36   :  { %224 = vrot.lane.b32.xlu1 %v3690_v2, %s3640_s27  ;;  %222 = vrot.lane.b32.xlu0 %v3677_v0, %s3640_s27 }
  0x3a   :  { %195 = vrot.lane.b32.xlu1 %v3694_v3, %s3642_s28  ;;  %193 = vrot.lane.b32.xlu0 %v3682_v1, %s3642_s28 }
  0x3e   :  { %199 = vrot.lane.b32.xlu1 %v3690_v2, %s3642_s28  ;;  %197 = vrot.lane.b32.xlu0 %v3677_v0, %s3642_s28 }
  0x42   :  { %542 = vperm.xlu0 %3622, %v532_v6   ;;  %547 = vperm.xlu1 %3623, %v533_v7   ;;  %v7408_v6 = vmov 0  ;;  %v7412_v7 = vmov 0 }
  0x43   :  { %v7409_v6 = vsel %vm3891_vm12, 4294967295, %v7408_v6  ;;  %v7413_v7 = vsel %vm3897_vm5, 4294967295, %v7412_v7 }
  0x46   :  { %557 = vperm.xlu0 %3622, %v535_v8   ;;  %552 = vperm.xlu1 %3623, %v534_v9   ;;  %v7417_v9 = vmov 0 }
  0x47   :  { %v7418_v9 = vsel %vm3910_vm3, 4294967295, %v7417_v9  ;;  %vm7461_vm3 = vnez %v7396_v60 }
  0x48   :  { %7419 = vst [vmem:[#allocation8_spill] sm:$0xff] %v7418_v9 }
  0x4a   :  { %567 = vperm.xlu0 %3622, %v537_v10   ;;  %562 = vperm.xlu1 %3623, %v536_v11  }
  0x4e   :  { %577 = vperm.xlu0 %3622, %v539_v12   ;;  %572 = vperm.xlu1 %3623, %v538_v13   ;;  %v7421_v12 = vmov 0  ;;  %v7425_v13 = vmov 0 }
  0x4f   :  { %v7422_v12 = vsel %vm3923_vm9, 4294967295, %v7421_v12  ;;  %v7426_v13 = vsel %vm3931_vm1, 4294967295, %v7425_v13  ;;  %vm7437_vm1 = vnez %v7386_v54 }
  0x50   :  { %7423 = vst [vmem:[#allocation9_spill] sm:$0xff] %v7422_v12  ;;  %7427 = vst [vmem:[#allocation10_spill] sm:$0xff] %v7426_v13 }
  0x51   :  { %vm164_vm9 = vmand %vm7437_vm1, %vm7436_vm2  ;;  %vm7443_vm2 = vcmp.ge.s32.totalorder %v3884_v63, 0 }
  0x52   :  { %vm3978_vm7 = vmand %vm3946_vm10, %vm7443_vm2  ;;  %vm7451_vm2 = vcmp.lt.s32.totalorder %v3860_v58, 16 }
  0x53   :  { %v7445_v20 = vsel %vm3978_vm7, 4294967295, %v7444_v20  ;;  %vm3984_vm14 = vmand %vm164_vm9, %vm7103_vm4  ;;  %vm7455_vm9 = vcmp.ge.s32.totalorder %v3821_v46, 0  ;;  %vm7456_vm4 = vnez %v7400_v61 }
  0x54   :  { %7446 = vst [vmem:[#allocation14_spill] sm:$0xff] %v7445_v20  ;;  %v7448_v21 = vsel %vm3984_vm14, 4294967295, %v7447_v21  ;;  %vm163_vm1 = vmand %vm7450_vm13, %vm7106_vm11  ;;  %vm7460_vm11 = vcmp.ge.s32.totalorder %v3794_v28, 0 }
  0x55   :  { %7449 = vst [vmem:[#allocation15_spill] sm:$0xff] %v7448_v21  ;;  %vm3996_vm10 = vmand %vm162_vm15, %vm7451_vm2  ;;  %vm7464_vm15 = vcmp.lt.s32.totalorder %v3782_v15, 127 }
  0x56   :  { %v7453_v22 = vsel %vm3996_vm10, 4294967295, %v7452_v22  ;;  %vm98_vm14 = vmand %vm7456_vm4, %vm7455_vm9  ;;  %vm7468_vm9 = vcmp.ge.s32.totalorder %v3860_v58, 0 }
  0x57   :  { %7454 = vst [vmem:[#allocation16_spill] sm:$0xff] %v7453_v22  ;;  %vm4006_vm7 = vmand %vm163_vm1, %vm7107_vm8  ;;  %vm7483_vm8 = vcmp.lt.s32.totalorder %v3794_v28, 16 }
  0x58   :  { %v7458_v23 = vsel %vm4006_vm7, 4294967295, %v7457_v23  ;;  %vm4014_vm13 = vmand %vm7461_vm3, %vm7460_vm11  ;;  %vm7471_vm3 = vcmp.lt.s32.totalorder %v3821_v46, 16 }
  0x59   :  { %7459 = vst [vmem:[#allocation17_spill] sm:$0xff] %v7458_v23  ;;  %vm7465_vm1 = vmmov %vm7464_vm15 }
  0x5a   :  { %vm7466_vm2 = vmmov %vm7465_vm1 }
  0x5b   :  { %vm7467_vm11 = vmmov %vm7465_vm1 }
  0x74   :  { %v3789_v25 = vpop.permute.xlu1 %309  ;;  %v3791_v26 = vpop.permute.xlu0 %305 }
  0x78   :  { %v3799_v35 = vpop.permute.xlu1 %311  ;;  %v3801_v38 = vpop.permute.xlu0 %307 }
  0x79   :  { %v314_v30 = vsel %vm7464_vm15, %v3789_v25, %v3799_v35  ;;  %v317_v32 = vsel %vm7465_vm1, %v3799_v35, %v3791_v26  ;;  %v315_v33 = vsel %vm7466_vm2, %v3801_v38, %v3789_v25  ;;  %v316_v34 = vsel %vm7467_vm11, %v3791_v26, %v3801_v38  ;;  %vm4038_vm15 = vmand %vm3854_vm6, %vm7468_vm9 }
  0x7a   :  { %vm4046_vm2 = vmand %vm98_vm14, %vm7471_vm3  ;;  %v7472_v25 = vmov 0  ;;  %vm7475_vm11 = vcmp.lt.s32.totalorder %v3835_v50, 16  ;;  %v7476_v26 = vmov 0  ;;  %vm7479_vm9 = vcmp.ge.s32.totalorder %v3797_v31, 0 }
  0x7b   :  { %v7473_v25 = vsel %vm4046_vm2, 4294967295, %v7472_v25  ;;  %vm4054_vm4 = vmand %vm3897_vm5, %vm7475_vm11  ;;  %vm7482_vm3 = vnez %v7376_v41  ;;  %v7484_v38 = vmov 0  ;;  %vm7488_vm5 = vnez %v7404_v62 }
  0x7c   :  { %v3823_v47 = vpop.permute.xlu1 %332  ;;  %v3825_v48 = vpop.permute.xlu0 %330  ;;  %7474 = vst [vmem:[#allocation18_spill] sm:$0xff] %v7473_v25  ;;  %v7477_v26 = vsel %vm4054_vm4, 4294967295, %v7476_v26  ;;  %vm4062_vm1 = vmand %vm3891_vm12, %vm7479_vm9  ;;  %v304_v37 = vsel %vm7482_vm3, %v3690_v2, 0.0  ;;  %vm7487_vm9 = vnez %v7373_v39  ;;  %v301_v2 = vsel %vm7488_vm5, %v3682_v1, 0.0 }
  0x7d   :  { %7478 = vst [vmem:[#allocation19_spill] sm:$0xff] %v7477_v26  ;;  %vm4074_vm11 = vmand %vm4014_vm13, %vm7483_vm8  ;;  %v303_v42 = vsel %vm7487_vm9, %v3677_v0, 0.0  ;;  %vm7489_vm14 = vnez %v7422_v12  ;;  %vm7490_vm8 = vnez %v7426_v13  ;;  %vm7491_vm13 = vnez %v7430_v14 }
  0x7e   :  { %v7485_v38 = vsel %vm4074_vm11, 4294967295, %v7484_v38  ;;  %v328_v43 = vsel %vm7489_vm14, %v314_v30, 0.0  ;;  %v329_v44 = vsel %vm7490_vm8, %v317_v32, 0.0  ;;  %v326_v45 = vsel %vm7491_vm13, %v316_v34, 0.0 }
  0x7f   :  { %7486 = vst [vmem:[#allocation20_spill] sm:$0xff] %v7485_v38  ;;  %v327_v3 = vsel %vm3966_vm0, %v315_v33, 0.0  ;;  %vm7492_vm6 = vcmp.lt.s32.totalorder %v3860_v58, 16  ;;  %v7493_v0 = vmov 0  ;;  %vm7496_vm8 = vcmp.lt.s32.totalorder %v3782_v15, 113 }
  0x80   :  { %v3858_v57 = vpop.permute.xlu1 %336  ;;  %v3862_v59 = vpop.permute.xlu0 %334  ;;  %vm4099_vm12 = vmand %vm4038_vm15, %vm7492_vm6  ;;  %v341_v51 = vsel %vm7496_vm8, %v3825_v48, %v3823_v47  ;;  %vm7498_vm0 = vcmp.ge.s32.totalorder %v3887_v5, 0  ;;  %v4120_v24 = vrot.slane %v304_v37, 4  ;;  %vm7501_vm14 = vcmp.ge.s32.totalorder %v3849_v55, 0 }
  0x81   :  { %v7494_v0 = vsel %vm4099_vm12, 4294967295, %v7493_v0  ;;  %vm7497_vm13 = vmmov %vm7496_vm8  ;;  %v340_v30 = vsel %vm7496_vm8, %v3823_v47, %v3862_v59  ;;  %v4134_v32 = vrot.slane %v302_v40, 4  ;;  %v4136_v33 = vrot.slane %v303_v42, 4 }
  0x82   :  { %7495 = vst [vmem:[#allocation21_spill] sm:$0xff] %v7494_v0  ;;  %v342_v53 = vsel %vm7497_vm13, %v3858_v57, %v3825_v48  ;;  %vm4116_vm6 = vmand %vm7487_vm9, %vm7498_vm0  ;;  %v4138_v34 = vrot.slane %v301_v2, 4  ;;  %v4140_v36 = vrot.slane %v328_v43, 1  ;;  %v4142_v37 = vrot.slane %v329_v44, 1 }
  0x83   :  { %vm4130_vm13 = vmand %vm7482_vm3, %vm7501_vm14  ;;  %v4144_v4 = vrot.slane %v326_v45, 1  ;;  %v4146_v47 = vrot.slane %v327_v3, 1  ;;  %vm7504_vm0 = vcmp.ge.s32.totalorder %v3884_v63, 0  ;;  %v7505_v12 = vmov 0 }
  0x84   :  { %v3915_v10 = vpop.permute.xlu1 %245  ;;  %v3917_v11 = vpop.permute.xlu0 %243  ;;  %vm4152_vm14 = vmand %vm7488_vm5, %vm7504_vm0  ;;  %vm7508_vm8 = vnez %v7445_v20  ;;  %vm7509_vm15 = vnez %v7448_v21  ;;  %vm7510_vm9 = vcmp.lt.s32.totalorder %v3782_v15, 113  ;;  %vm7511_vm3 = vcmp.lt.s32.totalorder %v3782_v15, 1 }
  0x85   :  { %v7506_v12 = vsel %vm4152_vm14, 4294967295, %v7505_v12  ;;  %v351_v40 = vsel %vm7508_vm8, %v341_v51, 0.0  ;;  %v354_v42 = vsel %vm7509_vm15, %v342_v53, 0.0  ;;  %v339_v2 = vsel %vm7510_vm9, %v3862_v59, %v3858_v57  ;;  %vm7516_vm9 = vmmov %vm7511_vm3 }
  0x86   :  { %7507 = vst [vmem:[#allocation22_spill] sm:$0xff] %v7506_v12  ;;  %vm7512_vm11 = vcmp.lt.s32.totalorder %v3887_v5, 16  ;;  %v7513_v44 = vmov 0  ;;  %v352_v51 = vsel %vm3996_vm10, %v340_v30, 0.0  ;;  %v7518_v59 = vmov 0 }
  0x87   :  { %vm4170_vm0 = vmand %vm4116_vm6, %vm7512_vm11  ;;  %vm7523_vm15 = vcmp.lt.s32.totalorder %v3782_v15, 15  ;;  %v7526_v48 = vmov 0  ;;  %v353_v21 = vsel %vm4006_vm7, %v339_v2, 0.0  ;;  %v470_v20 = vrot.slane %v352_v51, 6 }
  0x88   :  { %v3970_v18 = vpop.permute.xlu1 %249  ;;  %v3972_v19 = vpop.permute.xlu0 %247  ;;  %v7514_v44 = vsel %vm4170_vm0, 4294967295, %v7513_v44  ;;  %vm7521_vm11 = vmmov %vm7516_vm9  ;;  %v254_v30 = vsel %vm7523_vm15, %v3917_v11, %v3915_v10  ;;  %vm7541_vm10 = vnez %v7386_v54 }
  0x89   :  { %7515 = vst [vmem:[#allocation23_spill] sm:$0xff] %v7514_v44  ;;  %vm7522_vm6 = vmmov %vm7516_vm9 }
  0x8c   :  { %v271_v27 = vpop.permute.xlu1 %270  ;;  %v269_v29 = vpop.permute.xlu0 %268 }
  0x8d   :  { %v279_v43 = vsel %vm7511_vm3, %v269_v29, %v271_v27  ;;  %vm7517_vm3 = vcmp.lt.s32.totalorder %v3849_v55, 16 }
  0x8e   :  { %vm4183_vm5 = vmand %vm4130_vm13, %vm7517_vm3  ;;  %vm7525_vm13 = vcmp.lt.s32.totalorder %v3797_v31, 16  ;;  %v290_v35 = vsel %vm4099_vm12, %v279_v43, 0.0 }
  0x8f   :  { %v7519_v59 = vsel %vm4183_vm5, 4294967295, %v7518_v59  ;;  %vm4203_vm3 = vmand %vm4062_vm1, %vm7525_vm13  ;;  %v434_v43 = vrot.slane %v290_v35, 7  ;;  %vm7532_vm13 = vcmp.lt.s32.totalorder %v3782_v15, 112  ;;  %vm7536_vm1 = vnez %v7418_v9 }
  0x90   :  { %v275_v1 = vpop.permute.xlu1 %274  ;;  %v273_v49 = vpop.permute.xlu0 %272  ;;  %7520 = vst [vmem:[#allocation24_spill] sm:$0xff] %v7519_v59  ;;  %v7527_v48 = vsel %vm4203_vm3, 4294967295, %v7526_v48 }
  0x91   :  { %v280_v57 = vsel %vm7516_vm9, %v275_v1, %v269_v29  ;;  %v277_v53 = vsel %vm7521_vm11, %v273_v49, %v275_v1  ;;  %v278_v8 = vsel %vm7522_vm6, %v271_v27, %v273_v49  ;;  %vm7524_vm9 = vmmov %vm7523_vm15  ;;  %7528 = vst [vmem:[#allocation25_spill] sm:$0xff] %v7527_v48  ;;  %v469_v49 = vrot.slane %v351_v40, 6 }
  0x92   :  { %v255_v29 = vsel %vm7524_vm9, %v3970_v18, %v3917_v11  ;;  %vm7529_vm11 = vmmov %vm7524_vm9  ;;  %v472_v11 = vrot.slane %v354_v42, 6  ;;  %v289_v22 = vsel %vm4152_vm14, %v280_v57, 0.0  ;;  %v292_v13 = vsel %vm4183_vm5, %v277_v53, 0.0 }
  0x93   :  { %v252_v27 = vsel %vm7529_vm11, %v3972_v19, %v3970_v18  ;;  %vm7530_vm15 = vmmov %vm7524_vm9  ;;  %v291_v18 = vsel %vm4170_vm0, %v278_v8, 0.0  ;;  %v264_v40 = vsel %vm4054_vm4, %v255_v29, 0.0  ;;  %vm7531_vm9 = vnez %v7485_v38 }
  0x94   :  { %v358_v45 = vpop.permute.xlu1 %357  ;;  %v356_v3 = vpop.permute.xlu0 %355  ;;  %v253_v1 = vsel %vm7530_vm15, %v3915_v10, %v3972_v19  ;;  %v265_v19 = vsel %vm4046_vm2, %v254_v30, 0.0  ;;  %v267_v2 = vsel %vm4203_vm3, %v252_v27, 0.0  ;;  %vm7533_vm11 = vmmov %vm7532_vm13  ;;  %vm7535_vm6 = vcmp.ge.s32.totalorder %v3821_v46, 0 }
  0x95   :  { %v266_v42 = vsel %vm7531_vm9, %v253_v1, 0.0  ;;  %v366_v51 = vsel %vm7532_vm13, %v356_v3, %v358_v45  ;;  %vm7534_vm15 = vmmov %vm7533_vm11  ;;  %v433_v30 = vrot.slane %v289_v22, 7  ;;  %v435_v29 = vrot.slane %v291_v18, 7 }
  0x96   :  { %vm4243_vm8 = vmand %vm7536_vm1, %vm7535_vm6  ;;  %v436_v27 = vrot.slane %v292_v13, 7  ;;  %v4259_v35 = vrot.slane %v264_v40, 2  ;;  %v4261_v23 = vrot.slane %v266_v42, 2  ;;  %vm7544_vm6 = vcmp.ge.s32.totalorder %v3794_v28, 0 }
  0x97   :  { %vm7539_vm13 = vmmov %vm7533_vm11  ;;  %vm7546_vm5 = vcmask 1041408   ;;  %v4269_v18 = vrot.slane %v267_v2, 2  ;;  %vm7548_vm0 = vcmp.lt.s32.totalorder %v3821_v46, 16  ;;  %v7549_v42 = vmov 0 }
  0x98   :  { %v362_v14 = vpop.permute.xlu1 %361  ;;  %v360_v10 = vpop.permute.xlu0 %359  ;;  %vm4281_vm14 = vmand %vm4243_vm8, %vm7548_vm0  ;;  %vm7558_vm0 = vcmp.lt.s32.totalorder %v3794_v28, 16  ;;  %vm7614_vm3 = vcmask 1045504  }
  0x99   :  { %v367_v57 = vsel %vm7533_vm11, %v362_v14, %v356_v3  ;;  %v365_v53 = vsel %vm7534_vm15, %v358_v45, %v360_v10  ;;  %v364_v1 = vsel %vm7539_vm13, %v360_v10, %v362_v14  ;;  %vm7540_vm11 = vcmp.ge.s32.totalorder %v3797_v31, 0 }
  0x9a   :  { %vm4253_vm15 = vmand %vm7541_vm10, %vm7540_vm11  ;;  %v4257_v3 = vrot.slane %v265_v19, 2  ;;  %vm7545_vm13 = vnez %v7383_v52  ;;  %v515_v14 = vsel %vm7546_vm5, %v4144_v4, %v469_v49  ;;  %vm7547_vm11 = vnez %v7434_v16 }
  0x9b   :  { %vm179_vm7 = vmand %vm7545_vm13, %vm7544_vm6  ;;  %v376_v10 = vsel %vm7547_vm11, %v366_v51, 0.0  ;;  %v379_v19 = vsel %vm7541_vm10, %v367_v57, 0.0  ;;  %v377_v40 = vsel %vm7536_vm1, %v365_v53, 0.0  ;;  %v7550_v42 = vsel %vm4281_vm14, 4294967295, %v7549_v42 }
  0x9c   :  { %v383_v22 = vpop.permute.xlu1 %382  ;;  %v381_v13 = vpop.permute.xlu0 %380  ;;  %7551 = vst [vmem:[#allocation26_spill] sm:$0xff] %v7550_v42  ;;  %v471_v49 = vrot.slane %v353_v21, 6  ;;  %v378_v2 = vsel %vm7545_vm13, %v364_v1, 0.0  ;;  %vm7552_vm5 = vcmp.lt.s32.totalorder %v3797_v31, 16  ;;  %v7553_v51 = vmov 0  ;;  %vm4301_vm1 = vmand %vm179_vm7, %vm7558_vm0 }
  0x9d   :  { %vm4291_vm6 = vmand %vm4253_vm15, %vm7552_vm5  ;;  %vm7556_vm10 = vcmask 1041408   ;;  %v7559_v21 = vmov 0  ;;  %vm7562_vm13 = vcmask 1040384   ;;  %v481_v1 = vrot.slane %v376_v10, 3 }
  0x9e   :  { %v7554_v51 = vsel %vm4291_vm6, 4294967295, %v7553_v51  ;;  %v516_v46 = vsel %vm7556_vm10, %v4146_v47, %v470_v20  ;;  %vm7557_vm8 = vmmov %vm7556_vm10  ;;  %v7560_v21 = vsel %vm4301_vm1, 4294967295, %v7559_v21  ;;  %v501_v31 = vsel %vm7562_vm13, %v4257_v3, %v434_v43 }
  0x9f   :  { %7555 = vst [vmem:[#allocation27_spill] sm:$0xff] %v7554_v51  ;;  %v518_v57 = vsel %vm7557_vm8, %v4142_v37, %v472_v11  ;;  %7561 = vst [vmem:[#allocation28_spill] sm:$0xff] %v7560_v21  ;;  %v484_v11 = vrot.slane %v379_v19, 3  ;;  %v482_v45 = vrot.slane %v377_v40, 3  ;;  %vm7566_vm7 = vcmp.lt.s32.totalorder %v3835_v50, 16 }
  0xa0   :  { %vm7563_vm15 = vmmov %vm7562_vm13  ;;  %v387_v28 = vpop.permute.xlu1 %386  ;;  %v385_v52 = vpop.permute.xlu0 %384  ;;  %v7567_v43 = vmov 0 }
  0xa1   :  { %v503_v53 = vsel %vm7563_vm15, %v4269_v18, %v436_v27  ;;  %vm7564_vm5 = vmmov %vm7562_vm13  ;;  %vm7570_vm13 = vcmp.lt.s32.totalorder %v3782_v15, 111 }
  0xa2   :  { %v502_v8 = vsel %vm7564_vm5, %v4261_v23, %v435_v29  ;;  %vm7565_vm10 = vmmov %vm7564_vm5  ;;  %v391_v27 = vsel %vm7570_vm13, %v381_v13, %v383_v22  ;;  %v483_v29 = vrot.slane %v378_v2, 3 }
  0xa3   :  { %v500_v20 = vsel %vm7565_vm10, %v4259_v35, %v433_v30  ;;  %vm4317_vm8 = vmand %vm7547_vm11, %vm7566_vm7  ;;  %vm7574_vm10 = vcmask 1041408   ;;  %vm7575_vm7 = vcmask 1042432  }
  0xa4   :  { %v7568_v43 = vsel %vm4317_vm8, 4294967295, %v7567_v43  ;;  %vm7571_vm0 = vmmov %vm7570_vm13  ;;  %v517_v2 = vsel %vm7574_vm10, %v4140_v36, %v471_v49  ;;  %v219_v49 = vpop.permute.xlu0 %218 }
  0xa5   :  { %7569 = vst [vmem:[#allocation29_spill] sm:$0xff] %v7568_v43  ;;  %v390_v30 = vsel %vm7571_vm0, %v383_v22, %v385_v52  ;;  %vm7572_vm15 = vmmov %vm7571_vm0  ;;  %v401_v22 = vsel %vm4317_vm8, %v391_v27, 0.0  ;;  %vm7597_vm8 = vcmp.ge.s32.totalorder %v3849_v55, 0 }
  0xa6   :  { %v392_v10 = vsel %vm7572_vm15, %v387_v28, %v381_v13  ;;  %vm7573_vm5 = vmmov %vm7571_vm0  ;;  %v402_v50 = vsel %vm4281_vm14, %v390_v30, 0.0  ;;  %vm7577_vm0 = vcmask 1043456   ;;  %v221_v30 = vpop.permute.xlu1 %220  ;;  %vm7598_vm14 = vnez %v7409_v6 }
  0xa7   :  { %v389_v19 = vsel %vm7573_vm5, %v385_v52, %v387_v28  ;;  %v404_v40 = vsel %vm4291_vm6, %v392_v10, 0.0  ;;  %3278 = vmatprep.subr.msk.mxu0 %vm7575_vm7, %v402_v50  ;;  %vm7576_vm13 = vmmov %vm7575_vm7  ;;  %v506_v52 = vsel %vm7577_vm0, %v501_v31, %v4134_v32  ;;  %v505_v32 = vsel %vm7577_vm0, %v500_v20, %v4138_v34 }
  0xa8   :  { %v403_v54 = vsel %vm4301_vm1, %v389_v19, 0.0  ;;  %3288 = vmatprep.subr.msk.mxu1 %vm7576_vm13, %v404_v40  ;;  %vm7578_vm15 = vmmov %vm7577_vm0  ;;  %vm7164_vm1 = vcmp.lt.s32.totalorder %v3782_v15, 16  ;;  %vm7581_vm13 = vcmask 1044480   ;;  %v7602_v19 = vmov 0 }
  0xa9   :  { %v508_v13 = vsel %vm7578_vm15, %v503_v53, %v4120_v24  ;;  %vm7579_vm5 = vmmov %vm7577_vm0  ;;  %3289 = vmatpush1.msk.msra.mxu1 %vm7575_vm7, %v403_v54  ;;  %v521_v10 = vsel %vm7581_vm13, %v516_v46, %v482_v45  ;;  %v229_v46 = vsel %vm7164_vm1, %v219_v49, %v221_v30  ;;  %vm7589_vm0 = vcmp.ge.s32.totalorder %v3860_v58, 0 }
  0xaa   :  { %v507_v28 = vsel %vm7579_vm5, %v502_v8, %v4136_v33  ;;  %vm7580_vm10 = vmmov %vm7575_vm7  ;;  %v7592_v53 = vmov 0 }
  0xab   :  { %3279 = vmatpush1.msk.msra.mxu0 %vm7580_vm10, %v401_v22  ;;  %vm7582_vm6 = vmmov %vm7581_vm13  ;;  %vm7585_vm10 = vcmask 1046528  }
  0xac   :  { %v523_v27 = vsel %vm7582_vm6, %v518_v57, %v484_v11  ;;  %643 = vmatprep.subr.mxu0 %v521_v10  ;;  %vm7583_vm15 = vmmov %vm7582_vm6  ;;  %v511_v31 = vsel %vm7585_vm10, %v506_v52, %v4146_v47  ;;  %v225_v47 = vpop.permute.xlu1 %224  ;;  %v223_v57 = vpop.permute.xlu0 %222 }
  0xad   :  { %756 = vmatprep.subr.mxu1 %v523_v27  ;;  %v520_v24 = vsel %vm7583_vm15, %v515_v14, %v481_v1  ;;  %vm7584_vm5 = vmmov %vm7582_vm6  ;;  %vm7590_vm15 = vnez %v7400_v61  ;;  %v227_v8 = vsel %vm7164_vm1, %v223_v57, %v225_v47 }
  0xae   :  { %v522_v33 = vsel %vm7584_vm5, %v517_v2, %v483_v29  ;;  %644 = vmatpush1.msra.mxu0 %v520_v24  ;;  %vm7586_vm7 = vmmov %vm7585_vm10  ;;  %v242_v50 = vsel %vm7598_vm14, %v227_v8, 0.0  ;;  %v7606_v2 = vmov 0  ;;  %v531_v8 = vld [vmem:[%s7080_s1 + $0x38] sm:$0xff] }
  0xaf   :  { %757 = vmatpush1.msra.mxu1 %v522_v33  ;;  %v513_v54 = vsel %vm7586_vm7, %v508_v13, %v4142_v37  ;;  %645 = vmatprep.subr.mxu0 %v511_v31  ;;  %vm7587_vm6 = vmmov %vm7586_vm7  ;;  %v240_v37 = vsel %vm7590_vm15, %v229_v46, 0.0  ;;  %vm7591_vm7 = vcmp.lt.s32.totalorder %v3860_v58, 16 }
  0xb0   :  { %758 = vmatprep.subr.mxu1 %v513_v54  ;;  %v512_v34 = vsel %vm7587_vm6, %v507_v28, %v4140_v36  ;;  %vm7588_vm13 = vmmov %vm7587_vm6  ;;  %v230_v36 = vsel %vm7164_vm1, %v225_v47, %v219_v49  ;;  %v196_v20 = vpop.permute.xlu1 %195  ;;  %v194_v1 = vpop.permute.xlu0 %193  ;;  %v410_v58 = vrot.slane %v240_v37, 5  ;;  %v524_v54 = vld [vmem:[%s7080_s1] sm:$0xff]  ;;  %v525_v37 = vld [vmem:[%s7080_s1 + $0x8] sm:$0xff] }
  0xb1   :  { %v510_v14 = vsel %vm7588_vm13, %v505_v32, %v4144_v4  ;;  %vm62_vm5 = vmand %vm7590_vm15, %vm7589_vm0  ;;  %759 = vmatpush1.msra.mxu1 %v512_v34  ;;  %v228_v4 = vsel %vm7164_vm1, %v221_v30, %v223_v57  ;;  %vm7595_vm13 = vcmp.ge.s32.totalorder %v3887_v5, 0  ;;  %vm7596_vm0 = vnez %v7396_v60  ;;  %v843_v60 = vld [vmem:[%s7081_s3] sm:$0x7] }
  0xb2   :  { %646 = vmatpush1.msra.mxu0 %v510_v14  ;;  %vm4379_vm6 = vmand %vm62_vm5, %vm7591_vm7  ;;  %vm7599_vm5 = vnez %v7413_v7  ;;  %v241_v45 = vsel %vm7596_vm0, %v228_v4, 0.0  ;;  %vm7600_vm7 = vcmp.lt.s32.totalorder %v3782_v15, 17  ;;  %v7624_v57 = vmov 0.0   ;;  %v530_v4 = vld [vmem:[%s7080_s1 + $0x30] sm:$0xff] }
  0xb3   :  { %v7593_v53 = vsel %vm4379_vm6, 4294967295, %v7592_v53  ;;  %vm63_vm10 = vmand %vm7596_vm0, %vm7595_vm13  ;;  %v239_v11 = vsel %vm7599_vm5, %v230_v36, 0.0  ;;  %v204_v29 = vsel %vm7600_vm7, %v194_v1, %v196_v20  ;;  %vm7601_vm13 = vcmp.ge.s32.totalorder %v3884_v63, 0  ;;  %v529_v36 = vld [vmem:[%s7080_s1 + $0x28] sm:$0xff] }
  0xb4   :  { %7594 = vst [vmem:[#allocation30_spill] sm:$0xff] %v7593_v53  ;;  %vm64_vm11 = vmand %vm7598_vm14, %vm7597_vm8  ;;  %v215_v40 = vsel %vm4379_vm6, %v204_v29, 0.0  ;;  %vm7605_vm8 = vcmp.lt.s32.totalorder %v3887_v5, 16  ;;  %vm7609_vm7 = vcmp.lt.s32.totalorder %v3849_v55, 16  ;;  %v7610_v63 = vmov 0  ;;  %v200_v28 = vpop.permute.xlu1 %199  ;;  %v198_v30 = vpop.permute.xlu0 %197 }
  0xb5   :  { %vm4403_vm1 = vmand %vm7599_vm5, %vm7601_vm13  ;;  %vm7613_vm13 = vcmask 1042432   ;;  %v409_v52 = vrot.slane %v239_v11, 5  ;;  %v411_v13 = vrot.slane %v241_v45, 5  ;;  %v412_v5 = vrot.slane %v242_v50, 5 }
  0xb6   :  { %v7603_v19 = vsel %vm4403_vm1, 4294967295, %v7602_v19  ;;  %vm4413_vm12 = vmand %vm63_vm10, %vm7605_vm8  ;;  %v491_v22 = vsel %vm7613_vm13, %v215_v40, %v410_v58  ;;  %vm7615_vm10 = vcmp.lt.s32.totalorder %v3782_v15, 17 }
  0xb7   :  { %7604 = vst [vmem:[#allocation31_spill] sm:$0xff] %v7603_v19  ;;  %v7607_v2 = vsel %vm4413_vm12, 4294967295, %v7606_v2  ;;  %vm4419_vm9 = vmand %vm64_vm11, %vm7609_vm7  ;;  %v496_v49 = vsel %vm7614_vm3, %v491_v22, %v4257_v3  ;;  %v205_v10 = vsel %vm7615_vm10, %v200_v28, %v194_v1 }
  0xb8   :  { %7608 = vst [vmem:[#allocation32_spill] sm:$0xff] %v7607_v2  ;;  %v7611_v63 = vsel %vm4419_vm9, 4294967295, %v7610_v63  ;;  %vm7616_vm8 = vmmov %vm7615_vm10  ;;  %647 = vmatprep.subr.mxu0 %v496_v49  ;;  %v214_v32 = vsel %vm4403_vm1, %v205_v10, 0.0 }
  0xb9   :  { %7612 = vst [vmem:[#allocation33_spill] sm:$0xff] %v7611_v63  ;;  %v202_v55 = vsel %vm7616_vm8, %v198_v30, %v200_v28  ;;  %vm7617_vm11 = vmmov %vm7616_vm8  ;;  %vm7621_vm8 = vcmask 1045504  }
  0xba   :  { %v203_v27 = vsel %vm7617_vm11, %v196_v20, %v198_v30  ;;  %v217_v3 = vsel %vm4419_vm9, %v202_v55, 0.0  ;;  %vm7618_vm3 = vmmov %vm7613_vm13  ;;  %vm580_vm13 = vcmask 220160  }
  0xbb   :  { %v216_v24 = vsel %vm4413_vm12, %v203_v27, 0.0  ;;  %v490_v33 = vsel %vm7618_vm3, %v214_v32, %v409_v52  ;;  %vm7619_vm7 = vmmov %vm7618_vm3 }
  0xbc   :  { %v493_v31 = vsel %vm7619_vm7, %v217_v3, %v412_v5  ;;  %vm7620_vm10 = vmmov %vm7618_vm3  ;;  %v495_v34 = vsel %vm7621_vm8, %v490_v33, %v4259_v35  ;;  %v527_v35 = vld [vmem:[%s7080_s1 + $0x18] sm:$0xff] }
  0xbd   :  { %v492_v46 = vsel %vm7620_vm10, %v216_v24, %v411_v13  ;;  %vm7622_vm11 = vmmov %vm7621_vm8  ;;  %648 = vmatpush1.msra.mxu0 %v495_v34  ;;  %v543_v20 = vpop.permute.xlu0 %542  ;;  %v548_v13 = vpop.permute.xlu1 %547 }
  0xbe   :  { %v498_v14 = vsel %vm7622_vm11, %v493_v31, %v4269_v18  ;;  %vm7623_vm4 = vmmov %vm7621_vm8  ;;  %3280 = vmatmul.mubr.msk.f32.vlgmr.msra.gmra.mxu0 %vm580_vm13, %v524_v54  ;;  %v528_v18 = vld [vmem:[%s7080_s1 + $0x20] sm:$0xff] }
  0xbf   :  { %v497_v47 = vsel %vm7623_vm4, %v492_v46, %v4261_v23  ;;  %760 = vmatprep.subr.mxu1 %v498_v14  ;;  %687 = vmatprep.mubr.f32.mxu0 %v7624_v57  ;;  %v526_v23 = vld [vmem:[%s7080_s1 + $0x10] sm:$0xff]  ;;  %vm7739_vm4 = vcmp.lt.s32.totalorder %v3782_v15, 16 }
  0xc0   :  { %761 = vmatpush1.msra.mxu1 %v497_v47  ;;  %vm7741_vm3 = vmmov %vm7739_vm4 }
  0xc1   :  { %3290 = vmatmul.mubr.msk.f32.vlgmr.msra.gmra.mxu1 %vm580_vm13, %v524_v54  ;;  %v553_v24 = vpop.permute.xlu1 %552  ;;  %vm7742_vm7 = vmmov %vm7741_vm3 }
  0xc2   :  { %800 = vmatprep.mubr.f32.mxu1 %v7624_v57  ;;  %3281 = vmatmul.mubr.msk.f32.gmra.mxu0 %vm580_vm13, %v525_v37  ;;  %vm7744_vm10 = vmmov %vm7741_vm3 }
  0xc3   :  { %693 = vmatprep.mubr.f32.mxu0 %v7624_v57  ;;  %vm7745_vm8 = vmmov %vm7741_vm3 }
  0xc4   :  { %vm7746_vm11 = vmmov %vm7741_vm3 }
  0xc5   :  { %3291 = vmatmul.mubr.msk.f32.gmra.mxu1 %vm580_vm13, %v525_v37  ;;  %v558_v37 = vpop.permute.xlu0 %557 }
  0xc6   :  { %806 = vmatprep.mubr.f32.mxu1 %v7624_v57  ;;  %3282 = vmatmul.mubr.msk.f32.gmra.mxu0 %vm580_vm13, %v526_v23 }
  0xc7   :  { %699 = vmatprep.mubr.f32.mxu0 %v7624_v57 }
  0xc9   :  { %3292 = vmatmul.mubr.msk.f32.gmra.mxu1 %vm580_vm13, %v526_v23 }
  0xca   :  { %812 = vmatprep.mubr.f32.mxu1 %v7624_v57  ;;  %3283 = vmatmul.mubr.msk.f32.gmra.mxu0 %vm580_vm13, %v527_v35 }
  0xcb   :  { %705 = vmatprep.mubr.f32.mxu0 %v7624_v57 }
  0xcd   :  { %3293 = vmatmul.mubr.msk.f32.gmra.mxu1 %vm580_vm13, %v527_v35 }
  0xce   :  { %818 = vmatprep.mubr.f32.mxu1 %v7624_v57  ;;  %3284 = vmatmul.mubr.msk.f32.gmra.mxu0 %vm580_vm13, %v528_v18 }
  0xcf   :  { %711 = vmatprep.mubr.f32.mxu0 %v7624_v57 }
  0xd1   :  { %3294 = vmatmul.mubr.msk.f32.gmra.mxu1 %vm580_vm13, %v528_v18 }
  0xd2   :  { %824 = vmatprep.mubr.f32.mxu1 %v7624_v57  ;;  %3285 = vmatmul.mubr.msk.f32.gmra.mxu0 %vm580_vm13, %v529_v36 }
  0xd3   :  { %717 = vmatprep.mubr.f32.mxu0 %v7624_v57 }
  0xd5   :  { %3295 = vmatmul.mubr.msk.f32.gmra.mxu1 %vm580_vm13, %v529_v36  ;;  %v563_v36 = vpop.permute.xlu1 %562 }
  0xd6   :  { %830 = vmatprep.mubr.f32.mxu1 %v7624_v57  ;;  %3286 = vmatmul.mubr.msk.f32.gmra.mxu0 %vm580_vm13, %v530_v4 }
  0xd7   :  { %723 = vmatprep.mubr.f32.mxu0 %v7624_v57 }
  0xd9   :  { %3296 = vmatmul.mubr.msk.f32.gmra.mxu1 %vm580_vm13, %v530_v4 }
  0xda   :  { %836 = vmatprep.mubr.f32.mxu1 %v7624_v57  ;;  %3287 = vmatmul.mubr.msk.f32.gmra.mxu0 %vm580_vm13, %v531_v8 }
  0xdb   :  { %1170 = vmatprep.mubr.f32.mxu0 %v7624_v57 }
  0xdd   :  { %3297 = vmatmul.mubr.msk.f32.gmra.mxu1 %vm580_vm13, %v531_v8  ;;  %v4637_v8 = vpop.permute.xlu0 %567  ;;  %vm7743_vm13 = vmmov %vm7741_vm3 }
  0xde   :  { %1241 = vmatprep.mubr.f32.mxu1 %v7624_v57 }
 0x17e   :  { %v683_v1 = vpop.f32.mrf.mxu0 }
 0x17f   :  { %v4503_v58 = vadd.f32 %v683_v1, %v543_v20 }
 0x180   :  { %v685_v40 = vpop.f32.mrf.mxu0 }
 0x181   :  { %7625 = vst [vmem:[#allocation34_spill] sm:$0xff] %v4503_v58  ;;  %v796_v11 = vpop.f32.mrf.mxu1  ;;  %844 = vrot.lane.b32.xlu1 %v4503_v58, %s3642_s28  ;;  %v4515_v22 = vadd.f32 %v685_v40, %v543_v20 }
 0x182   :  { %v4509_v50 = vadd.f32 %v796_v11, %v543_v20  ;;  %v689_v52 = vpop.f32.mrf.mxu0  ;;  %v4645_v11 = vpop.permute.xlu1 %572 }
 0x183   :  { %v798_v45 = vpop.f32.mrf.mxu1  ;;  %7628 = vst [vmem:[#allocation37_spill] sm:$0xff] %v4515_v22  ;;  %v4529_v28 = vadd.f32 %v689_v52, %v548_v13 }
 0x184   :  { %v4507_v29 = vadd.f32 %v798_v45, %v543_v20  ;;  %7627 = vst [vmem:[#allocation36_spill] sm:$0xff] %v4509_v50  ;;  %v691_v5 = vpop.f32.mrf.mxu0  ;;  %v4651_v45 = vpop.permute.xlu0 %577 }
 0x185   :  { %876 = vrot.lane.b32.xlu1 %v4509_v50, %s3642_s28  ;;  %v802_v30 = vpop.f32.mrf.mxu1  ;;  %v4561_v10 = vadd.f32 %v691_v5, %v548_v13 }
 0x186   :  { %7626 = vst [vmem:[#allocation35_spill] sm:$0xff] %v4507_v29  ;;  %1022 = vrot.lane.b32.xlu0 %v4507_v29, %s3640_s27  ;;  %v4539_v49 = vadd.f32 %v802_v30, %v548_v13  ;;  %v695_v32 = vpop.f32.mrf.mxu0 }
 0x187   :  { %7630 = vst [vmem:[#allocation39_spill] sm:$0xff] %v4561_v10  ;;  %v804_v55 = vpop.f32.mrf.mxu1  ;;  %v4581_v3 = vadd.f32 %v695_v32, %v553_v24 }
 0x188   :  { %7629 = vst [vmem:[#allocation38_spill] sm:$0xff] %v4539_v49  ;;  %v4567_v27 = vadd.f32 %v804_v55, %v548_v13  ;;  %v697_v54 = vpop.f32.mrf.mxu0 }
 0x189   :  { %974 = vrot.lane.b32.xlu1 %v4503_v58, %s3640_s27  ;;  %7632 = vst [vmem:[#allocation41_spill] sm:$0xff] %v4581_v3  ;;  %v808_v33 = vpop.f32.mrf.mxu1  ;;  %v4601_v46 = vadd.f32 %v697_v54, %v553_v24 }
 0x18a   :  { %1411 = vrot.lane.b32.xlu0 %v4515_v22, %s3636_s23  ;;  %7631 = vst [vmem:[#allocation40_spill] sm:$0xff] %v4567_v27  ;;  %v4587_v31 = vadd.f32 %v808_v33, %v553_v24  ;;  %v701_v47 = vpop.f32.mrf.mxu0 }
 0x18b   :  { %7634 = vst [vmem:[#allocation43_spill] sm:$0xff] %v4601_v46  ;;  %v810_v34 = vpop.f32.mrf.mxu1  ;;  %v4613_v23 = vadd.f32 %v701_v47, %v558_v37 }
 0x18c   :  { %7633 = vst [vmem:[#allocation42_spill] sm:$0xff] %v4587_v31  ;;  %v4607_v14 = vadd.f32 %v810_v34, %v553_v24  ;;  %v703_v4 = vpop.f32.mrf.mxu0 }
 0x18d   :  { %1006 = vrot.lane.b32.xlu1 %v4509_v50, %s3640_s27  ;;  %7635 = vst [vmem:[#allocation44_spill] sm:$0xff] %v4613_v23  ;;  %v814_v35 = vpop.f32.mrf.mxu1  ;;  %v4643_v20 = vadd.f32 %v703_v4, %v558_v37 }
 0x18e   :  { %1443 = vrot.lane.b32.xlu0 %v4507_v29, %s3636_s23  ;;  %v4619_v18 = vadd.f32 %v814_v35, %v558_v37  ;;  %v707_v32 = vpop.f32.mrf.mxu0 }
 0x18f   :  { %7637 = vst [vmem:[#allocation46_spill] sm:$0xff] %v4643_v20  ;;  %v816_v1 = vpop.f32.mrf.mxu1  ;;  %v4679_v33 = vadd.f32 %v707_v32, %v563_v36 }
 0x190   :  { %7636 = vst [vmem:[#allocation45_spill] sm:$0xff] %v4619_v18  ;;  %v4653_v40 = vadd.f32 %v816_v1, %v558_v37  ;;  %v709_v21 = vpop.f32.mrf.mxu0 }
 0x191   :  { %1395 = vrot.lane.b32.xlu1 %v4503_v58, %s3636_s23  ;;  %7645 = vst [vmem:[#allocation54_spill] sm:$0xff] %v4679_v33  ;;  %v820_v34 = vpop.f32.mrf.mxu1  ;;  %v4713_v51 = vadd.f32 %v709_v21, %v563_v36 }
 0x192   :  { %1690 = vrot.lane.b32.xlu0 %v4515_v22, %s3637_s24  ;;  %7638 = vst [vmem:[#allocation47_spill] sm:$0xff] %v4653_v40  ;;  %v4687_v47 = vadd.f32 %v820_v34, %v563_v36  ;;  %v713_v39 = vpop.f32.mrf.mxu0 }
 0x193   :  { %7653 = vst [vmem:[#allocation62_spill] sm:$0xff] %v4713_v51  ;;  %v822_v16 = vpop.f32.mrf.mxu1  ;;  %v4734_v21 = vadd.f32 %v713_v39, %v4637_v8 }
 0x194   :  { %v4723_v9 = vadd.f32 %v822_v16, %v563_v36  ;;  %v715_v12 = vpop.f32.mrf.mxu0 }
 0x195   :  { %1427 = vrot.lane.b32.xlu1 %v4509_v50, %s3636_s23  ;;  %v826_v56 = vpop.f32.mrf.mxu1  ;;  %v4788_v0 = vadd.f32 %v715_v12, %v4637_v8 }
 0x196   :  { %1722 = vrot.lane.b32.xlu0 %v4507_v29, %s3637_s24  ;;  %7656 = vst [vmem:[#allocation65_spill] sm:$0xff] %v4723_v9  ;;  %v4745_v16 = vadd.f32 %v826_v56, %v4637_v8  ;;  %v719_v48 = vpop.f32.mrf.mxu0 }
 0x197   :  { %7668 = vst [vmem:[#allocation77_spill] sm:$0xff] %v4788_v0  ;;  %v4847_v26 = vadd.f32 %v719_v48, %v4645_v11 }
 0x198   :  { %7659 = vst [vmem:[#allocation68_spill] sm:$0xff] %v4745_v16 }
 0x199   :  { %1674 = vrot.lane.b32.xlu1 %v4503_v58, %s3637_s24 }
 0x19a   :  { %846 = vrot.lane.b32.xlu0 %v4529_v28, %s3642_s28 }
 0x19d   :  { %1706 = vrot.lane.b32.xlu1 %v4509_v50, %s3637_s24 }
 0x19e   :  { %878 = vrot.lane.b32.xlu0 %v4539_v49, %s3642_s28 }
 0x1a1   :  { %860 = vrot.lane.b32.xlu1 %v4515_v22, %s3642_s28 }
 0x1a2   :  { %976 = vrot.lane.b32.xlu0 %v4529_v28, %s3640_s27 }
 0x1a5   :  { %892 = vrot.lane.b32.xlu1 %v4507_v29, %s3642_s28 }
 0x1a6   :  { %1008 = vrot.lane.b32.xlu0 %v4539_v49, %s3640_s27 }
 0x1a9   :  { %990 = vrot.lane.b32.xlu1 %v4515_v22, %s3640_s27 }
 0x1aa   :  { %1397 = vrot.lane.b32.xlu0 %v4529_v28, %s3636_s23 }
 0x1ad   :  { %1676 = vrot.lane.b32.xlu1 %v4529_v28, %s3637_s24 }
 0x1ae   :  { %1429 = vrot.lane.b32.xlu0 %v4539_v49, %s3636_s23 }
 0x1b1   :  { %1708 = vrot.lane.b32.xlu1 %v4539_v49, %s3637_s24 }
 0x1b2   :  { %862 = vrot.lane.b32.xlu0 %v4561_v10, %s3642_s28 }
 0x1b5   :  { %1024 = vrot.lane.b32.xlu1 %v4567_v27, %s3640_s27 }
 0x1b6   :  { %894 = vrot.lane.b32.xlu0 %v4567_v27, %s3642_s28 }
 0x1b9   :  { %1413 = vrot.lane.b32.xlu1 %v4561_v10, %s3636_s23 }
 0x1ba   :  { %992 = vrot.lane.b32.xlu0 %v4561_v10, %s3640_s27 }
 0x1bd   :  { %1445 = vrot.lane.b32.xlu1 %v4567_v27, %s3636_s23 }
 0x1be   :  { %1692 = vrot.lane.b32.xlu0 %v4561_v10, %s3637_s24 }
 0x1c1   :  { %848 = vrot.lane.b32.xlu1 %v4581_v3, %s3642_s28 }
 0x1c2   :  { %1724 = vrot.lane.b32.xlu0 %v4567_v27, %s3637_s24 }
 0x1c5   :  { %880 = vrot.lane.b32.xlu1 %v4587_v31, %s3642_s28 }
 0x1c6   :  { %1010 = vrot.lane.b32.xlu0 %v4587_v31, %s3640_s27 }
 0x1c9   :  { %978 = vrot.lane.b32.xlu1 %v4581_v3, %s3640_s27 }
 0x1ca   :  { %1399 = vrot.lane.b32.xlu0 %v4581_v3, %s3636_s23 }
 0x1cd   :  { %1678 = vrot.lane.b32.xlu1 %v4581_v3, %s3637_s24 }
 0x1ce   :  { %1431 = vrot.lane.b32.xlu0 %v4587_v31, %s3636_s23 }
 0x1d1   :  { %1710 = vrot.lane.b32.xlu1 %v4587_v31, %s3637_s24 }
 0x1d2   :  { %1694 = vrot.lane.b32.xlu0 %v4601_v46, %s3637_s24 }
 0x1d5   :  { %864 = vrot.lane.b32.xlu1 %v4601_v46, %s3642_s28 }
 0x1d6   :  { %1726 = vrot.lane.b32.xlu0 %v4607_v14, %s3637_s24 }
 0x1d9   :  { %896 = vrot.lane.b32.xlu1 %v4607_v14, %s3642_s28 }
 0x1da   :  { %850 = vrot.lane.b32.xlu0 %v4613_v23, %s3642_s28 }
 0x1dd   :  { %994 = vrot.lane.b32.xlu1 %v4601_v46, %s3640_s27 }
 0x1de   :  { %882 = vrot.lane.b32.xlu0 %v4619_v18, %s3642_s28 }
 0x1e1   :  { %1026 = vrot.lane.b32.xlu1 %v4607_v14, %s3640_s27 }
 0x1e2   :  { %980 = vrot.lane.b32.xlu0 %v4613_v23, %s3640_s27 }
 0x1e5   :  { %1415 = vrot.lane.b32.xlu1 %v4601_v46, %s3636_s23 }
 0x1e6   :  { %1012 = vrot.lane.b32.xlu0 %v4619_v18, %s3640_s27 }
 0x1e9   :  { %1447 = vrot.lane.b32.xlu1 %v4607_v14, %s3636_s23 }
 0x1ea   :  { %1401 = vrot.lane.b32.xlu0 %v4613_v23, %s3636_s23 }
 0x1ed   :  { %1680 = vrot.lane.b32.xlu1 %v4613_v23, %s3637_s24 }
 0x1ee   :  { %1433 = vrot.lane.b32.xlu0 %v4619_v18, %s3636_s23 }
 0x1f1   :  { %1712 = vrot.lane.b32.xlu1 %v4619_v18, %s3637_s24 }
 0x1f2   :  { %866 = vrot.lane.b32.xlu0 %v4643_v20, %s3642_s28 }
 0x1f3   :  { %v4655_v52 = vpop.permute.xlu1 %844 }
 0x1f4   :  { %7639 = vst [vmem:[#allocation48_spill] sm:$0xff] %v4655_v52 }
 0x1f5   :  { %1028 = vrot.lane.b32.xlu1 %v4653_v40, %s3640_s27 }
 0x1f6   :  { %898 = vrot.lane.b32.xlu0 %v4653_v40, %s3642_s28 }
 0x1f7   :  { %v4663_v30 = vpop.permute.xlu1 %876 }
 0x1f8   :  { %v4661_v13 = vpop.permute.xlu0 %1022  ;;  %7641 = vst [vmem:[#allocation50_spill] sm:$0xff] %v4663_v30 }
 0x1f9   :  { %7640 = vst [vmem:[#allocation49_spill] sm:$0xff] %v4661_v13  ;;  %1417 = vrot.lane.b32.xlu1 %v4643_v20, %s3636_s23 }
 0x1fa   :  { %996 = vrot.lane.b32.xlu0 %v4643_v20, %s3640_s27 }
 0x1fb   :  { %v4671_v55 = vpop.permute.xlu1 %974 }
 0x1fc   :  { %v4669_v5 = vpop.permute.xlu0 %1411  ;;  %7643 = vst [vmem:[#allocation52_spill] sm:$0xff] %v4671_v55 }
 0x1fd   :  { %7642 = vst [vmem:[#allocation51_spill] sm:$0xff] %v4669_v5  ;;  %1449 = vrot.lane.b32.xlu1 %v4653_v40, %s3636_s23 }
 0x1fe   :  { %1696 = vrot.lane.b32.xlu0 %v4643_v20, %s3637_s24 }
 0x1ff   :  { %v4681_v54 = vpop.permute.xlu1 %1006 }
 0x200   :  { %v4677_v24 = vpop.permute.xlu0 %1443  ;;  %7646 = vst [vmem:[#allocation55_spill] sm:$0xff] %v4681_v54 }
 0x201   :  { %7644 = vst [vmem:[#allocation53_spill] sm:$0xff] %v4677_v24  ;;  %852 = vrot.lane.b32.xlu1 %v4679_v33, %s3642_s28  ;;  %v828_v24 = vpop.f32.mrf.mxu1 }
 0x202   :  { %1728 = vrot.lane.b32.xlu0 %v4653_v40, %s3637_s24  ;;  %v4799_v5 = vadd.f32 %v828_v24, %v4637_v8 }
 0x203   :  { %v4691_v35 = vpop.permute.xlu1 %1395 }
 0x204   :  { %v4689_v37 = vpop.permute.xlu0 %1690  ;;  %7648 = vst [vmem:[#allocation57_spill] sm:$0xff] %v4691_v35  ;;  %7671 = vst [vmem:[#allocation80_spill] sm:$0xff] %v4799_v5 }
 0x205   :  { %7647 = vst [vmem:[#allocation56_spill] sm:$0xff] %v4689_v37  ;;  %884 = vrot.lane.b32.xlu1 %v4687_v47, %s3642_s28 }
 0x206   :  { %1014 = vrot.lane.b32.xlu0 %v4687_v47, %s3640_s27 }
 0x207   :  { %v4699_v1 = vpop.permute.xlu1 %1427 }
 0x208   :  { %v4697_v4 = vpop.permute.xlu0 %1722  ;;  %7650 = vst [vmem:[#allocation59_spill] sm:$0xff] %v4699_v1 }
 0x209   :  { %7649 = vst [vmem:[#allocation58_spill] sm:$0xff] %v4697_v4  ;;  %982 = vrot.lane.b32.xlu1 %v4679_v33, %s3640_s27 }
 0x20a   :  { %1403 = vrot.lane.b32.xlu0 %v4679_v33, %s3636_s23 }
 0x20b   :  { %v4707_v34 = vpop.permute.xlu1 %1674 }
 0x20c   :  { %v4705_v32 = vpop.permute.xlu0 %846  ;;  %7652 = vst [vmem:[#allocation61_spill] sm:$0xff] %v4707_v34 }
 0x20d   :  { %7651 = vst [vmem:[#allocation60_spill] sm:$0xff] %v4705_v32  ;;  %1682 = vrot.lane.b32.xlu1 %v4679_v33, %s3637_s24 }
 0x20e   :  { %1435 = vrot.lane.b32.xlu0 %v4687_v47, %s3636_s23 }
 0x20f   :  { %v4717_v42 = vpop.permute.xlu1 %1706 }
 0x210   :  { %v4715_v43 = vpop.permute.xlu0 %878  ;;  %7655 = vst [vmem:[#allocation64_spill] sm:$0xff] %v4717_v42 }
 0x211   :  { %7654 = vst [vmem:[#allocation63_spill] sm:$0xff] %v4715_v43  ;;  %1714 = vrot.lane.b32.xlu1 %v4687_v47, %s3637_s24 }
 0x212   :  { %1698 = vrot.lane.b32.xlu0 %v4713_v51, %s3637_s24 }
 0x213   :  { %v4727_v41 = vpop.permute.xlu1 %860 }
 0x214   :  { %v4725_v17 = vpop.permute.xlu0 %976  ;;  %7657 = vst [vmem:[#allocation66_spill] sm:$0xff] %v4727_v41 }
 0x215   :  { %868 = vrot.lane.b32.xlu1 %v4713_v51, %s3642_s28 }
 0x216   :  { %1730 = vrot.lane.b32.xlu0 %v4723_v9, %s3637_s24 }
 0x217   :  { %v4738_v42 = vpop.permute.xlu1 %892 }
 0x218   :  { %v4736_v62 = vpop.permute.xlu0 %1008  ;;  %7658 = vst [vmem:[#allocation67_spill] sm:$0xff] %v4738_v42 }
 0x219   :  { %900 = vrot.lane.b32.xlu1 %v4723_v9, %s3642_s28 }
 0x21a   :  { %854 = vrot.lane.b32.xlu0 %v4734_v21, %s3642_s28 }
 0x21b   :  { %v4749_v4 = vpop.permute.xlu1 %990 }
 0x21c   :  { %v4747_v36 = vpop.permute.xlu0 %1397  ;;  %7661 = vst [vmem:[#allocation70_spill] sm:$0xff] %v4749_v4 }
 0x21d   :  { %7660 = vst [vmem:[#allocation69_spill] sm:$0xff] %v4747_v36  ;;  %998 = vrot.lane.b32.xlu1 %v4713_v51, %s3640_s27 }
 0x21e   :  { %886 = vrot.lane.b32.xlu0 %v4745_v16, %s3642_s28 }
 0x21f   :  { %v4757_v34 = vpop.permute.xlu1 %1676 }
 0x220   :  { %v4755_v39 = vpop.permute.xlu0 %1429  ;;  %7663 = vst [vmem:[#allocation72_spill] sm:$0xff] %v4757_v34 }
 0x221   :  { %7662 = vst [vmem:[#allocation71_spill] sm:$0xff] %v4755_v39  ;;  %1030 = vrot.lane.b32.xlu1 %v4723_v9, %s3640_s27 }
 0x222   :  { %984 = vrot.lane.b32.xlu0 %v4734_v21, %s3640_s27 }
 0x223   :  { %v4765_v37 = vpop.permute.xlu1 %1708 }
 0x224   :  { %v4763_v56 = vpop.permute.xlu0 %862  ;;  %7665 = vst [vmem:[#allocation74_spill] sm:$0xff] %v4765_v37 }
 0x225   :  { %7664 = vst [vmem:[#allocation73_spill] sm:$0xff] %v4763_v56  ;;  %1419 = vrot.lane.b32.xlu1 %v4713_v51, %s3636_s23 }
 0x226   :  { %1016 = vrot.lane.b32.xlu0 %v4745_v16, %s3640_s27 }
 0x227   :  { %v4773_v59 = vpop.permute.xlu1 %1024 }
 0x228   :  { %v4771_v44 = vpop.permute.xlu0 %894 }
 0x229   :  { %7666 = vst [vmem:[#allocation75_spill] sm:$0xff] %v4771_v44  ;;  %1451 = vrot.lane.b32.xlu1 %v4723_v9, %s3636_s23 }
 0x22a   :  { %1405 = vrot.lane.b32.xlu0 %v4734_v21, %s3636_s23 }
 0x22b   :  { %v4781_v37 = vpop.permute.xlu1 %1413 }
 0x22c   :  { %v4779_v34 = vpop.permute.xlu0 %992  ;;  %7667 = vst [vmem:[#allocation76_spill] sm:$0xff] %v4781_v37 }
 0x22d   :  { %1684 = vrot.lane.b32.xlu1 %v4734_v21, %s3637_s24 }
 0x22e   :  { %1437 = vrot.lane.b32.xlu0 %v4745_v16, %s3636_s23 }
 0x22f   :  { %v4792_v35 = vpop.permute.xlu1 %1445 }
 0x230   :  { %v4790_v1 = vpop.permute.xlu0 %1692  ;;  %7670 = vst [vmem:[#allocation79_spill] sm:$0xff] %v4792_v35 }
 0x231   :  { %7669 = vst [vmem:[#allocation78_spill] sm:$0xff] %v4790_v1  ;;  %1716 = vrot.lane.b32.xlu1 %v4745_v16, %s3637_s24 }
 0x232   :  { %870 = vrot.lane.b32.xlu0 %v4788_v0, %s3642_s28 }
 0x233   :  { %v4803_v36 = vpop.permute.xlu1 %848 }
 0x234   :  { %v4801_v39 = vpop.permute.xlu0 %1724  ;;  %7673 = vst [vmem:[#allocation82_spill] sm:$0xff] %v4803_v36 }
 0x235   :  { %7672 = vst [vmem:[#allocation81_spill] sm:$0xff] %v4801_v39  ;;  %2146 = vrot.lane.b32.xlu1 %v4734_v21, %s3634_s22 }
 0x236   :  { %902 = vrot.lane.b32.xlu0 %v4799_v5, %s3642_s28 }
 0x237   :  { %v4811_v1 = vpop.permute.xlu1 %880 }
 0x238   :  { %v4809_v12 = vpop.permute.xlu0 %1010  ;;  %7674 = vst [vmem:[#allocation83_spill] sm:$0xff] %v4811_v1 }
 0x239   :  { %2178 = vrot.lane.b32.xlu1 %v4745_v16, %s3634_s22 }
 0x23a   :  { %1000 = vrot.lane.b32.xlu0 %v4788_v0, %s3640_s27 }
 0x23b   :  { %v4819_v24 = vpop.permute.xlu1 %978 }
 0x23c   :  { %v4817_v8 = vpop.permute.xlu0 %1399 }
 0x23d   :  { %7675 = vst [vmem:[#allocation84_spill] sm:$0xff] %v4817_v8  ;;  %1032 = vrot.lane.b32.xlu1 %v4799_v5, %s3640_s27  ;;  %v832_v8 = vpop.f32.mrf.mxu1 }
 0x23e   :  { %1700 = vrot.lane.b32.xlu0 %v4788_v0, %s3637_s24 }
 0x23f   :  { %v4827_v35 = vpop.permute.xlu1 %1678  ;;  %v834_v42 = vpop.f32.mrf.mxu1 }
 0x240   :  { %v4825_v39 = vpop.permute.xlu0 %1431  ;;  %7677 = vst [vmem:[#allocation86_spill] sm:$0xff] %v4827_v35  ;;  %v4842_v35 = vadd.f32 %v832_v8, %v4645_v11  ;;  %v721_v8 = vpop.f32.mrf.mxu0  ;;  %v4883_v41 = vadd.f32 %v834_v42, %v4645_v11 }
 0x241   :  { %7676 = vst [vmem:[#allocation85_spill] sm:$0xff] %v4825_v39  ;;  %1421 = vrot.lane.b32.xlu1 %v4788_v0, %s3636_s23  ;;  %v4872_v57 = vadd.f32 %v721_v8, %v4645_v11  ;;  %v838_v56 = vpop.f32.mrf.mxu1 }
 0x242   :  { %1732 = vrot.lane.b32.xlu0 %v4799_v5, %s3637_s24  ;;  %v725_v11 = vpop.f32.mrf.mxu0 }
 0x243   :  { %v4835_v38 = vpop.permute.xlu1 %1710 }
 0x244   :  { %v4833_v37 = vpop.permute.xlu0 %1694  ;;  %7679 = vst [vmem:[#allocation88_spill] sm:$0xff] %v4835_v38 }
 0x245   :  { %7678 = vst [vmem:[#allocation87_spill] sm:$0xff] %v4833_v37  ;;  %1453 = vrot.lane.b32.xlu1 %v4799_v5, %s3636_s23 }
 0x246   :  { %2162 = vrot.lane.b32.xlu0 %v4788_v0, %s3634_s22 }
 0x247   :  { %v4849_v25 = vpop.permute.xlu1 %864 }
 0x248   :  { %v4844_v39 = vpop.permute.xlu0 %1726  ;;  %7681 = vst [vmem:[#allocation90_spill] sm:$0xff] %v4849_v25 }
 0x249   :  { %7680 = vst [vmem:[#allocation89_spill] sm:$0xff] %v4844_v39  ;;  %856 = vrot.lane.b32.xlu1 %v4847_v26, %s3642_s28 }
 0x24a   :  { %1018 = vrot.lane.b32.xlu0 %v4842_v35, %s3640_s27 }
 0x24b   :  { %v4857_v37 = vpop.permute.xlu1 %896 }
 0x24c   :  { %v4855_v38 = vpop.permute.xlu0 %850  ;;  %7683 = vst [vmem:[#allocation92_spill] sm:$0xff] %v4857_v37 }
 0x24d   :  { %7682 = vst [vmem:[#allocation91_spill] sm:$0xff] %v4855_v38  ;;  %888 = vrot.lane.b32.xlu1 %v4842_v35, %s3642_s28  ;;  %v840_v38 = vpop.f32.mrf.mxu1 }
 0x24e   :  { %1407 = vrot.lane.b32.xlu0 %v4847_v26, %s3636_s23 }
 0x24f   :  { %v4865_v39 = vpop.permute.xlu1 %994 }
 0x250   :  { %v4863_v48 = vpop.permute.xlu0 %882 }
 0x251   :  { %7684 = vst [vmem:[#allocation93_spill] sm:$0xff] %v4863_v48  ;;  %986 = vrot.lane.b32.xlu1 %v4847_v26, %s3640_s27 }
 0x252   :  { %1439 = vrot.lane.b32.xlu0 %v4842_v35, %s3636_s23 }
 0x253   :  { %v4876_v52 = vpop.permute.xlu1 %1026 }
 0x254   :  { %v4874_v30 = vpop.permute.xlu0 %980 }
 0x255   :  { %1686 = vrot.lane.b32.xlu1 %v4847_v26, %s3637_s24 }
 0x256   :  { %1702 = vrot.lane.b32.xlu0 %v4872_v57, %s3637_s24 }
 0x257   :  { %v4887_v44 = vpop.permute.xlu1 %1415 }
 0x258   :  { %v4885_v43 = vpop.permute.xlu0 %1012  ;;  %7685 = vst [vmem:[#allocation94_spill] sm:$0xff] %v4887_v44 }
 0x259   :  { %1718 = vrot.lane.b32.xlu1 %v4842_v35, %s3637_s24 }
 0x25a   :  { %1734 = vrot.lane.b32.xlu0 %v4883_v41, %s3637_s24 }
 0x25b   :  { %v4895_v32 = vpop.permute.xlu1 %1447 }
 0x25c   :  { %v4893_v8 = vpop.permute.xlu0 %1401  ;;  %7687 = vst [vmem:[#allocation96_spill] sm:$0xff] %v4895_v32 }
 0x25d   :  { %7686 = vst [vmem:[#allocation95_spill] sm:$0xff] %v4893_v8  ;;  %2148 = vrot.lane.b32.xlu1 %v4847_v26, %s3634_s22  ;;  %v4910_v8 = vadd.f32 %v725_v11, %v4651_v45 }
 0x25e   :  { %2164 = vrot.lane.b32.xlu0 %v4872_v57, %s3634_s22 }
 0x25f   :  { %v4903_v44 = vpop.permute.xlu1 %1680 }
 0x260   :  { %v4901_v42 = vpop.permute.xlu0 %1433  ;;  %7689 = vst [vmem:[#allocation98_spill] sm:$0xff] %v4903_v44  ;;  %v4921_v44 = vadd.f32 %v838_v56, %v4651_v45 }
 0x261   :  { %7688 = vst [vmem:[#allocation97_spill] sm:$0xff] %v4901_v42  ;;  %2180 = vrot.lane.b32.xlu1 %v4842_v35, %s3634_s22 }
 0x262   :  { %2196 = vrot.lane.b32.xlu0 %v4883_v41, %s3634_s22 }
 0x263   :  { %v4914_v1 = vpop.permute.xlu1 %1712 }
 0x264   :  { %v4912_v32 = vpop.permute.xlu0 %866  ;;  %7691 = vst [vmem:[#allocation100_spill] sm:$0xff] %v4914_v1 }
 0x265   :  { %7690 = vst [vmem:[#allocation99_spill] sm:$0xff] %v4912_v32  ;;  %872 = vrot.lane.b32.xlu1 %v4872_v57, %s3642_s28 }
 0x266   :  { %858 = vrot.lane.b32.xlu0 %v4910_v8, %s3642_s28 }
 0x267   :  { %v4925_v37 = vpop.permute.xlu1 %1028 }
 0x268   :  { %v4923_v42 = vpop.permute.xlu0 %898 }
 0x269   :  { %7692 = vst [vmem:[#allocation101_spill] sm:$0xff] %v4923_v42  ;;  %904 = vrot.lane.b32.xlu1 %v4883_v41, %s3642_s28 }
 0x26a   :  { %890 = vrot.lane.b32.xlu0 %v4921_v44, %s3642_s28 }
 0x26b   :  { %v4933_v1 = vpop.permute.xlu1 %1417 }
 0x26c   :  { %v4931_v11 = vpop.permute.xlu0 %996  ;;  %7693 = vst [vmem:[#allocation102_spill] sm:$0xff] %v4933_v1 }
 0x26d   :  { %1002 = vrot.lane.b32.xlu1 %v4872_v57, %s3640_s27 }
 0x26e   :  { %988 = vrot.lane.b32.xlu0 %v4910_v8, %s3640_s27 }
 0x26f   :  { %v4941_v36 = vpop.permute.xlu1 %1449 }
 0x270   :  { %v4939_v56 = vpop.permute.xlu0 %1696  ;;  %7695 = vst [vmem:[#allocation104_spill] sm:$0xff] %v4941_v36 }
 0x271   :  { %7694 = vst [vmem:[#allocation103_spill] sm:$0xff] %v4939_v56  ;;  %1034 = vrot.lane.b32.xlu1 %v4883_v41, %s3640_s27  ;;  %v727_v56 = vpop.f32.mrf.mxu0 }
 0x272   :  { %1020 = vrot.lane.b32.xlu0 %v4921_v44, %s3640_s27 }
 0x273   :  { %v4949_v48 = vpop.permute.xlu1 %852 }
 0x274   :  { %v4947_v25 = vpop.permute.xlu0 %1728  ;;  %7697 = vst [vmem:[#allocation106_spill] sm:$0xff] %v4949_v48 }
 0x275   :  { %7696 = vst [vmem:[#allocation105_spill] sm:$0xff] %v4947_v25  ;;  %1423 = vrot.lane.b32.xlu1 %v4872_v57, %s3636_s23  ;;  %v4964_v25 = vadd.f32 %v727_v56, %v4651_v45 }
 0x276   :  { %1409 = vrot.lane.b32.xlu0 %v4910_v8, %s3636_s23 }
 0x277   :  { %v4957_v36 = vpop.permute.xlu1 %884 }
 0x278   :  { %v4955_v1 = vpop.permute.xlu0 %1014  ;;  %7698 = vst [vmem:[#allocation107_spill] sm:$0xff] %v4957_v36  ;;  %v4975_v36 = vadd.f32 %v840_v38, %v4651_v45 }
 0x279   :  { %1455 = vrot.lane.b32.xlu1 %v4883_v41, %s3636_s23 }
 0x27a   :  { %1441 = vrot.lane.b32.xlu0 %v4921_v44, %s3636_s23 }
 0x27b   :  { %v4968_v32 = vpop.permute.xlu1 %982 }
 0x27c   :  { %v4966_v42 = vpop.permute.xlu0 %1403 }
 0x27d   :  { %7699 = vst [vmem:[#allocation108_spill] sm:$0xff] %v4966_v42  ;;  %1688 = vrot.lane.b32.xlu1 %v4910_v8, %s3637_s24 }
 0x27e   :  { %874 = vrot.lane.b32.xlu0 %v4964_v25, %s3642_s28 }
 0x27f   :  { %v4979_v2 = vpop.permute.xlu1 %1682 }
 0x280   :  { %v4977_v48 = vpop.permute.xlu0 %1435  ;;  %7701 = vst [vmem:[#allocation110_spill] sm:$0xff] %v4979_v2 }
 0x281   :  { %7700 = vst [vmem:[#allocation109_spill] sm:$0xff] %v4977_v48  ;;  %1720 = vrot.lane.b32.xlu1 %v4921_v44, %s3637_s24 }
 0x282   :  { %906 = vrot.lane.b32.xlu0 %v4975_v36, %s3642_s28 }
 0x283   :  { %v4987_v42 = vpop.permute.xlu1 %1714 }
 0x284   :  { %v4985_v56 = vpop.permute.xlu0 %1698  ;;  %7703 = vst [vmem:[#allocation112_spill] sm:$0xff] %v4987_v42 }
 0x285   :  { %7702 = vst [vmem:[#allocation111_spill] sm:$0xff] %v4985_v56  ;;  %2150 = vrot.lane.b32.xlu1 %v4910_v8, %s3634_s22 }
 0x286   :  { %1004 = vrot.lane.b32.xlu0 %v4964_v25, %s3640_s27 }
 0x287   :  { %v4995_v45 = vpop.permute.xlu1 %868 }
 0x288   :  { %v4993_v38 = vpop.permute.xlu0 %1730  ;;  %7705 = vst [vmem:[#allocation114_spill] sm:$0xff] %v4995_v45 }
 0x289   :  { %7704 = vst [vmem:[#allocation113_spill] sm:$0xff] %v4993_v38  ;;  %2182 = vrot.lane.b32.xlu1 %v4921_v44, %s3634_s22 }
 0x28a   :  { %1704 = vrot.lane.b32.xlu0 %v4964_v25, %s3637_s24 }
 0x28b   :  { %v5003_v56 = vpop.permute.xlu1 %900 }
 0x28c   :  { %v5001_v2 = vpop.permute.xlu0 %854  ;;  %7707 = vst [vmem:[#allocation116_spill] sm:$0xff] %v5003_v56 }
 0x28d   :  { %7706 = vst [vmem:[#allocation115_spill] sm:$0xff] %v5001_v2  ;;  %1036 = vrot.lane.b32.xlu1 %v4975_v36, %s3640_s27 }
 0x28e   :  { %1736 = vrot.lane.b32.xlu0 %v4975_v36, %s3637_s24 }
 0x28f   :  { %v5011_v38 = vpop.permute.xlu1 %998 }
 0x290   :  { %v5009_v42 = vpop.permute.xlu0 %886 }
 0x291   :  { %7708 = vst [vmem:[#allocation117_spill] sm:$0xff] %v5009_v42  ;;  %1425 = vrot.lane.b32.xlu1 %v4964_v25, %s3636_s23 }
 0x292   :  { %2166 = vrot.lane.b32.xlu0 %v4964_v25, %s3634_s22 }
 0x293   :  { %v5019_v45 = vpop.permute.xlu1 %1030 }
 0x294   :  { %v5017_v48 = vpop.permute.xlu0 %984 }
 0x295   :  { %1457 = vrot.lane.b32.xlu1 %v4975_v36, %s3636_s23 }
 0x296   :  { %2198 = vrot.lane.b32.xlu0 %v4975_v36, %s3634_s22 }
 0x297   :  { %v5027_v42 = vpop.permute.xlu1 %1419 }
 0x298   :  { %v5025_v56 = vpop.permute.xlu0 %1016  ;;  %7709 = vst [vmem:[#allocation118_spill] sm:$0xff] %v5027_v42 }
 0x299   :  { %2144 = vrot.lane.b32.xlu1 %v4679_v33, %s3634_s22 }
 0x29a   :  { %2194 = vrot.lane.b32.xlu0 %v4799_v5, %s3634_s22 }
 0x29b   :  { %v5035_v63 = vpop.permute.xlu1 %1451 }
 0x29c   :  { %v5033_v2 = vpop.permute.xlu0 %1405  ;;  %7711 = vst [vmem:[#allocation120_spill] sm:$0xff] %v5035_v63 }
 0x29d   :  { %7710 = vst [vmem:[#allocation119_spill] sm:$0xff] %v5033_v2  ;;  %2176 = vrot.lane.b32.xlu1 %v4687_v47, %s3634_s22 }
 0x29e   :  { %2160 = vrot.lane.b32.xlu0 %v4713_v51, %s3634_s22 }
 0x29f   :  { %v5043_v53 = vpop.permute.xlu1 %1684 }
 0x2a0   :  { %v5041_v19 = vpop.permute.xlu0 %1437  ;;  %7713 = vst [vmem:[#allocation122_spill] sm:$0xff] %v5043_v53 }
 0x2a1   :  { %7712 = vst [vmem:[#allocation121_spill] sm:$0xff] %v5041_v19  ;;  %2142 = vrot.lane.b32.xlu1 %v4613_v23, %s3634_s22 }
 0x2a2   :  { %2192 = vrot.lane.b32.xlu0 %v4723_v9, %s3634_s22 }
 0x2a3   :  { %v5051_v2 = vpop.permute.xlu1 %1716 }
 0x2a4   :  { %v5049_v42 = vpop.permute.xlu0 %870  ;;  %7715 = vst [vmem:[#allocation124_spill] sm:$0xff] %v5051_v2 }
 0x2a5   :  { %7714 = vst [vmem:[#allocation123_spill] sm:$0xff] %v5049_v42  ;;  %2174 = vrot.lane.b32.xlu1 %v4619_v18, %s3634_s22 }
 0x2a6   :  { %2158 = vrot.lane.b32.xlu0 %v4643_v20, %s3634_s22 }
 0x2a7   :  { %v5059_v19 = vpop.permute.xlu1 %2146 }
 0x2a8   :  { %v5057_v63 = vpop.permute.xlu0 %902  ;;  %7717 = vst [vmem:[#allocation126_spill] sm:$0xff] %v5059_v19 }
 0x2a9   :  { %7716 = vst [vmem:[#allocation125_spill] sm:$0xff] %v5057_v63  ;;  %2140 = vrot.lane.b32.xlu1 %v4581_v3, %s3634_s22 }
 0x2aa   :  { %2190 = vrot.lane.b32.xlu0 %v4653_v40, %s3634_s22 }
 0x2ab   :  { %v5067_v42 = vpop.permute.xlu1 %2178 }
 0x2ac   :  { %v5065_v53 = vpop.permute.xlu0 %1000  ;;  %7718 = vst [vmem:[#allocation127_spill] sm:$0xff] %v5067_v42 }
 0x2ad   :  { %2172 = vrot.lane.b32.xlu1 %v4587_v31, %s3634_s22 }
 0x2ae   :  { %2156 = vrot.lane.b32.xlu0 %v4601_v46, %s3634_s22 }
 0x2af   :  { %v5075_v63 = vpop.permute.xlu1 %1032 }
 0x2b0   :  { %v5073_v2 = vpop.permute.xlu0 %1700 }
 0x2b1   :  { %7719 = vst [vmem:[#allocation128_spill] sm:$0xff] %v5073_v2  ;;  %2138 = vrot.lane.b32.xlu1 %v4529_v28, %s3634_s22 }
 0x2b2   :  { %2188 = vrot.lane.b32.xlu0 %v4607_v14, %s3634_s22 }
 0x2b3   :  { %v5083_v54 = vpop.permute.xlu1 %1421 }
 0x2b4   :  { %v5081_v19 = vpop.permute.xlu0 %1732  ;;  %7721 = vst [vmem:[#allocation130_spill] sm:$0xff] %v5083_v54 }
 0x2b5   :  { %7720 = vst [vmem:[#allocation129_spill] sm:$0xff] %v5081_v19  ;;  %2170 = vrot.lane.b32.xlu1 %v4539_v49, %s3634_s22 }
 0x2b6   :  { %2154 = vrot.lane.b32.xlu0 %v4561_v10, %s3634_s22 }
 0x2b7   :  { %v5091_v2 = vpop.permute.xlu1 %1453 }
 0x2b8   :  { %v5089_v42 = vpop.permute.xlu0 %2162  ;;  %7723 = vst [vmem:[#allocation132_spill] sm:$0xff] %v5091_v2 }
 0x2b9   :  { %7722 = vst [vmem:[#allocation131_spill] sm:$0xff] %v5089_v42  ;;  %2136 = vrot.lane.b32.xlu1 %v4503_v58, %s3634_s22 }
 0x2ba   :  { %2186 = vrot.lane.b32.xlu0 %v4567_v27, %s3634_s22 }
 0x2bb   :  { %v5099_v19 = vpop.permute.xlu1 %856 }
 0x2bc   :  { %v5097_v13 = vpop.permute.xlu0 %1018  ;;  %7724 = vst [vmem:[#allocation133_spill] sm:$0xff] %v5099_v19 }
 0x2bd   :  { %2168 = vrot.lane.b32.xlu1 %v4509_v50, %s3634_s22 }
 0x2be   :  { %2152 = vrot.lane.b32.xlu0 %v4515_v22, %s3634_s22 }
 0x2bf   :  { %v5107_v42 = vpop.permute.xlu1 %888 }
 0x2c0   :  { %v5105_v54 = vpop.permute.xlu0 %1407  ;;  %7726 = vst [vmem:[#allocation135_spill] sm:$0xff] %v5107_v42 }
 0x2c1   :  { %7725 = vst [vmem:[#allocation134_spill] sm:$0xff] %v5105_v54  ;;  %2429 = vrot.lane.b32.xlu1 %v4910_v8, %s3635_s0 }
 0x2c2   :  { %2184 = vrot.lane.b32.xlu0 %v4507_v29, %s3634_s22 }
 0x2c3   :  { %v5115_v55 = vpop.permute.xlu1 %986 }
 0x2c4   :  { %v5113_v2 = vpop.permute.xlu0 %1439 }
 0x2c5   :  { %7727 = vst [vmem:[#allocation136_spill] sm:$0xff] %v5113_v2  ;;  %2461 = vrot.lane.b32.xlu1 %v4921_v44, %s3635_s0 }
 0x2c6   :  { %2445 = vrot.lane.b32.xlu0 %v4964_v25, %s3635_s0 }
 0x2c7   :  { %v5123_v54 = vpop.permute.xlu1 %1686 }
 0x2c8   :  { %v5121_v19 = vpop.permute.xlu0 %1702  ;;  %7729 = vst [vmem:[#allocation138_spill] sm:$0xff] %v5123_v54 }
 0x2c9   :  { %7728 = vst [vmem:[#allocation137_spill] sm:$0xff] %v5121_v19  ;;  %2427 = vrot.lane.b32.xlu1 %v4847_v26, %s3635_s0 }
 0x2ca   :  { %2477 = vrot.lane.b32.xlu0 %v4975_v36, %s3635_s0 }
 0x2cb   :  { %v5131_v2 = vpop.permute.xlu1 %1718 }
 0x2cc   :  { %v5129_v42 = vpop.permute.xlu0 %1734  ;;  %7731 = vst [vmem:[#allocation140_spill] sm:$0xff] %v5131_v2 }
 0x2cd   :  { %7730 = vst [vmem:[#allocation139_spill] sm:$0xff] %v5129_v42  ;;  %2459 = vrot.lane.b32.xlu1 %v4842_v35, %s3635_s0 }
 0x2ce   :  { %2443 = vrot.lane.b32.xlu0 %v4872_v57, %s3635_s0 }
 0x2cf   :  { %v5139_v19 = vpop.permute.xlu1 %2148 }
 0x2d0   :  { %v5137_v4 = vpop.permute.xlu0 %2164  ;;  %7733 = vst [vmem:[#allocation142_spill] sm:$0xff] %v5139_v19 }
 0x2d1   :  { %7732 = vst [vmem:[#allocation141_spill] sm:$0xff] %v5137_v4  ;;  %2425 = vrot.lane.b32.xlu1 %v4734_v21, %s3635_s0 }
 0x2d2   :  { %2475 = vrot.lane.b32.xlu0 %v4883_v41, %s3635_s0 }
 0x2d3   :  { %v5147_v42 = vpop.permute.xlu1 %2180 }
 0x2d4   :  { %v5145_v54 = vpop.permute.xlu0 %2196  ;;  %7735 = vst [vmem:[#allocation144_spill] sm:$0xff] %v5147_v42 }
 0x2d5   :  { %7734 = vst [vmem:[#allocation143_spill] sm:$0xff] %v5145_v54  ;;  %2457 = vrot.lane.b32.xlu1 %v4745_v16, %s3635_s0 }
 0x2d6   :  { %2441 = vrot.lane.b32.xlu0 %v4788_v0, %s3635_s0 }
 0x2d7   :  { %v5155_v4 = vpop.permute.xlu1 %872 }
 0x2d8   :  { %v5153_v2 = vpop.permute.xlu0 %858 }
 0x2d9   :  { %2423 = vrot.lane.b32.xlu1 %v4679_v33, %s3635_s0 }
 0x2da   :  { %2473 = vrot.lane.b32.xlu0 %v4799_v5, %s3635_s0 }
 0x2db   :  { %v5163_v54 = vpop.permute.xlu1 %904 }
 0x2dc   :  { %v5161_v19 = vpop.permute.xlu0 %890 }
 0x2dd   :  { %2455 = vrot.lane.b32.xlu1 %v4687_v47, %s3635_s0 }
 0x2de   :  { %2439 = vrot.lane.b32.xlu0 %v4713_v51, %s3635_s0 }
 0x2df   :  { %v1003_v16 = vpop.permute.xlu1 %1002 }
 0x2e0   :  { %v989_v42 = vpop.permute.xlu0 %988 }
 0x2e1   :  { %2421 = vrot.lane.b32.xlu1 %v4613_v23, %s3635_s0 }
 0x2e2   :  { %2471 = vrot.lane.b32.xlu0 %v4723_v9, %s3635_s0 }
 0x2e3   :  { %v1035_v33 = vpop.permute.xlu1 %1034 }
 0x2e4   :  { %v1021_v5 = vpop.permute.xlu0 %1020 }
 0x2e5   :  { %2453 = vrot.lane.b32.xlu1 %v4619_v18, %s3635_s0 }
 0x2e6   :  { %2437 = vrot.lane.b32.xlu0 %v4643_v20, %s3635_s0 }
 0x2e7   :  { %v5179_v0 = vpop.permute.xlu1 %1423 }
 0x2e8   :  { %v5177_v51 = vpop.permute.xlu0 %1409 }
 0x2e9   :  { %2419 = vrot.lane.b32.xlu1 %v4581_v3, %s3635_s0 }
 0x2ea   :  { %2469 = vrot.lane.b32.xlu0 %v4653_v40, %s3635_s0 }
 0x2eb   :  { %v5187_v23 = vpop.permute.xlu1 %1455 }
 0x2ec   :  { %v5185_v9 = vpop.permute.xlu0 %1441 }
 0x2ed   :  { %2451 = vrot.lane.b32.xlu1 %v4587_v31, %s3635_s0 }
 0x2ee   :  { %2435 = vrot.lane.b32.xlu0 %v4601_v46, %s3635_s0 }
 0x2ef   :  { %v5195_v20 = vpop.permute.xlu1 %1688 }
 0x2f0   :  { %v5193_v18 = vpop.permute.xlu0 %874  ;;  %7736 = vst [vmem:[#allocation145_spill] sm:$0xff] %v5195_v20 }
 0x2f1   :  { %2417 = vrot.lane.b32.xlu1 %v4529_v28, %s3635_s0 }
 0x2f2   :  { %2467 = vrot.lane.b32.xlu0 %v4607_v14, %s3635_s0 }
 0x2f3   :  { %v5203_v40 = vpop.permute.xlu1 %1720 }
 0x2f4   :  { %v5201_v3 = vpop.permute.xlu0 %906  ;;  %7737 = vst [vmem:[#allocation146_spill] sm:$0xff] %v5203_v40 }
 0x2f5   :  { %2449 = vrot.lane.b32.xlu1 %v4539_v49, %s3635_s0 }
 0x2f6   :  { %2433 = vrot.lane.b32.xlu0 %v4561_v10, %s3635_s0 }
 0x2f7   :  { %v5209_v46 = vpop.permute.xlu1 %2150 }
 0x2f8   :  { %v1005_v31 = vpop.permute.xlu0 %1004  ;;  %7738 = vst [vmem:[#allocation147_spill] sm:$0xff] %v5209_v46 }
 0x2f9   :  { %v1061_v20 = vsel %vm7739_vm4, %v989_v42, %v1005_v31  ;;  %2415 = vrot.lane.b32.xlu1 %v4503_v58, %s3635_s0  ;;  %vm7747_vm4 = vmmov %vm7741_vm3 }
 0x2fa   :  { %2465 = vrot.lane.b32.xlu0 %v4567_v27, %s3635_s0  ;;  %3299 = vmatprep.subr.msk.mxu0 %vm7590_vm15, %v1061_v20 }
 0x2fb   :  { %v5221_v10 = vpop.permute.xlu1 %2182 }
 0x2fc   :  { %v5219_v40 = vpop.permute.xlu0 %1704  ;;  %7740 = vst [vmem:[#allocation148_spill] sm:$0xff] %v5221_v10  ;;  %v1060_v10 = vsel %vm7743_vm13, %v5115_v55, %v1003_v16  ;;  %vm7749_vm13 = vmmov %vm7741_vm3 }
 0x2fd   :  { %2447 = vrot.lane.b32.xlu1 %v4509_v50, %s3635_s0 }
 0x2fe   :  { %2431 = vrot.lane.b32.xlu0 %v4515_v22, %s3635_s0 }
 0x2ff   :  { %v1037_v49 = vpop.permute.xlu1 %1036 }
 0x300   :  { %v5227_v46 = vpop.permute.xlu0 %1736  ;;  %v1069_v27 = vsel %vm7741_vm3, %v1037_v49, %v989_v42  ;;  %v1045_v20 = vsel %vm7742_vm7, %v1021_v5, %v1037_v49  ;;  %v1068_v42 = vsel %vm7744_vm10, %v1035_v33, %v5115_v55  ;;  %vm7748_vm7 = vmmov %vm7741_vm3 }
 0x301   :  { %2708 = vrot.lane.b32.xlu1 %v4910_v8, %s3638_s25  ;;  %3300 = vmatpush1.msk.msra.mxu0 %vm7599_vm5, %v1069_v27  ;;  %v1044_v27 = vsel %vm7746_vm11, %v5097_v13, %v1035_v33  ;;  %vm7750_vm10 = vmmov %vm7741_vm3 }
 0x302   :  { %2463 = vrot.lane.b32.xlu0 %v4507_v29, %s3635_s0  ;;  %v1053_v29 = vsel %vm7745_vm8, %v1005_v31, %v1021_v5  ;;  %3316 = vmatprep.subr.msk.mxu1 %vm7598_vm14, %v1045_v20  ;;  %v1052_v31 = vsel %vm7747_vm4, %v1003_v16, %v5097_v13  ;;  %v1043_v13 = vsel %vm7749_vm13, %v5025_v56, %v5075_v63  ;;  %vm7751_vm8 = vmmov %vm7741_vm3 }
 0x303   :  { %3301 = vmatprep.subr.msk.mxu0 %vm7590_vm15, %v1060_v10  ;;  %3317 = vmatpush1.msk.msra.mxu1 %vm7596_vm0, %v1053_v29  ;;  %v5260_v55 = vpop.permute.xlu1 %1425  ;;  %v1059_v29 = vsel %vm7741_vm3, %v5017_v48, %v5065_v53  ;;  %v1067_v10 = vsel %vm7748_vm7, %v5075_v63, %v5017_v48  ;;  %v1058_v33 = vsel %vm7750_vm10, %v4968_v32, %v5011_v38  ;;  %vm7752_vm11 = vmmov %vm7741_vm3 }
 0x304   :  { %v5249_v49 = vpop.permute.xlu0 %2166  ;;  %3302 = vmatpush1.msk.msra.mxu0 %vm7599_vm5, %v1068_v42  ;;  %3318 = vmatprep.subr.msk.mxu1 %vm7598_vm14, %v1044_v27  ;;  %v1066_v16 = vsel %vm7751_vm8, %v5019_v45, %v4968_v32  ;;  %v1051_v48 = vsel %vm7752_vm11, %v5065_v53, %v5025_v56  ;;  %vm7753_vm4 = vmmov %vm7741_vm3  ;;  %v1050_v53 = vsel %vm7741_vm3, %v5011_v38, %v4955_v1 }
 0x305   :  { %3303 = vmatprep.subr.msk.mxu0 %vm7590_vm15, %v1059_v29  ;;  %3319 = vmatpush1.msk.msra.mxu1 %vm7596_vm0, %v1052_v31  ;;  %v1042_v32 = vsel %vm7753_vm4, %v4955_v1, %v5019_v45  ;;  %vm7754_vm7 = vmmov %vm7741_vm3  ;;  %v7765_v31 = vld [vmem:[#allocation52_spill] sm:$0xff] }
 0x306   :  { %2724 = vrot.lane.b32.xlu0 %v4964_v25, %s3638_s25  ;;  %2740 = vrot.lane.b32.xlu1 %v4921_v44, %s3638_s25  ;;  %v1057_v56 = vsel %vm7754_vm7, %v4874_v30, %v4931_v11  ;;  %vm7755_vm13 = vmmov %vm7741_vm3 }
 0x307   :  { %3304 = vmatpush1.msk.msra.mxu0 %vm7599_vm5, %v1067_v10  ;;  %3320 = vmatprep.subr.msk.mxu1 %vm7598_vm14, %v1043_v13  ;;  %v5307_v63 = vpop.permute.xlu1 %1457  ;;  %v1065_v45 = vsel %vm7755_vm13, %v4925_v37, %v4874_v30  ;;  %vm7756_vm10 = vmmov %vm7741_vm3  ;;  %v7767_v10 = vld [vmem:[#allocation49_spill] sm:$0xff] }
 0x308   :  { %v5289_v5 = vpop.permute.xlu0 %2198  ;;  %3305 = vmatprep.subr.msk.mxu0 %vm7590_vm15, %v1058_v33  ;;  %3321 = vmatpush1.msk.msra.mxu1 %vm7596_vm0, %v1051_v48  ;;  %v1041_v38 = vsel %vm7756_vm10, %v4885_v43, %v4925_v37  ;;  %vm7757_vm8 = vmmov %vm7741_vm3  ;;  %v1040_v37 = vsel %vm7741_vm3, %v4809_v12, %v4876_v52  ;;  %v1047_v33 = vsel %vm7741_vm3, %v4779_v34, %v4736_v62 }
 0x309   :  { %3306 = vmatpush1.msk.msra.mxu0 %vm7599_vm5, %v1066_v16  ;;  %3322 = vmatprep.subr.msk.mxu1 %vm7598_vm14, %v1042_v32  ;;  %v1056_v30 = vsel %vm7757_vm8, %v4819_v24, %v4865_v39  ;;  %vm7758_vm11 = vmmov %vm7741_vm3 }
 0x30a   :  { %2756 = vrot.lane.b32.xlu0 %v4975_v36, %s3638_s25  ;;  %3307 = vmatprep.subr.msk.mxu0 %vm7590_vm15, %v1057_v56  ;;  %v1064_v42 = vsel %vm7758_vm11, %v4876_v52, %v4819_v24  ;;  %vm7759_vm4 = vmmov %vm7741_vm3  ;;  %v7843_v56 = vld [vmem:[#allocation44_spill] sm:$0xff] }
 0x30b   :  { %3323 = vmatpush1.msk.msra.mxu1 %vm7596_vm0, %v1050_v53  ;;  %2706 = vrot.lane.b32.xlu1 %v4847_v26, %s3638_s25  ;;  %v5351_v20 = vpop.permute.xlu1 %2144  ;;  %v1049_v27 = vsel %vm7759_vm4, %v4931_v11, %v4885_v43  ;;  %vm7760_vm7 = vmmov %vm7741_vm3 }
 0x30c   :  { %v5337_v1 = vpop.permute.xlu0 %2194  ;;  %3308 = vmatpush1.msk.msra.mxu0 %vm7599_vm5, %v1065_v45  ;;  %3324 = vmatprep.subr.msk.mxu1 %vm7598_vm14, %v1041_v38  ;;  %v1048_v43 = vsel %vm7760_vm7, %v4865_v39, %v4809_v12  ;;  %vm7761_vm13 = vmmov %vm7741_vm3  ;;  %v7778_v45 = vld [vmem:[#allocation133_spill] sm:$0xff] }
 0x30d   :  { %3309 = vmatprep.subr.msk.mxu0 %vm7590_vm15, %v1056_v30  ;;  %3325 = vmatpush1.msk.msra.mxu1 %vm7596_vm0, %v1049_v27  ;;  %v1055_v24 = vsel %vm7761_vm13, %v4725_v17, %v4779_v34  ;;  %vm7762_vm10 = vmmov %vm7741_vm3  ;;  %vm1102_vm13 = vcmask 523264  }
 0x30e   :  { %3310 = vmatpush1.msk.msra.mxu0 %vm7599_vm5, %v1064_v42  ;;  %3326 = vmatprep.subr.msk.mxu1 %vm7598_vm14, %v1040_v37  ;;  %v1063_v52 = vsel %vm7762_vm10, %v4773_v59, %v4725_v17  ;;  %vm7763_vm8 = vmmov %vm7741_vm3  ;;  %v7764_v17 = vld [vmem:[#allocation70_spill] sm:$0xff]  ;;  %v7783_v37 = vld [vmem:[#allocation135_spill] sm:$0xff] }
 0x30f   :  { %2722 = vrot.lane.b32.xlu0 %v4872_v57, %s3638_s25  ;;  %3311 = vmatprep.subr.msk.mxu0 %vm7590_vm15, %v1055_v24  ;;  %v5395_v39 = vpop.permute.xlu1 %2176  ;;  %v1039_v12 = vsel %vm7763_vm8, %v4736_v62, %v4773_v59  ;;  %vm7766_vm11 = vmmov %vm7741_vm3  ;;  %v7769_v59 = vld [vmem:[#allocation55_spill] sm:$0xff]  ;;  %v3298_v62 = vld [vmem:[%s7081_s3 + $0x4] sm:$0x7] }
 0x310   :  { %v5385_v11 = vpop.permute.xlu0 %2160  ;;  %3327 = vmatpush1.msk.msra.mxu1 %vm7596_vm0, %v1048_v43  ;;  %2738 = vrot.lane.b32.xlu1 %v4842_v35, %s3638_s25  ;;  %v1054_v29 = vsel %vm7766_vm11, %v7765_v31, %v7764_v17  ;;  %vm7768_vm4 = vmmov %vm7741_vm3  ;;  %v7787_v24 = vld [vmem:[#allocation123_spill] sm:$0xff] }
 0x311   :  { %3312 = vmatpush1.msk.msra.mxu0 %vm7599_vm5, %v1063_v52  ;;  %v1062_v13 = vsel %vm7768_vm4, %v7767_v10, %v7765_v31  ;;  %3328 = vmatprep.subr.msk.mxu1 %vm7598_vm14, %v1039_v12  ;;  %vm7770_vm7 = vmmov %vm7741_vm3  ;;  %v7788_v52 = vld [vmem:[#allocation115_spill] sm:$0xff]  ;;  %v7792_v31 = vld [vmem:[#allocation68_spill] sm:$0xff] }
 0x312   :  { %3313 = vmatprep.subr.msk.mxu0 %vm7590_vm15, %v1054_v29  ;;  %3329 = vmatpush1.msk.msra.mxu1 %vm7596_vm0, %v1047_v33  ;;  %v1038_v16 = vsel %vm7770_vm7, %v7769_v59, %v7767_v10  ;;  %vm7771_vm15 = vmmov %vm7741_vm3  ;;  %v7793_v29 = vld [vmem:[#allocation117_spill] sm:$0xff]  ;;  %v7796_v33 = vld [vmem:[#allocation106_spill] sm:$0xff] }
 0x313   :  { %3314 = vmatpush1.msk.msra.mxu0 %vm7599_vm5, %v1062_v13  ;;  %v1046_v61 = vsel %vm7771_vm15, %v7764_v17, %v7769_v59  ;;  %3330 = vmatprep.subr.msk.mxu1 %vm7598_vm14, %v1038_v16  ;;  %vm7772_vm5 = vcmp.lt.s32.totalorder %v3782_v15, 17  ;;  %v5446_v48 = vpop.permute.xlu1 %2142  ;;  %v7790_v17 = vld [vmem:[#allocation125_spill] sm:$0xff]  ;;  %v7795_v13 = vld [vmem:[#allocation114_spill] sm:$0xff] }
 0x314   :  { %v5432_v34 = vpop.permute.xlu0 %2192  ;;  %2754 = vrot.lane.b32.xlu0 %v4883_v41, %s3638_s25  ;;  %v931_v7 = vsel %vm7772_vm5, %v5153_v2, %v5193_v18  ;;  %3331 = vmatpush1.msk.msra.mxu1 %vm7596_vm0, %v1046_v61  ;;  %vm7774_vm14 = vmmov %vm7772_vm5 }
 0x315   :  { %3333 = vmatprep.subr.msk.mxu0 %vm4379_vm6, %v931_v7  ;;  %v939_v6 = vsel %vm7774_vm14, %v5201_v3, %v5153_v2  ;;  %2704 = vrot.lane.b32.xlu1 %v4734_v21, %s3638_s25  ;;  %vm7775_vm10 = vmmov %vm7772_vm5 }
 0x316   :  { %3315 = vmatmul.mubr.msk.f32.vlgmr.msra.gmra.mxu0 %vm1102_vm13, %v3298_v62  ;;  %v915_v53 = vsel %vm7775_vm10, %v5161_v19, %v5201_v3  ;;  %vm7779_vm0 = vmmov %vm7772_vm5  ;;  %3332 = vmatmul.mubr.msk.f32.vlgmr.msra.gmra.mxu1 %vm1102_vm13, %v3298_v62  ;;  %v7798_v62 = vld [vmem:[#allocation116_spill] sm:$0xff] }
 0x317   :  { %3334 = vmatpush1.msk.msra.mxu0 %vm4403_vm1, %v939_v6  ;;  %3350 = vmatprep.subr.msk.mxu1 %vm4419_vm9, %v915_v53  ;;  %v930_v2 = vsel %vm7779_vm0, %v7778_v45, %v5155_v4  ;;  %vm7780_vm8 = vmmov %vm7779_vm0  ;;  %v5484_v42 = vpop.permute.xlu1 %2174  ;;  %v921_v7 = vsel %vm7779_vm0, %v7787_v24, %v7793_v29  ;;  %v7800_v6 = vld [vmem:[#allocation107_spill] sm:$0xff] }
 0x318   :  { %v5471_v38 = vpop.permute.xlu0 %2158  ;;  %v938_v30 = vsel %vm7780_vm8, %v5163_v54, %v7778_v45  ;;  %vm7781_vm11 = vmmov %vm7779_vm0  ;;  %3335 = vmatprep.subr.msk.mxu0 %vm4379_vm6, %v930_v2  ;;  %v7803_v2 = vld [vmem:[#allocation80_spill] sm:$0xff] }
 0x319   :  { %v923_v3 = vsel %vm7781_vm11, %v5193_v18, %v5161_v19  ;;  %3336 = vmatpush1.msk.msra.mxu0 %vm4403_vm1, %v938_v30  ;;  %vm7784_vm4 = vmmov %vm7779_vm0  ;;  %v7786_v18 = vld [vmem:[#allocation77_spill] sm:$0xff]  ;;  %2736 = vrot.lane.b32.xlu1 %v7792_v31, %s3638_s25  ;;  %v7804_v30 = vld [vmem:[#allocation99_spill] sm:$0xff] }
 0x31a   :  { %3351 = vmatpush1.msk.msra.mxu1 %vm4413_vm12, %v923_v3  ;;  %v914_v43 = vsel %vm7784_vm4, %v7783_v37, %v5163_v54  ;;  %vm7785_vm3 = vmmov %vm7779_vm0  ;;  %2720 = vrot.lane.b32.xlu0 %v7786_v18, %s3638_s25  ;;  %v7805_v3 = vld [vmem:[#allocation91_spill] sm:$0xff] }
 0x31b   :  { %v922_v19 = vsel %vm7785_vm3, %v5155_v4, %v7783_v37  ;;  %3352 = vmatprep.subr.msk.mxu1 %vm4419_vm9, %v914_v43  ;;  %vm7789_vm7 = vmmov %vm7779_vm0  ;;  %v5528_v16 = vpop.permute.xlu1 %2140 }
 0x31c   :  { %v929_v12 = vsel %vm7789_vm7, %v7788_v52, %v7787_v24  ;;  %vm7791_vm15 = vmmov %vm7779_vm0  ;;  %3353 = vmatpush1.msk.msra.mxu1 %vm4413_vm12, %v922_v19  ;;  %v5514_v4 = vpop.permute.xlu0 %2190  ;;  %v7807_v19 = vld [vmem:[#allocation101_spill] sm:$0xff] }
 0x31d   :  { %v937_v54 = vsel %vm7791_vm15, %v7790_v17, %v7788_v52  ;;  %3337 = vmatprep.subr.msk.mxu0 %vm4379_vm6, %v929_v12  ;;  %vm7794_vm5 = vmmov %vm7779_vm0  ;;  %v7809_v12 = vld [vmem:[#allocation54_spill] sm:$0xff] }
 0x31e   :  { %3338 = vmatpush1.msk.msra.mxu0 %vm4403_vm1, %v937_v54  ;;  %v913_v10 = vsel %vm7794_vm5, %v7793_v29, %v7790_v17  ;;  %vm7797_vm14 = vmmov %vm7779_vm0  ;;  %2752 = vrot.lane.b32.xlu0 %v7803_v2, %s3638_s25  ;;  %v7810_v17 = vld [vmem:[#allocation93_spill] sm:$0xff]  ;;  %v7812_v29 = vld [vmem:[#allocation90_spill] sm:$0xff] }
 0x31f   :  { %v928_v59 = vsel %vm7797_vm14, %v7796_v33, %v7795_v13  ;;  %vm7799_vm10 = vmmov %vm7779_vm0  ;;  %3354 = vmatprep.subr.msk.mxu1 %vm4419_vm9, %v913_v10  ;;  %v5572_v52 = vpop.permute.xlu1 %2172  ;;  %2702 = vrot.lane.b32.xlu1 %v7809_v12, %s3638_s25  ;;  %v7813_v10 = vld [vmem:[#allocation82_spill] sm:$0xff] }
 0x320   :  { %v936_v61 = vsel %vm7799_vm10, %v7798_v62, %v7796_v33  ;;  %3339 = vmatprep.subr.msk.mxu0 %vm4379_vm6, %v928_v59  ;;  %3355 = vmatpush1.msk.msra.mxu1 %vm4413_vm12, %v921_v7  ;;  %vm7801_vm8 = vmmov %vm7779_vm0  ;;  %v5562_v43 = vpop.permute.xlu0 %2156  ;;  %v7815_v33 = vld [vmem:[#allocation92_spill] sm:$0xff] }
 0x321   :  { %3340 = vmatpush1.msk.msra.mxu0 %vm4403_vm1, %v936_v61  ;;  %v912_v53 = vsel %vm7801_vm8, %v7800_v6, %v7798_v62  ;;  %vm7802_vm11 = vmmov %vm7779_vm0  ;;  %v7818_v61 = vld [vmem:[#allocation83_spill] sm:$0xff] }
 0x322   :  { %v920_v45 = vsel %vm7802_vm11, %v7795_v13, %v7800_v6  ;;  %3356 = vmatprep.subr.msk.mxu1 %vm4419_vm9, %v912_v53  ;;  %vm7806_vm4 = vmmov %vm7779_vm0  ;;  %v918_v53 = vsel %vm7779_vm0, %v7812_v29, %v7818_v61 }
 0x323   :  { %v927_v37 = vsel %vm7806_vm4, %v7805_v3, %v7804_v30  ;;  %vm7808_vm3 = vmmov %vm7779_vm0  ;;  %3357 = vmatpush1.msk.msra.mxu1 %vm4413_vm12, %v920_v45  ;;  %v7820_v45 = vld [vmem:[#allocation62_spill] sm:$0xff]  ;;  %2734 = vrot.lane.b32.xlu1 %v4687_v47, %s3638_s25 }
 0x324   :  { %v935_v24 = vsel %vm7808_vm3, %v7807_v19, %v7805_v3  ;;  %3341 = vmatprep.subr.msk.mxu0 %vm4379_vm6, %v927_v37  ;;  %vm7811_vm7 = vmmov %vm7779_vm0  ;;  %v5606_v6 = vpop.permute.xlu0 %2188  ;;  %2718 = vrot.lane.b32.xlu0 %v7820_v45, %s3638_s25  ;;  %v7822_v3 = vld [vmem:[#allocation60_spill] sm:$0xff] }
 0x325   :  { %3342 = vmatpush1.msk.msra.mxu0 %vm4403_vm1, %v935_v24  ;;  %v911_v54 = vsel %vm7811_vm7, %v7810_v17, %v7807_v19  ;;  %vm7814_vm15 = vmmov %vm7779_vm0  ;;  %v5620_v19 = vpop.permute.xlu1 %2138  ;;  %v7825_v24 = vld [vmem:[#allocation75_spill] sm:$0xff] }
 0x326   :  { %v926_v13 = vsel %vm7814_vm15, %v7813_v10, %v7812_v29  ;;  %vm7816_vm5 = vmmov %vm7779_vm0  ;;  %3358 = vmatprep.subr.msk.mxu1 %vm4419_vm9, %v911_v54  ;;  %7824 = vst [vmem:[#allocation70_spill] sm:$0xff] %v5620_v19  ;;  %v7827_v54 = vld [vmem:[#allocation63_spill] sm:$0xff] }
 0x327   :  { %v934_v59 = vsel %vm7816_vm5, %v7815_v33, %v7813_v10  ;;  %vm7817_vm14 = vmmov %vm7779_vm0  ;;  %3343 = vmatprep.subr.msk.mxu0 %vm4379_vm6, %v926_v13  ;;  %v7829_v10 = vld [vmem:[#allocation66_spill] sm:$0xff]  ;;  %v7830_v13 = vld [vmem:[#allocation48_spill] sm:$0xff]  ;;  %2700 = vrot.lane.b32.xlu1 %v7843_v56, %s3638_s25 }
 0x328   :  { %v919_v62 = vsel %vm7817_vm14, %v7804_v30, %v7810_v17  ;;  %3344 = vmatpush1.msk.msra.mxu0 %vm4403_vm1, %v934_v59  ;;  %vm7819_vm10 = vmmov %vm7779_vm0  ;;  %v7821_v30 = vld [vmem:[#allocation73_spill] sm:$0xff]  ;;  %v7832_v59 = vld [vmem:[#allocation67_spill] sm:$0xff] }
 0x329   :  { %3359 = vmatpush1.msk.msra.mxu1 %vm4413_vm12, %v919_v62  ;;  %v910_v7 = vsel %vm7819_vm10, %v7818_v61, %v7815_v33  ;;  %vm7823_vm8 = vmmov %vm7779_vm0 }
 0x32a   :  { %3360 = vmatprep.subr.msk.mxu1 %vm4419_vm9, %v910_v7  ;;  %v925_v37 = vsel %vm7823_vm8, %v7822_v3, %v7821_v30  ;;  %vm7826_vm11 = vmmov %vm7779_vm0  ;;  %v5654_v7 = vpop.permute.xlu0 %2154 }
 0x32b   :  { %v933_v17 = vsel %vm7826_vm11, %v7825_v24, %v7822_v3  ;;  %3345 = vmatprep.subr.msk.mxu0 %vm4379_vm6, %v925_v37  ;;  %3361 = vmatpush1.msk.msra.mxu1 %vm4413_vm12, %v918_v53  ;;  %vm7828_vm4 = vmmov %vm7779_vm0  ;;  %7835 = vst [vmem:[#allocation52_spill] sm:$0xff] %v5654_v7  ;;  %v7836_v53 = vld [vmem:[#allocation50_spill] sm:$0xff]  ;;  %v7839_v37 = vld [vmem:[#allocation65_spill] sm:$0xff] }
 0x32c   :  { %3346 = vmatpush1.msk.msra.mxu0 %vm4403_vm1, %v933_v17  ;;  %v909_v29 = vsel %vm7828_vm4, %v7827_v54, %v7825_v24  ;;  %vm7831_vm3 = vmmov %vm7779_vm0  ;;  %2750 = vrot.lane.b32.xlu0 %v7839_v37, %s3638_s25  ;;  %v7840_v24 = vmov 0.0  }
 0x32d   :  { %v924_v33 = vsel %vm7831_vm3, %v7830_v13, %v7829_v10  ;;  %vm7833_vm7 = vmmov %vm7779_vm0  ;;  %3362 = vmatprep.subr.msk.mxu1 %vm4419_vm9, %v909_v29  ;;  %1315 = vmatprep.mubr.f32.mxu0 %v7840_v24 }
 0x32e   :  { %v932_v62 = vsel %vm7833_vm7, %v7832_v59, %v7830_v13  ;;  %vm7834_vm15 = vmmov %vm7779_vm0  ;;  %3347 = vmatprep.subr.msk.mxu0 %vm4379_vm6, %v924_v33  ;;  %v5688_v29 = vpop.permute.xlu0 %2186  ;;  %1386 = vmatprep.mubr.f32.mxu1 %v7840_v24  ;;  %v7848_v33 = vld [vmem:[#allocation19_spill] sm:$0xff] }
 0x32f   :  { %v917_v61 = vsel %vm7834_vm15, %v7821_v30, %v7827_v54  ;;  %3348 = vmatpush1.msk.msra.mxu0 %vm4403_vm1, %v932_v62  ;;  %vm7837_vm5 = vmmov %vm7779_vm0  ;;  %v5664_v30 = vpop.permute.xlu1 %2170  ;;  %vm7841_vm1 = vcmp.lt.s32.totalorder %v3782_v15, 15  ;;  %7844 = vst [vmem:[#allocation49_spill] sm:$0xff] %v5688_v29  ;;  %vm7849_vm6 = vnez %v7848_v33  ;;  %v7852_v62 = vld [vmem:[#allocation134_spill] sm:$0xff]  ;;  %v3367_v54 = vld [vmem:[%s7081_s3 + $0x8] sm:$0x7] }
 0x330   :  { %3363 = vmatpush1.msk.msra.mxu1 %vm4413_vm12, %v917_v61  ;;  %v908_v3 = vsel %vm7837_vm5, %v7836_v53, %v7832_v59  ;;  %vm7838_vm14 = vmmov %vm7779_vm0  ;;  %v1482_v17 = vsel %vm7841_vm1, %v5177_v51, %v5260_v55  ;;  %3349 = vmatmul.mubr.msk.f32.vlgmr.msra.gmra.mxu0 %vm1102_vm13, %v843_v60  ;;  %v7850_v59 = vld [vmem:[#allocation25_spill] sm:$0xff] }
 0x331   :  { %v916_v32 = vsel %vm7838_vm14, %v7829_v10, %v7836_v53  ;;  %3364 = vmatprep.subr.msk.mxu1 %vm4419_vm9, %v908_v3  ;;  %3368 = vmatprep.subr.msk.mxu0 %vm4046_vm2, %v1482_v17  ;;  %vm7845_vm9 = vmmov %vm7841_vm1  ;;  %vm7851_vm10 = vnez %v7850_v59  ;;  %v7856_v53 = vld [vmem:[#allocation20_spill] sm:$0xff] }
 0x332   :  { %3365 = vmatpush1.msk.msra.mxu1 %vm4413_vm12, %v916_v32  ;;  %v1490_v10 = vsel %vm7845_vm9, %v5307_v63, %v5177_v51  ;;  %vm7846_vm12 = vmmov %vm7841_vm1  ;;  %vm7857_vm4 = vnez %v7856_v53  ;;  %v7858_v3 = vld [vmem:[#allocation136_spill] sm:$0xff]  ;;  %v5729_v17 = vpop.permute.xlu0 %2152  ;;  %1590 = vmatprep.mubr.f32.mxu0 %v7840_v24  ;;  %v7930_v53 = vld [vmem:[#allocation146_spill] sm:$0xff] }
 0x333   :  { %v1466_v27 = vsel %vm7846_vm12, %v5185_v9, %v5307_v63  ;;  %v5700_v13 = vpop.permute.xlu1 %2136  ;;  %3369 = vmatpush1.msk.msra.mxu0 %vm7849_vm6, %v1490_v10  ;;  %vm7853_vm0 = vmmov %vm7841_vm1  ;;  %3366 = vmatmul.mubr.msk.f32.vlgmr.msra.gmra.mxu1 %vm1102_vm13, %v843_v60  ;;  %7860 = vst [vmem:[#allocation30_spill] sm:$0xff] %v5729_v17  ;;  %v7863_v60 = vld [vmem:[#allocation130_spill] sm:$0xff]  ;;  %v7864_v10 = vld [vmem:[#allocation119_spill] sm:$0xff] }
 0x334   :  { %7847 = vst [vmem:[#allocation55_spill] sm:$0xff] %v5700_v13  ;;  %3385 = vmatprep.subr.msk.mxu1 %vm7851_vm10, %v1466_v27  ;;  %v1481_v51 = vsel %vm7853_vm0, %v7852_v62, %v5179_v0  ;;  %vm7854_vm8 = vmmov %vm7853_vm0  ;;  %v7891_v17 = vld [vmem:[#allocation94_spill] sm:$0xff]  ;;  %1661 = vmatprep.mubr.f32.mxu1 %v7840_v24 }
 0x335   :  { %v1489_v61 = vsel %vm7854_vm8, %v5187_v23, %v7852_v62  ;;  %vm7855_vm11 = vmmov %vm7853_vm0  ;;  %3370 = vmatprep.subr.msk.mxu0 %vm4046_vm2, %v1481_v51 }
 0x336   :  { %v1474_v63 = vsel %vm7855_vm11, %v5260_v55, %v5185_v9  ;;  %3371 = vmatpush1.msk.msra.mxu0 %vm7849_vm6, %v1489_v61  ;;  %vm7859_vm3 = vmmov %vm7853_vm0  ;;  %v7862_v55 = vld [vmem:[#allocation46_spill] sm:$0xff]  ;;  %v7870_v61 = vld [vmem:[#allocation121_spill] sm:$0xff] }
 0x337   :  { %3386 = vmatpush1.msk.msra.mxu1 %vm7857_vm4, %v1474_v63  ;;  %v1465_v32 = vsel %vm7859_vm3, %v7858_v3, %v5187_v23  ;;  %vm7861_vm7 = vmmov %vm7853_vm0  ;;  %2716 = vrot.lane.b32.xlu0 %v7862_v55, %s3638_s25  ;;  %v5743_v62 = vpop.permute.xlu1 %2168  ;;  %v7867_v23 = vld [vmem:[#allocation132_spill] sm:$0xff] }
 0x338   :  { %v1473_v9 = vsel %vm7861_vm7, %v5179_v0, %v7858_v3  ;;  %3387 = vmatprep.subr.msk.mxu1 %vm7851_vm10, %v1465_v32  ;;  %vm7865_vm15 = vmmov %vm7853_vm0  ;;  %7866 = vst [vmem:[#allocation31_spill] sm:$0xff] %v5743_v62  ;;  %v7869_v0 = vld [vmem:[#allocation45_spill] sm:$0xff]  ;;  %v7872_v3 = vld [vmem:[#allocation118_spill] sm:$0xff] }
 0x339   :  { %v1480_v27 = vsel %vm7865_vm15, %v7864_v10, %v7863_v60  ;;  %vm7868_vm5 = vmmov %vm7853_vm0  ;;  %3388 = vmatpush1.msk.msra.mxu1 %vm7857_vm4, %v1473_v9  ;;  %2732 = vrot.lane.b32.xlu1 %v7869_v0, %s3638_s25  ;;  %v7873_v32 = vld [vmem:[#allocation108_spill] sm:$0xff] }
 0x33a   :  { %v1488_v51 = vsel %vm7868_vm5, %v7867_v23, %v7864_v10  ;;  %3372 = vmatprep.subr.msk.mxu0 %vm4046_vm2, %v1480_v27  ;;  %vm7871_vm14 = vmmov %vm7853_vm0  ;;  %v7875_v27 = vld [vmem:[#allocation120_spill] sm:$0xff] }
 0x33b   :  { %3373 = vmatpush1.msk.msra.mxu0 %vm7849_vm6, %v1488_v51  ;;  %v1464_v63 = vsel %vm7871_vm14, %v7870_v61, %v7867_v23  ;;  %vm7874_vm1 = vmmov %vm7853_vm0  ;;  %v5777_v23 = vpop.permute.xlu0 %2184  ;;  %v7892_v62 = vld [vmem:[#allocation84_spill] sm:$0xff] }
 0x33c   :  { %v1479_v10 = vsel %vm7874_vm1, %v7873_v32, %v7872_v3  ;;  %vm7876_vm9 = vmmov %vm7853_vm0  ;;  %3389 = vmatprep.subr.msk.mxu1 %vm7851_vm10, %v1464_v63  ;;  %7878 = vst [vmem:[#allocation33_spill] sm:$0xff] %v5777_v23  ;;  %v7882_v63 = vld [vmem:[#allocation47_spill] sm:$0xff]  ;;  %vm7898_vm1 = vcmp.lt.s32.totalorder %v3782_v15, 113 }
 0x33d   :  { %v1487_v9 = vsel %vm7876_vm9, %v7875_v27, %v7873_v32  ;;  %vm7877_vm12 = vmmov %vm7853_vm0  ;;  %3374 = vmatprep.subr.msk.mxu0 %vm4046_vm2, %v1479_v10  ;;  %v7879_v32 = vld [vmem:[#allocation109_spill] sm:$0xff]  ;;  %2748 = vrot.lane.b32.xlu0 %v7882_v63, %s3638_s25  ;;  %v7883_v10 = vld [vmem:[#allocation102_spill] sm:$0xff] }
 0x33e   :  { %v1472_v51 = vsel %vm7877_vm12, %v7863_v60, %v7870_v61  ;;  %3375 = vmatpush1.msk.msra.mxu0 %vm7849_vm6, %v1487_v9  ;;  %v1463_v13 = vsel %vm7853_vm0, %v7879_v32, %v7875_v27  ;;  %v5787_v60 = vpop.permute.xlu1 %2429  ;;  %vm7881_vm8 = vmmov %vm7853_vm0  ;;  %v7884_v9 = vld [vmem:[#allocation95_spill] sm:$0xff]  ;;  %v7886_v27 = vld [vmem:[#allocation104_spill] sm:$0xff] }
 0x33f   :  { %3390 = vmatpush1.msk.msra.mxu1 %vm7857_vm4, %v1472_v51  ;;  %7880 = vst [vmem:[#allocation133_spill] sm:$0xff] %v5787_v60  ;;  %v1471_v61 = vsel %vm7881_vm8, %v7872_v3, %v7879_v32  ;;  %vm7885_vm11 = vmmov %vm7853_vm0  ;;  %v7889_v3 = vld [vmem:[#allocation97_spill] sm:$0xff] }
 0x340   :  { %3391 = vmatprep.subr.msk.mxu1 %vm7851_vm10, %v1463_v13  ;;  %v1478_v51 = vsel %vm7885_vm11, %v7884_v9, %v7883_v10  ;;  %vm7887_vm3 = vmmov %vm7853_vm0  ;;  %v7888_v13 = vld [vmem:[#allocation41_spill] sm:$0xff] }
 0x341   :  { %v1486_v23 = vsel %vm7887_vm3, %v7886_v27, %v7884_v9  ;;  %3376 = vmatprep.subr.msk.mxu0 %vm4046_vm2, %v1478_v51  ;;  %3392 = vmatpush1.msk.msra.mxu1 %vm7857_vm4, %v1471_v61  ;;  %vm7890_vm7 = vmmov %vm7853_vm0  ;;  %v5821_v51 = vpop.permute.xlu0 %2445  ;;  %v7895_v61 = vld [vmem:[#allocation96_spill] sm:$0xff] }
 0x342   :  { %2698 = vrot.lane.b32.xlu1 %v7888_v13, %s3638_s25  ;;  %3377 = vmatpush1.msk.msra.mxu0 %vm7849_vm6, %v1486_v23  ;;  %v1462_v32 = vsel %vm7890_vm7, %v7889_v3, %v7886_v27  ;;  %vm7893_vm15 = vmmov %vm7853_vm0  ;;  %7894 = vst [vmem:[#allocation32_spill] sm:$0xff] %v5821_v51  ;;  %v5839_v27 = vsel %vm7898_vm1, %v5787_v60, %v5821_v51  ;;  %v5841_v19 = vpop.permute.xlu1 %2461  ;;  %v7914_v51 = vld [vmem:[#allocation57_spill] sm:$0xff] }
 0x343   :  { %v1477_v9 = vsel %vm7893_vm15, %v7892_v62, %v7891_v17  ;;  %vm7896_vm5 = vmmov %vm7853_vm0  ;;  %3393 = vmatprep.subr.msk.mxu1 %vm7851_vm10, %v1462_v32  ;;  %7899 = vst [vmem:[#allocation135_spill] sm:$0xff] %v5839_v27  ;;  %v7904_v32 = vld [vmem:[#allocation43_spill] sm:$0xff] }
 0x344   :  { %v1485_v29 = vsel %vm7896_vm5, %v7895_v61, %v7892_v62  ;;  %vm7897_vm14 = vmmov %vm7853_vm0  ;;  %3378 = vmatprep.subr.msk.mxu0 %vm4046_vm2, %v1477_v9  ;;  %7900 = vst [vmem:[#allocation77_spill] sm:$0xff] %v5841_v19  ;;  %v7901_v62 = vld [vmem:[#allocation85_spill] sm:$0xff]  ;;  %2714 = vrot.lane.b32.xlu0 %v7904_v32, %s3638_s25  ;;  %v7905_v9 = vld [vmem:[#allocation76_spill] sm:$0xff] }
 0x345   :  { %v1470_v23 = vsel %vm7897_vm14, %v7883_v10, %v7889_v3  ;;  %3379 = vmatpush1.msk.msra.mxu0 %vm7849_vm6, %v1485_v29  ;;  %vm7902_vm9 = vmmov %vm7853_vm0  ;;  %v7907_v27 = vld [vmem:[#allocation79_spill] sm:$0xff] }
 0x346   :  { %3394 = vmatpush1.msk.msra.mxu1 %vm7857_vm4, %v1470_v23  ;;  %v1461_v10 = vsel %vm7902_vm9, %v7901_v62, %v7895_v61  ;;  %vm7903_vm12 = vmmov %vm7853_vm0  ;;  %v7906_v23 = vld [vmem:[#allocation69_spill] sm:$0xff]  ;;  %v5885_v19 = vpop.permute.xlu1 %2427 }
 0x347   :  { %v1469_v3 = vsel %vm7903_vm12, %v7891_v17, %v7901_v62  ;;  %3395 = vmatprep.subr.msk.mxu1 %vm7851_vm10, %v1461_v10  ;;  %v1476_v29 = vsel %vm7853_vm0, %v7906_v23, %v7905_v9  ;;  %vm7908_vm8 = vmmov %vm7853_vm0  ;;  %v5871_v17 = vpop.permute.xlu0 %2477  ;;  %v7910_v62 = vld [vmem:[#allocation42_spill] sm:$0xff]  ;;  %v7911_v10 = vld [vmem:[#allocation71_spill] sm:$0xff]  ;;  %7916 = vst [vmem:[#allocation115_spill] sm:$0xff] %v5885_v19 }
 0x348   :  { %v1484_v61 = vsel %vm7908_vm8, %v7907_v27, %v7906_v23  ;;  %3380 = vmatprep.subr.msk.mxu0 %vm4046_vm2, %v1476_v29  ;;  %3396 = vmatpush1.msk.msra.mxu1 %vm7857_vm4, %v1469_v3  ;;  %7909 = vst [vmem:[#allocation123_spill] sm:$0xff] %v5871_v17  ;;  %vm7912_vm11 = vmmov %vm7853_vm0  ;;  %v7913_v23 = vld [vmem:[#allocation51_spill] sm:$0xff]  ;;  %v7917_v3 = vld [vmem:[#allocation53_spill] sm:$0xff] }
 0x349   :  { %2730 = vrot.lane.b32.xlu1 %v7910_v62, %s3638_s25  ;;  %3381 = vmatpush1.msk.msra.mxu0 %vm7849_vm6, %v1484_v61  ;;  %v1460_v60 = vsel %vm7912_vm11, %v7911_v10, %v7907_v27  ;;  %vm7915_vm3 = vmmov %vm7853_vm0  ;;  %v7920_v27 = vld [vmem:[#allocation59_spill] sm:$0xff] }
 0x34a   :  { %v1475_v29 = vsel %vm7915_vm3, %v7914_v51, %v7913_v23  ;;  %vm7918_vm7 = vmmov %vm7853_vm0  ;;  %3397 = vmatprep.subr.msk.mxu1 %vm7851_vm10, %v1460_v60  ;;  %2746 = vrot.lane.b32.xlu0 %v4607_v14, %s3638_s25  ;;  %v7924_v60 = vld [vmem:[#allocation145_spill] sm:$0xff] }
 0x34b   :  { %v1483_v17 = vsel %vm7918_vm7, %v7917_v3, %v7914_v51  ;;  %vm7919_vm15 = vmmov %vm7853_vm0  ;;  %3382 = vmatprep.subr.msk.mxu0 %vm4046_vm2, %v1475_v29  ;;  %v5918_v33 = vpop.permute.xlu0 %2443  ;;  %vm7925_vm2 = vcmp.lt.s32.totalorder %v3782_v15, 1 }
 0x34c   :  { %v1468_v61 = vsel %vm7919_vm15, %v7905_v9, %v7911_v10  ;;  %3383 = vmatpush1.msk.msra.mxu0 %vm7849_vm6, %v1483_v17  ;;  %vm7921_vm5 = vmmov %vm7853_vm0  ;;  %7923 = vst [vmem:[#allocation125_spill] sm:$0xff] %v5918_v33  ;;  %v1761_v59 = vsel %vm7925_vm2, %v7924_v60, %v5219_v40  ;;  %v5927_v17 = vpop.permute.xlu1 %2459  ;;  %v7927_v10 = vld [vmem:[#allocation21_spill] sm:$0xff]  ;;  %v7960_v33 = vld [vmem:[#allocation110_spill] sm:$0xff] }
 0x34d   :  { %3398 = vmatpush1.msk.msra.mxu1 %vm7857_vm4, %v1468_v61  ;;  %v1459_v51 = vsel %vm7921_vm5, %v7920_v27, %v7917_v3  ;;  %vm7922_vm14 = vmmov %vm7853_vm0  ;;  %7926 = vst [vmem:[#allocation68_spill] sm:$0xff] %v5927_v17  ;;  %vm7928_vm6 = vnez %v7927_v10  ;;  %2696 = vrot.lane.b32.xlu1 %v4529_v28, %s3638_s25  ;;  %v7932_v3 = vld [vmem:[#allocation22_spill] sm:$0xff]  ;;  %v7934_v61 = vld [vmem:[#allocation24_spill] sm:$0xff] }
 0x34e   :  { %v1467_v9 = vsel %vm7922_vm14, %v7913_v23, %v7920_v27  ;;  %3399 = vmatprep.subr.msk.mxu1 %vm7851_vm10, %v1459_v51  ;;  %3403 = vmatprep.subr.msk.mxu0 %vm7928_vm6, %v1761_v59  ;;  %vm7929_vm10 = vmmov %vm7925_vm2  ;;  %vm7933_vm1 = vnez %v7932_v3  ;;  %vm7935_vm9 = vnez %v7934_v61  ;;  %v7936_v27 = vld [vmem:[#allocation137_spill] sm:$0xff]  ;;  %v7937_v51 = vld [vmem:[#allocation138_spill] sm:$0xff] }
 0x34f   :  { %3400 = vmatpush1.msk.msra.mxu1 %vm7857_vm4, %v1467_v9  ;;  %v1769_v23 = vsel %vm7929_vm10, %v5227_v46, %v7924_v60  ;;  %3384 = vmatmul.mubr.msk.f32.vlgmr.msra.gmra.mxu0 %vm1102_vm13, %v3367_v54  ;;  %vm7931_vm4 = vmmov %vm7925_vm2  ;;  %v5951_v60 = vpop.permute.xlu0 %2475  ;;  %v7940_v59 = vld [vmem:[#allocation139_spill] sm:$0xff] }
 0x350   :  { %v1745_v29 = vsel %vm7931_vm4, %v7930_v53, %v5227_v46  ;;  %3404 = vmatpush1.msk.msra.mxu0 %vm7933_vm1, %v1769_v23  ;;  %vm7938_vm12 = vmmov %vm7925_vm2  ;;  %7939 = vst [vmem:[#allocation117_spill] sm:$0xff] %v5951_v60  ;;  %3401 = vmatmul.mubr.msk.f32.vlgmr.msra.gmra.mxu1 %vm1102_vm13, %v3367_v54  ;;  %v5964_v23 = vpop.permute.xlu1 %2425  ;;  %v7949_v54 = vld [vmem:[#allocation39_spill] sm:$0xff] }
 0x351   :  { %3420 = vmatprep.subr.msk.mxu1 %vm7935_vm9, %v1745_v29  ;;  %v1760_v9 = vsel %vm7938_vm12, %v7937_v51, %v7936_v27  ;;  %vm7941_vm0 = vmmov %vm7925_vm2  ;;  %7943 = vst [vmem:[#allocation114_spill] sm:$0xff] %v5964_v23  ;;  %v7944_v29 = vld [vmem:[#allocation23_spill] sm:$0xff]  ;;  %2712 = vrot.lane.b32.xlu0 %v7949_v54, %s3638_s25 }
 0x352   :  { %v1768_v19 = vsel %vm7941_vm0, %v7940_v59, %v7937_v51  ;;  %vm7942_vm8 = vmmov %vm7941_vm0  ;;  %3405 = vmatprep.subr.msk.mxu0 %vm7928_vm6, %v1760_v9  ;;  %vm7945_vm11 = vnez %v7944_v29  ;;  %v7946_v51 = vld [vmem:[#allocation140_spill] sm:$0xff]  ;;  %v7951_v9 = vld [vmem:[#allocation122_spill] sm:$0xff]  ;;  %1869 = vmatprep.mubr.f32.mxu0 %v7840_v24 }
 0x353   :  { %v1753_v46 = vsel %vm7942_vm8, %v5219_v40, %v7930_v53  ;;  %3406 = vmatpush1.msk.msra.mxu0 %vm7933_vm1, %v1768_v19  ;;  %vm7947_vm3 = vmmov %vm7941_vm0  ;;  %v7950_v53 = vld [vmem:[#allocation128_spill] sm:$0xff]  ;;  %v3402_v3 = vld [vmem:[%s7081_s3 + $0xc] sm:$0x7]  ;;  %1940 = vmatprep.mubr.f32.mxu1 %v7840_v24 }
 0x354   :  { %3421 = vmatpush1.msk.msra.mxu1 %vm7945_vm11, %v1753_v46  ;;  %v1744_v60 = vsel %vm7947_vm3, %v7946_v51, %v7940_v59  ;;  %vm7948_vm7 = vmmov %vm7941_vm0  ;;  %v7953_v46 = vld [vmem:[#allocation129_spill] sm:$0xff]  ;;  %v6008_v17 = vpop.permute.xlu1 %2457  ;;  %v8009_v29 = vld [vmem:[#allocation3_spill] sm:$0xff] }
 0x355   :  { %v1752_v40 = vsel %vm7948_vm7, %v7936_v27, %v7946_v51  ;;  %3422 = vmatprep.subr.msk.mxu1 %vm7935_vm9, %v1744_v60  ;;  %vm7952_vm15 = vmmov %vm7941_vm0  ;;  %v5994_v27 = vpop.permute.xlu0 %2441  ;;  %v7956_v60 = vld [vmem:[#allocation38_spill] sm:$0xff]  ;;  %v7957_v51 = vld [vmem:[#allocation124_spill] sm:$0xff]  ;;  %7962 = vst [vmem:[#allocation116_spill] sm:$0xff] %v6008_v17 }
 0x356   :  { %v1759_v19 = vsel %vm7952_vm15, %v7951_v9, %v7950_v53  ;;  %vm7954_vm5 = vmmov %vm7941_vm0  ;;  %3423 = vmatpush1.msk.msra.mxu1 %vm7945_vm11, %v1752_v40  ;;  %7955 = vst [vmem:[#allocation106_spill] sm:$0xff] %v5994_v27  ;;  %2728 = vrot.lane.b32.xlu1 %v7956_v60, %s3638_s25  ;;  %v7963_v40 = vld [vmem:[#allocation113_spill] sm:$0xff] }
 0x357   :  { %v1767_v59 = vsel %vm7954_vm5, %v7953_v46, %v7951_v9  ;;  %3407 = vmatprep.subr.msk.mxu0 %vm7928_vm6, %v1759_v19  ;;  %vm7958_vm14 = vmmov %vm7941_vm0  ;;  %v7959_v9 = vld [vmem:[#allocation111_spill] sm:$0xff] }
 0x358   :  { %3408 = vmatpush1.msk.msra.mxu0 %vm7933_vm1, %v1767_v59  ;;  %v1743_v23 = vsel %vm7958_vm14, %v7957_v51, %v7953_v46  ;;  %vm7961_vm2 = vmmov %vm7941_vm0  ;;  %v7966_v46 = vld [vmem:[#allocation112_spill] sm:$0xff] }
 0x359   :  { %v1758_v19 = vsel %vm7961_vm2, %v7960_v33, %v7959_v9  ;;  %vm7964_vm10 = vmmov %vm7941_vm0  ;;  %3424 = vmatprep.subr.msk.mxu1 %vm7935_vm9, %v1743_v23  ;;  %v7968_v23 = vld [vmem:[#allocation40_spill] sm:$0xff] }
 0x35a   :  { %v1766_v27 = vsel %vm7964_vm10, %v7963_v40, %v7960_v33  ;;  %vm7965_vm4 = vmmov %vm7941_vm0  ;;  %3409 = vmatprep.subr.msk.mxu0 %vm7928_vm6, %v1758_v19  ;;  %2744 = vrot.lane.b32.xlu0 %v7968_v23, %s3638_s25  ;;  %v7970_v19 = vld [vmem:[#allocation98_spill] sm:$0xff] }
 0x35b   :  { %v1751_v59 = vsel %vm7965_vm4, %v7950_v53, %v7957_v51  ;;  %3410 = vmatpush1.msk.msra.mxu0 %vm7933_vm1, %v1766_v27  ;;  %vm7967_vm12 = vmmov %vm7941_vm0  ;;  %v1750_v53 = vsel %vm7941_vm0, %v7959_v9, %v7966_v46  ;;  %v7969_v51 = vld [vmem:[#allocation103_spill] sm:$0xff]  ;;  %v6052_v9 = vpop.permute.xlu1 %2423  ;;  %2694 = vrot.lane.b32.xlu1 %v4503_v58, %s3638_s25 }
 0x35c   :  { %3425 = vmatpush1.msk.msra.mxu1 %vm7945_vm11, %v1751_v59  ;;  %v1742_v33 = vsel %vm7967_vm12, %v7966_v46, %v7963_v40  ;;  %vm7971_vm8 = vmmov %vm7941_vm0  ;;  %v6042_v59 = vpop.permute.xlu0 %2473  ;;  %v7973_v40 = vld [vmem:[#allocation105_spill] sm:$0xff]  ;;  %7975 = vst [vmem:[#allocation80_spill] sm:$0xff] %v6052_v9  ;;  %v7976_v46 = vld [vmem:[#allocation100_spill] sm:$0xff] }
 0x35d   :  { %3426 = vmatprep.subr.msk.mxu1 %vm7935_vm9, %v1742_v33  ;;  %v1757_v27 = vsel %vm7971_vm8, %v7970_v19, %v7969_v51  ;;  %7972 = vst [vmem:[#allocation107_spill] sm:$0xff] %v6042_v59  ;;  %vm7974_vm3 = vmmov %vm7941_vm0  ;;  %v7979_v59 = vld [vmem:[#allocation86_spill] sm:$0xff] }
 0x35e   :  { %v1765_v17 = vsel %vm7974_vm3, %v7973_v40, %v7970_v19  ;;  %3411 = vmatprep.subr.msk.mxu0 %vm7928_vm6, %v1757_v27  ;;  %3427 = vmatpush1.msk.msra.mxu1 %vm7945_vm11, %v1750_v53  ;;  %vm7977_vm7 = vmmov %vm7941_vm0  ;;  %v7978_v19 = vld [vmem:[#allocation87_spill] sm:$0xff]  ;;  %v7981_v53 = vld [vmem:[#allocation89_spill] sm:$0xff] }
 0x35f   :  { %3412 = vmatpush1.msk.msra.mxu0 %vm7933_vm1, %v1765_v17  ;;  %v1741_v33 = vsel %vm7977_vm7, %v7976_v46, %v7973_v40  ;;  %vm7980_vm15 = vmmov %vm7941_vm0  ;;  %v7984_v40 = vld [vmem:[#allocation88_spill] sm:$0xff]  ;;  %2710 = vrot.lane.b32.xlu0 %v4515_v22, %s3638_s25 }
 0x360   :  { %v1756_v27 = vsel %vm7980_vm15, %v7979_v59, %v7978_v19  ;;  %vm7982_vm5 = vmmov %vm7941_vm0  ;;  %3428 = vmatprep.subr.msk.mxu1 %vm7935_vm9, %v1741_v33  ;;  %v6086_v7 = vpop.permute.xlu0 %2439  ;;  %2726 = vrot.lane.b32.xlu1 %v4509_v50, %s3638_s25 }
 0x361   :  { %v1764_v9 = vsel %vm7982_vm5, %v7981_v53, %v7979_v59  ;;  %vm7983_vm14 = vmmov %vm7941_vm0  ;;  %3413 = vmatprep.subr.msk.mxu0 %vm7928_vm6, %v1756_v27  ;;  %7986 = vst [vmem:[#allocation99_spill] sm:$0xff] %v6086_v7  ;;  %v6100_v27 = vpop.permute.xlu1 %2455  ;;  %v7996_v7 = vld [vmem:[#allocation61_spill] sm:$0xff] }
 0x362   :  { %v1749_v17 = vsel %vm7983_vm14, %v7969_v51, %v7976_v46  ;;  %3414 = vmatpush1.msk.msra.mxu0 %vm7933_vm1, %v1764_v9  ;;  %vm7985_vm2 = vmmov %vm7941_vm0  ;;  %v7988_v46 = vld [vmem:[#allocation78_spill] sm:$0xff]  ;;  %v7989_v9 = vld [vmem:[#allocation72_spill] sm:$0xff]  ;;  %7991 = vst [vmem:[#allocation91_spill] sm:$0xff] %v6100_v27  ;;  %vm8014_vm14 = vcmp.lt.s32.totalorder %v3782_v15, 127 }
 0x363   :  { %3429 = vmatpush1.msk.msra.mxu1 %vm7945_vm11, %v1749_v17  ;;  %v1740_v59 = vsel %vm7985_vm2, %v7984_v40, %v7981_v53  ;;  %vm7987_vm10 = vmmov %vm7941_vm0  ;;  %v7992_v53 = vld [vmem:[#allocation81_spill] sm:$0xff] }
 0x364   :  { %v1748_v51 = vsel %vm7987_vm10, %v7978_v19, %v7984_v40  ;;  %3430 = vmatprep.subr.msk.mxu1 %vm7935_vm9, %v1740_v59  ;;  %vm7990_vm4 = vmmov %vm7941_vm0  ;;  %v7994_v19 = vld [vmem:[#allocation74_spill] sm:$0xff]  ;;  %v7995_v59 = vld [vmem:[#allocation56_spill] sm:$0xff]  ;;  %2987 = vrot.lane.b32.xlu1 %v4910_v8, %s3639_s26 }
 0x365   :  { %v1755_v33 = vsel %vm7990_vm4, %v7989_v9, %v7988_v46  ;;  %vm7993_vm12 = vmmov %vm7941_vm0  ;;  %3431 = vmatpush1.msk.msra.mxu1 %vm7945_vm11, %v1748_v51  ;;  %v1739_v40 = vsel %vm7941_vm0, %v7994_v19, %v7992_v53 }
 0x366   :  { %v1763_v17 = vsel %vm7993_vm12, %v7992_v53, %v7989_v9  ;;  %3415 = vmatprep.subr.msk.mxu0 %vm7928_vm6, %v1755_v33  ;;  %vm7997_vm8 = vmmov %vm7941_vm0  ;;  %v7998_v33 = vld [vmem:[#allocation58_spill] sm:$0xff]  ;;  %3432 = vmatprep.subr.msk.mxu1 %vm7935_vm9, %v1739_v40  ;;  %v6134_v53 = vpop.permute.xlu0 %2471 }
 0x367   :  { %3416 = vmatpush1.msk.msra.mxu0 %vm7933_vm1, %v1763_v17  ;;  %v1754_v9 = vsel %vm7997_vm8, %v7996_v7, %v7995_v59  ;;  %vm7999_vm3 = vmmov %vm7941_vm0  ;;  %v8005_v40 = vld [vmem:[#allocation6_spill] sm:$0xff] }
 0x368   :  { %v1762_v51 = vsel %vm7999_vm3, %v7998_v33, %v7996_v7  ;;  %vm8000_vm7 = vmmov %vm7941_vm0  ;;  %3417 = vmatprep.subr.msk.mxu0 %vm7928_vm6, %v1754_v9  ;;  %v8001_v7 = vld [vmem:[#allocation64_spill] sm:$0xff]  ;;  %vm8006_vm6 = vnez %v8005_v40  ;;  %v8011_v9 = vld [vmem:[#allocation2_spill] sm:$0xff]  ;;  %3019 = vrot.lane.b32.xlu1 %v4921_v44, %s3639_s26 }
 0x369   :  { %v1747_v17 = vsel %vm8000_vm7, %v7988_v46, %v7994_v19  ;;  %3418 = vmatpush1.msk.msra.mxu0 %vm7933_vm1, %v1762_v51  ;;  %vm8002_vm15 = vmmov %vm7941_vm0  ;;  %v6144_v46 = vpop.permute.xlu1 %2421  ;;  %v8004_v19 = vld [vmem:[#allocation35_spill] sm:$0xff] }
 0x36a   :  { %3433 = vmatpush1.msk.msra.mxu1 %vm7945_vm11, %v1747_v17  ;;  %v1738_v27 = vsel %vm8002_vm15, %v8001_v7, %v7998_v33  ;;  %vm8003_vm5 = vmmov %vm7941_vm0  ;;  %2742 = vrot.lane.b32.xlu0 %v8004_v19, %s3638_s25  ;;  %v6165_v61 = vpop.permute.xlu0 %2437  ;;  %v8017_v40 = vld [vmem:[#allocation147_spill] sm:$0xff] }
 0x36b   :  { %v1746_v10 = vsel %vm8003_vm5, %v7995_v59, %v8001_v7  ;;  %3434 = vmatprep.subr.msk.mxu1 %vm7935_vm9, %v1738_v27  ;;  %3438 = vmatprep.subr.msk.mxu0 %vm8006_vm6, %v4964_v25  ;;  %v8007_v59 = vld [vmem:[#allocation7_spill] sm:$0xff]  ;;  %vm8010_vm9 = vnez %v8009_v29  ;;  %v8013_v7 = vld [vmem:[#allocation148_spill] sm:$0xff]  ;;  %vm8018_vm10 = vmmov %vm8014_vm14 }
 0x36c   :  { %3435 = vmatpush1.msk.msra.mxu1 %vm7945_vm11, %v1746_v10  ;;  %3419 = vmatmul.mubr.msk.f32.vlgmr.msra.gmra.mxu0 %vm1102_vm13, %v3402_v3  ;;  %vm8008_vm1 = vnez %v8007_v59  ;;  %vm8012_vm11 = vnez %v8011_v9  ;;  %v2215_v10 = vsel %vm8014_vm14, %v5249_v49, %v8013_v7  ;;  %v2223_v59 = vsel %vm8018_vm10, %v8017_v40, %v5249_v49  ;;  %vm8019_vm4 = vmmov %vm8018_vm10  ;;  %v8020_v9 = vld [vmem:[#allocation11_spill] sm:$0xff] }
 0x36d   :  { %v6169_v27 = vpop.permute.xlu1 %2453  ;;  %3439 = vmatpush1.msk.msra.mxu0 %vm8008_vm1, %v4910_v8  ;;  %3455 = vmatprep.subr.msk.mxu1 %vm8010_vm9, %v4975_v36  ;;  %v2231_v29 = vsel %vm8019_vm4, %v5289_v5, %v8017_v40  ;;  %vm8021_vm12 = vnez %v8020_v9  ;;  %vm8026_vm8 = vmmov %vm8019_vm4  ;;  %v8068_v9 = vld [vmem:[#allocation32_spill] sm:$0xff] }
 0x36e   :  { %3436 = vmatmul.mubr.msk.f32.vlgmr.msra.gmra.mxu1 %vm1102_vm13, %v3402_v3  ;;  %3440 = vmatprep.subr.msk.mxu0 %vm8006_vm6, %v4872_v57  ;;  %v6187_v33 = vpop.permute.xlu0 %2469  ;;  %vm8028_vm3 = vmmov %vm8019_vm4 }
 0x36f   :  { %3456 = vmatpush1.msk.msra.mxu1 %vm8012_vm11, %v4921_v44  ;;  %3441 = vmatpush1.msk.msra.mxu0 %vm8008_vm1, %v4847_v26  ;;  %vm8029_vm7 = vmmov %vm8028_vm3 }
 0x370   :  { %3457 = vmatprep.subr.msk.mxu1 %vm8010_vm9, %v4883_v41  ;;  %3003 = vrot.lane.b32.xlu0 %v4964_v25, %s3639_s26  ;;  %v2207_v40 = vsel %vm8029_vm7, %v8013_v7, %v5289_v5  ;;  %vm8033_vm5 = vmmov %vm8028_vm3  ;;  %v8036_v7 = vld [vmem:[#allocation131_spill] sm:$0xff] }
 0x371   :  { %v6194_v8 = vpop.permute.xlu1 %2419  ;;  %3442 = vmatprep.subr.msk.mxu0 %vm8006_vm6, %v7786_v18  ;;  %3458 = vmatpush1.msk.msra.mxu1 %vm8012_vm11, %v4842_v35 }
 0x372   :  { %3443 = vmatpush1.msk.msra.mxu0 %vm8008_vm1, %v4734_v21  ;;  %3459 = vmatprep.subr.msk.mxu1 %vm8010_vm9, %v7803_v2  ;;  %v6213_v25 = vpop.permute.xlu0 %2435 }
 0x373   :  { %3444 = vmatprep.subr.msk.mxu0 %vm8006_vm6, %v7820_v45  ;;  %3460 = vmatpush1.msk.msra.mxu1 %vm8012_vm11, %v7792_v31 }
 0x374   :  { %3445 = vmatpush1.msk.msra.mxu0 %vm8008_vm1, %v7809_v12  ;;  %3461 = vmatprep.subr.msk.mxu1 %vm8010_vm9, %v7839_v37 }
 0x375   :  { %v6221_v44 = vpop.permute.xlu1 %2451  ;;  %3035 = vrot.lane.b32.xlu0 %v4975_v36, %s3639_s26  ;;  %3446 = vmatprep.subr.msk.mxu0 %vm8006_vm6, %v7862_v55 }
 0x376   :  { %3462 = vmatpush1.msk.msra.mxu1 %vm8012_vm11, %v4687_v47  ;;  %2985 = vrot.lane.b32.xlu1 %v4847_v26, %s3639_s26  ;;  %v6239_v51 = vpop.permute.xlu0 %2467 }
 0x377   :  { %3447 = vmatpush1.msk.msra.mxu0 %vm8008_vm1, %v7843_v56  ;;  %3463 = vmatprep.subr.msk.mxu1 %vm8010_vm9, %v7882_v63 }
 0x378   :  { %3448 = vmatprep.subr.msk.mxu0 %vm8006_vm6, %v7904_v32  ;;  %3464 = vmatpush1.msk.msra.mxu1 %vm8012_vm11, %v7869_v0 }
 0x379   :  { %v6247_v36 = vpop.permute.xlu1 %2417  ;;  %3449 = vmatpush1.msk.msra.mxu0 %vm8008_vm1, %v7888_v13  ;;  %3465 = vmatprep.subr.msk.mxu1 %vm8010_vm9, %v4607_v14 }
 0x37a   :  { %3001 = vrot.lane.b32.xlu0 %v4872_v57, %s3639_s26  ;;  %3450 = vmatprep.subr.msk.mxu0 %vm8006_vm6, %v7949_v54  ;;  %v6266_v26 = vpop.permute.xlu0 %2433  ;;  %v3437_v57 = vld [vmem:[%s7081_s3 + $0x10] sm:$0x7] }
 0x37b   :  { %3466 = vmatpush1.msk.msra.mxu1 %vm8012_vm11, %v7910_v62  ;;  %3017 = vrot.lane.b32.xlu1 %v4842_v35, %s3639_s26 }
 0x37c   :  { %3451 = vmatpush1.msk.msra.mxu0 %vm8008_vm1, %v4529_v28  ;;  %3467 = vmatprep.subr.msk.mxu1 %vm8010_vm9, %v7968_v23 }
 0x37d   :  { %v6273_v17 = vpop.permute.xlu1 %2449  ;;  %3452 = vmatprep.subr.msk.mxu0 %vm8006_vm6, %v4515_v22  ;;  %3468 = vmatpush1.msk.msra.mxu1 %vm8012_vm11, %v7956_v60  ;;  %v8027_v22 = vld [vmem:[#allocation142_spill] sm:$0xff]  ;;  %vm8034_vm6 = vmmov %vm8028_vm3 }
 0x37e   :  { %3453 = vmatpush1.msk.msra.mxu0 %vm8008_vm1, %v4503_v58  ;;  %3469 = vmatprep.subr.msk.mxu1 %vm8010_vm9, %v8004_v19  ;;  %v6295_v35 = vpop.permute.xlu0 %2465  ;;  %v8025_v19 = vld [vmem:[#allocation141_spill] sm:$0xff]  ;;  %vm8037_vm1 = vmmov %vm8028_vm3 }
 0x37f   :  { %3033 = vrot.lane.b32.xlu0 %v4883_v41, %s3639_s26  ;;  %2052 = vmatprep.mubr.f32.mxu0 %v7840_v24  ;;  %v8015_v41 = vld [vmem:[#allocation13_spill] sm:$0xff]  ;;  %v2222_v58 = vsel %vm8028_vm3, %v8027_v22, %v8025_v19  ;;  %vm8039_vm9 = vmmov %vm8037_vm1 }
 0x380   :  { %3470 = vmatpush1.msk.msra.mxu1 %vm8012_vm11, %v4509_v50  ;;  %vm8016_vm2 = vnez %v8015_v41  ;;  %2983 = vrot.lane.b32.xlu1 %v4734_v21, %s3639_s26  ;;  %v8024_v21 = vld [vmem:[#allocation144_spill] sm:$0xff]  ;;  %vm8040_vm11 = vmmov %vm8037_vm1 }
 0x381   :  { %v6305_v3 = vpop.permute.xlu1 %2415  ;;  %3473 = vmatprep.subr.msk.mxu0 %vm8016_vm2, %v2215_v10  ;;  %3454 = vmatmul.mubr.msk.f32.vlgmr.msra.gmra.mxu0 %vm1102_vm13, %v3437_v57  ;;  %v8022_v10 = vld [vmem:[#allocation10_spill] sm:$0xff]  ;;  %v2214_v49 = vsel %vm8026_vm8, %v8025_v19, %v8024_v21  ;;  %v8032_v19 = vld [vmem:[#allocation143_spill] sm:$0xff]  ;;  %vm8041_vm14 = vmmov %vm8037_vm1 }
 0x382   :  { %2123 = vmatprep.mubr.f32.mxu1 %v7840_v24  ;;  %3474 = vmatpush1.msk.msra.mxu0 %vm8021_vm12, %v2223_v59  ;;  %vm8023_vm0 = vnez %v8022_v10  ;;  %v6329_v50 = vpop.permute.xlu0 %2431  ;;  %v2230_v23 = vsel %vm8033_vm5, %v8032_v19, %v8027_v22  ;;  %v2206_v5 = vsel %vm8034_vm6, %v8024_v21, %v8032_v19  ;;  %v2212_v21 = vsel %vm8041_vm14, %v5385_v11, %v5395_v39  ;;  %vm8042_vm10 = vmmov %vm8037_vm1  ;;  %v3472_v41 = vld [vmem:[%s7081_s3 + $0x14] sm:$0x7] }
 0x383   :  { %3490 = vmatprep.subr.msk.mxu1 %vm8023_vm0, %v2231_v29  ;;  %3471 = vmatmul.mubr.msk.f32.vlgmr.msra.gmra.mxu1 %vm1102_vm13, %v3437_v57  ;;  %v8030_v29 = vld [vmem:[#allocation9_spill] sm:$0xff]  ;;  %v8035_v57 = vld [vmem:[#allocation127_spill] sm:$0xff]  ;;  %vm8043_vm4 = vmmov %vm8037_vm1 }
 0x384   :  { %3475 = vmatprep.subr.msk.mxu0 %vm8016_vm2, %v2214_v49  ;;  %vm8031_vm15 = vnez %v8030_v29  ;;  %2999 = vrot.lane.b32.xlu0 %v7786_v18, %s3639_s26  ;;  %v8038_v49 = vld [vmem:[#allocation126_spill] sm:$0xff]  ;;  %v2220_v19 = vsel %vm8043_vm4, %v5351_v20, %v5385_v11  ;;  %vm8044_vm8 = vmmov %vm8037_vm1  ;;  %v8070_v10 = vld [vmem:[#allocation16_spill] sm:$0xff] }
 0x385   :  { %v6342_v59 = vpop.permute.xlu1 %2447  ;;  %3491 = vmatpush1.msk.msra.mxu1 %vm8031_vm15, %v2207_v40  ;;  %3476 = vmatpush1.msk.msra.mxu0 %vm8021_vm12, %v2222_v58  ;;  %v2213_v58 = vsel %vm8037_vm1, %v8036_v7, %v8035_v57  ;;  %v2221_v22 = vsel %vm8039_vm9, %v8038_v49, %v8036_v7  ;;  %v2229_v18 = vsel %vm8040_vm11, %v5337_v1, %v8038_v49  ;;  %vm8045_vm3 = vmmov %vm8037_vm1  ;;  %v8060_v49 = vld [vmem:[#allocation30_spill] sm:$0xff]  ;;  %v8076_v29 = vld [vmem:[#allocation125_spill] sm:$0xff] }
 0x386   :  { %3492 = vmatprep.subr.msk.mxu1 %vm8023_vm0, %v2230_v23  ;;  %3477 = vmatprep.subr.msk.mxu0 %vm8016_vm2, %v2213_v58  ;;  %v6372_v23 = vpop.permute.xlu0 %2463  ;;  %v2204_v11 = vsel %vm8045_vm3, %v5395_v39, %v5432_v34  ;;  %vm8046_vm7 = vmmov %vm8037_vm1 }
 0x387   :  { %3493 = vmatpush1.msk.msra.mxu1 %vm8031_vm15, %v2206_v5  ;;  %3015 = vrot.lane.b32.xlu1 %v7792_v31, %s3639_s26  ;;  %v2205_v31 = vsel %vm8042_vm10, %v8035_v57, %v5337_v1  ;;  %v2228_v1 = vsel %vm8044_vm8, %v5432_v34, %v5351_v20  ;;  %v2211_v5 = vsel %vm8046_vm7, %v5471_v38, %v5484_v42  ;;  %vm8047_vm5 = vmmov %vm8037_vm1 }
 0x388   :  { %3478 = vmatpush1.msk.msra.mxu0 %vm8021_vm12, %v2221_v22  ;;  %3494 = vmatprep.subr.msk.mxu1 %vm8023_vm0, %v2229_v18  ;;  %v2219_v20 = vsel %vm8047_vm5, %v5446_v48, %v5471_v38  ;;  %vm8048_vm6 = vmmov %vm8037_vm1  ;;  %v2210_v34 = vsel %vm8037_vm1, %v5562_v43, %v5572_v52 }
 0x389   :  { %v6386_v40 = vpop.permute.xlu1 %2708  ;;  %3479 = vmatprep.subr.msk.mxu0 %vm8016_vm2, %v2212_v21  ;;  %3495 = vmatpush1.msk.msra.mxu1 %vm8031_vm15, %v2205_v31  ;;  %v2227_v39 = vsel %vm8048_vm6, %v5514_v4, %v5446_v48  ;;  %vm8049_vm9 = vmmov %vm8037_vm1  ;;  %v8063_v21 = vld [vmem:[#allocation55_spill] sm:$0xff] }
 0x38a   :  { %3480 = vmatpush1.msk.msra.mxu0 %vm8021_vm12, %v2220_v19  ;;  %3496 = vmatprep.subr.msk.mxu1 %vm8023_vm0, %v2228_v1  ;;  %v6420_v57 = vpop.permute.xlu0 %2724  ;;  %vm8050_vm11 = vmmov %vm8037_vm1  ;;  %v8065_v19 = vld [vmem:[#allocation33_spill] sm:$0xff] }
 0x38b   :  { %3031 = vrot.lane.b32.xlu0 %v7803_v2, %s3639_s26  ;;  %3481 = vmatprep.subr.msk.mxu0 %vm8016_vm2, %v2211_v5  ;;  %v2203_v2 = vsel %vm8049_vm9, %v5484_v42, %v5514_v4  ;;  %vm8051_vm14 = vmmov %vm8037_vm1  ;;  %v8053_v4 = vld [vmem:[#allocation52_spill] sm:$0xff]  ;;  %v2224_v1 = vsel %vm8037_vm1, %v8065_v19, %v8063_v21  ;;  %v8067_v5 = vld [vmem:[#allocation77_spill] sm:$0xff] }
 0x38c   :  { %3497 = vmatpush1.msk.msra.mxu1 %vm8031_vm15, %v2204_v11  ;;  %2981 = vrot.lane.b32.xlu1 %v7809_v12, %s3639_s26  ;;  %v2218_v12 = vsel %vm8050_vm11, %v5528_v16, %v5562_v43  ;;  %v2226_v48 = vsel %vm8051_vm14, %v5606_v6, %v5528_v16  ;;  %vm8052_vm10 = vmmov %vm8037_vm1  ;;  %v8055_v16 = vld [vmem:[#allocation70_spill] sm:$0xff] }
 0x38d   :  { %3482 = vmatpush1.msk.msra.mxu0 %vm8021_vm12, %v2219_v20  ;;  %v6442_v38 = vpop.permute.xlu1 %2740  ;;  %3498 = vmatprep.subr.msk.mxu1 %vm8023_vm0, %v2227_v39  ;;  %v2202_v42 = vsel %vm8052_vm10, %v5572_v52, %v5606_v6  ;;  %vm8054_vm4 = vmmov %vm8037_vm1  ;;  %v8057_v52 = vld [vmem:[#allocation49_spill] sm:$0xff] }
 0x38e   :  { %3483 = vmatprep.subr.msk.mxu0 %vm8016_vm2, %v2210_v34  ;;  %3499 = vmatpush1.msk.msra.mxu1 %vm8031_vm15, %v2203_v2  ;;  %v2209_v43 = vsel %vm8054_vm4, %v8053_v4, %v5664_v30  ;;  %v6476_v7 = vpop.permute.xlu0 %2756  ;;  %vm8056_vm8 = vmmov %vm8037_vm1  ;;  %v8072_v39 = vld [vmem:[#allocation133_spill] sm:$0xff]  ;;  %v8073_v34 = vld [vmem:[#allocation123_spill] sm:$0xff] }
 0x38f   :  { %3484 = vmatpush1.msk.msra.mxu0 %vm8021_vm12, %v2218_v12  ;;  %3500 = vmatprep.subr.msk.mxu1 %vm8023_vm0, %v2226_v48  ;;  %v2217_v58 = vsel %vm8056_vm8, %v8055_v16, %v8053_v4  ;;  %vm8058_vm3 = vmmov %vm8037_vm1  ;;  %v8075_v12 = vld [vmem:[#allocation68_spill] sm:$0xff]  ;;  %v8079_v4 = vld [vmem:[#allocation14_spill] sm:$0xff] }
 0x390   :  { %2997 = vrot.lane.b32.xlu0 %v7820_v45, %s3639_s26  ;;  %3485 = vmatprep.subr.msk.mxu0 %vm8016_vm2, %v2209_v43  ;;  %v2225_v6 = vsel %vm8058_vm3, %v8057_v52, %v8055_v16  ;;  %v8059_v45 = vld [vmem:[#allocation31_spill] sm:$0xff]  ;;  %vm8061_vm7 = vmmov %vm8037_vm1  ;;  %vm8080_vm11 = vnez %v8079_v4  ;;  %v8127_v4 = vld [vmem:[#allocation12_spill] sm:$0xff] }
 0x391   :  { %3501 = vmatpush1.msk.msra.mxu1 %vm8031_vm15, %v2202_v42  ;;  %3013 = vrot.lane.b32.xlu1 %v4687_v47, %s3639_s26  ;;  %v2208_v22 = vsel %vm8061_vm7, %v8060_v49, %v8059_v45  ;;  %v6498_v18 = vpop.permute.xlu1 %2706  ;;  %vm8062_vm5 = vmmov %vm8037_vm1  ;;  %v8078_v42 = vld [vmem:[#allocation135_spill] sm:$0xff] }
 0x392   :  { %3486 = vmatpush1.msk.msra.mxu0 %vm8021_vm12, %v2217_v58  ;;  %v2201_v47 = vsel %vm8062_vm5, %v5664_v30, %v8057_v52  ;;  %vm8064_vm6 = vmmov %vm8037_vm1  ;;  %3502 = vmatprep.subr.msk.mxu1 %vm8023_vm0, %v2225_v6  ;;  %v6531_v11 = vpop.permute.xlu0 %2722  ;;  %v8081_v43 = vld [vmem:[#allocation15_spill] sm:$0xff]  ;;  %v8086_v6 = vld [vmem:[#allocation117_spill] sm:$0xff] }
 0x393   :  { %v2216_v31 = vsel %vm8064_vm6, %v8063_v21, %v8060_v49  ;;  %3487 = vmatprep.subr.msk.mxu0 %vm8016_vm2, %v2208_v22  ;;  %3503 = vmatpush1.msk.msra.mxu1 %vm8031_vm15, %v2201_v47  ;;  %vm8066_vm9 = vmmov %vm8037_vm1  ;;  %vm8069_vm2 = vcmp.lt.s32.totalorder %v3782_v15, 113  ;;  %vm8082_vm14 = vnez %v8081_v43  ;;  %v8088_v49 = vld [vmem:[#allocation17_spill] sm:$0xff]  ;;  %v8091_v47 = vld [vmem:[#allocation116_spill] sm:$0xff] }
 0x394   :  { %3488 = vmatpush1.msk.msra.mxu0 %vm8021_vm12, %v2216_v31  ;;  %v2200_v30 = vsel %vm8066_vm9, %v8059_v45, %v8065_v19  ;;  %3504 = vmatprep.subr.msk.mxu1 %vm8023_vm0, %v2224_v1  ;;  %v2494_v20 = vsel %vm8069_vm2, %v8068_v9, %v8067_v5  ;;  %vm8071_vm12 = vnez %v8070_v10  ;;  %vm8074_vm0 = vmmov %vm8069_vm2  ;;  %vm8089_vm3 = vnez %v8088_v49  ;;  %v8092_v21 = vld [vmem:[#allocation106_spill] sm:$0xff]  ;;  %v8098_v9 = vld [vmem:[#allocation91_spill] sm:$0xff] }
 0x395   :  { %3029 = vrot.lane.b32.xlu0 %v7839_v37, %s3639_s26  ;;  %2331 = vmatprep.mubr.f32.mxu0 %v7840_v24  ;;  %v6543_v37 = vpop.permute.xlu1 %2738  ;;  %v2510_v2 = vsel %vm8074_vm0, %v8073_v34, %v8072_v39  ;;  %vm8083_vm10 = vmmov %vm8074_vm0  ;;  %v8094_v1 = vld [vmem:[#allocation114_spill] sm:$0xff]  ;;  %v8143_v49 = vld [vmem:[#allocation37_spill] sm:$0xff] }
 0x396   :  { %3505 = vmatpush1.msk.msra.mxu1 %vm8031_vm15, %v2200_v30  ;;  %3508 = vmatprep.subr.msk.mxu0 %vm8071_vm12, %v2494_v20  ;;  %vm8077_vm15 = vmmov %vm8074_vm0  ;;  %v2486_v16 = vsel %vm8083_vm10, %v8067_v5, %v8073_v34  ;;  %v6572_v52 = vpop.permute.xlu0 %2754  ;;  %v8102_v34 = vld [vmem:[#allocation80_spill] sm:$0xff] }
 0x397   :  { %2402 = vmatprep.mubr.f32.mxu1 %v7840_v24  ;;  %2979 = vrot.lane.b32.xlu1 %v7843_v56, %s3639_s26  ;;  %v2493_v48 = vsel %vm8077_vm15, %v8076_v29, %v8075_v12  ;;  %v8084_v56 = vld [vmem:[#allocation115_spill] sm:$0xff]  ;;  %vm8085_vm4 = vmmov %vm8074_vm0 }
 0x398   :  { %3489 = vmatmul.mubr.msk.f32.vlgmr.msra.gmra.mxu0 %vm1102_vm13, %v3472_v41  ;;  %3525 = vmatprep.subr.msk.mxu1 %vm8082_vm14, %v2510_v2  ;;  %v2501_v58 = vsel %vm8085_vm4, %v8084_v56, %v8076_v29  ;;  %vm8087_vm8 = vmmov %vm8074_vm0 }
 0x399   :  { %3509 = vmatpush1.msk.msra.mxu0 %vm8080_vm11, %v8078_v42  ;;  %3506 = vmatmul.mubr.msk.f32.vlgmr.msra.gmra.mxu1 %vm1102_vm13, %v3472_v41  ;;  %v2509_v45 = vsel %vm8087_vm8, %v8086_v6, %v8084_v56  ;;  %vm8090_vm7 = vmmov %vm8074_vm0  ;;  %v6594_v19 = vpop.permute.xlu1 %2704  ;;  %v8096_v41 = vld [vmem:[#allocation107_spill] sm:$0xff] }
 0x39a   :  { %3510 = vmatprep.subr.msk.mxu0 %vm8071_vm12, %v2493_v48  ;;  %3526 = vmatpush1.msk.msra.mxu1 %vm8089_vm3, %v2486_v16  ;;  %v2485_v22 = vsel %vm8090_vm7, %v8075_v12, %v8086_v6  ;;  %vm8093_vm5 = vmmov %vm8074_vm0  ;;  %v6636_v12 = vpop.permute.xlu0 %2720  ;;  %v8139_v6 = vld [vmem:[#allocation34_spill] sm:$0xff] }
 0x39b   :  { %3511 = vmatpush1.msk.msra.mxu0 %vm8080_vm11, %v2501_v58  ;;  %v2492_v31 = vsel %vm8093_vm5, %v8092_v21, %v8091_v47  ;;  %3527 = vmatprep.subr.msk.mxu1 %vm8082_vm14, %v2509_v45  ;;  %vm8095_vm6 = vmmov %vm8074_vm0 }
 0x39c   :  { %2995 = vrot.lane.b32.xlu0 %v7862_v55, %s3639_s26  ;;  %v2500_v30 = vsel %vm8095_vm6, %v8094_v1, %v8092_v21  ;;  %3512 = vmatprep.subr.msk.mxu0 %vm8071_vm12, %v2492_v31  ;;  %vm8097_vm1 = vmmov %vm8074_vm0  ;;  %v8099_v55 = vld [vmem:[#allocation99_spill] sm:$0xff] }
 0x39d   :  { %3528 = vmatpush1.msk.msra.mxu1 %vm8089_vm3, %v2485_v22  ;;  %v2508_v5 = vsel %vm8097_vm1, %v8096_v41, %v8094_v1  ;;  %vm8100_vm9 = vmmov %vm8074_vm0  ;;  %3011 = vrot.lane.b32.xlu1 %v7869_v0, %s3639_s26  ;;  %v2499_v2 = vsel %vm8074_vm0, %v8102_v34, %v8099_v55 }
 0x39e   :  { %v2491_v20 = vsel %vm8100_vm9, %v8099_v55, %v8098_v9  ;;  %3513 = vmatpush1.msk.msra.mxu0 %vm8080_vm11, %v2500_v30  ;;  %vm8101_vm2 = vmmov %vm8074_vm0  ;;  %3529 = vmatprep.subr.msk.mxu1 %vm8082_vm14, %v2508_v5  ;;  %v3250_v30 = vld [vmem:[%s7082_s4] sm:$0x7]  ;;  %v8148_v5 = vld [vmem:[#allocation35_spill] sm:$0xff] }
 0x39f   :  { %v2484_v39 = vsel %vm8101_vm2, %v8091_v47, %v8096_v41  ;;  %3514 = vmatprep.subr.msk.mxu0 %vm8071_vm12, %v2491_v20  ;;  %vm8103_vm15 = vmmov %vm8074_vm0  ;;  %2610 = vmatprep.mubr.f32.mxu0 %v7840_v24 }
 0x3a0   :  { %v2507_v0 = vsel %vm8103_vm15, %v6134_v53, %v8102_v34  ;;  %3530 = vmatpush1.msk.msra.mxu1 %vm8089_vm3, %v2484_v39  ;;  %3515 = vmatpush1.msk.msra.mxu0 %vm8080_vm11, %v2499_v2  ;;  %vm8104_vm10 = vmmov %vm8074_vm0 }
 0x3a1   :  { %v2483_v29 = vsel %vm8104_vm10, %v8098_v9, %v6134_v53  ;;  %vm8105_vm4 = vmmov %vm8074_vm0  ;;  %3531 = vmatprep.subr.msk.mxu1 %vm8082_vm14, %v2507_v0  ;;  %3027 = vrot.lane.b32.xlu0 %v7882_v63, %s3639_s26  ;;  %v6658_v53 = vpop.permute.xlu1 %2736 }
 0x3a2   :  { %v2490_v48 = vsel %vm8105_vm4, %v6165_v61, %v6169_v27  ;;  %vm8106_vm8 = vmmov %vm8074_vm0  ;;  %3532 = vmatpush1.msk.msra.mxu1 %vm8089_vm3, %v2483_v29  ;;  %2977 = vrot.lane.b32.xlu1 %v7888_v13, %s3639_s26 }
 0x3a3   :  { %v2498_v42 = vsel %vm8106_vm8, %v6144_v46, %v6165_v61  ;;  %3516 = vmatprep.subr.msk.mxu0 %vm8071_vm12, %v2490_v48  ;;  %vm8107_vm7 = vmmov %vm8074_vm0  ;;  %2681 = vmatprep.mubr.f32.mxu1 %v7840_v24 }
 0x3a4   :  { %v2506_v16 = vsel %vm8107_vm7, %v6187_v33, %v6144_v46  ;;  %vm8108_vm5 = vmmov %vm8074_vm0  ;;  %3517 = vmatpush1.msk.msra.mxu0 %vm8080_vm11, %v2498_v42 }
 0x3a5   :  { %v2489_v63 = vsel %vm8108_vm5, %v6213_v25, %v6221_v44  ;;  %vm8109_vm6 = vmmov %vm8074_vm0  ;;  %3533 = vmatprep.subr.msk.mxu1 %vm8082_vm14, %v2506_v16  ;;  %2993 = vrot.lane.b32.xlu0 %v7904_v32, %s3639_s26  ;;  %v2703_v56 = vpop.permute.xlu1 %2702 }
 0x3a6   :  { %v2482_v61 = vsel %vm8109_vm6, %v6169_v27, %v6187_v33  ;;  %vm8110_vm1 = vmmov %vm8074_vm0  ;;  %3518 = vmatprep.subr.msk.mxu0 %vm8071_vm12, %v2489_v63  ;;  %v2753_v33 = vpop.permute.xlu0 %2752  ;;  %3009 = vrot.lane.b32.xlu1 %v7910_v62, %s3639_s26 }
 0x3a7   :  { %v2497_v46 = vsel %vm8110_vm1, %v6194_v8, %v6213_v25  ;;  %vm8111_vm9 = vmmov %vm8074_vm0  ;;  %3534 = vmatpush1.msk.msra.mxu1 %vm8089_vm3, %v2482_v61  ;;  %v2488_v25 = vsel %vm8074_vm0, %v6266_v26, %v6273_v17 }
 0x3a8   :  { %v2481_v13 = vsel %vm8111_vm9, %v6221_v44, %v6239_v51  ;;  %vm8112_vm2 = vmmov %vm8074_vm0  ;;  %3519 = vmatpush1.msk.msra.mxu0 %vm8080_vm11, %v2497_v46 }
 0x3a9   :  { %v2505_v27 = vsel %vm8112_vm2, %v6239_v51, %v6194_v8  ;;  %vm8113_vm15 = vmmov %vm8074_vm0  ;;  %3520 = vmatprep.subr.msk.mxu0 %vm8071_vm12, %v2488_v25  ;;  %3025 = vrot.lane.b32.xlu0 %v4607_v14, %s3639_s26  ;;  %v2735_v14 = vpop.permute.xlu1 %2734  ;;  %vm8128_vm2 = vnez %v8127_v4 }
 0x3aa   :  { %v2504_v44 = vsel %vm8113_vm15, %v6295_v35, %v6247_v36  ;;  %3535 = vmatprep.subr.msk.mxu1 %vm8082_vm14, %v2505_v27  ;;  %vm8114_vm10 = vmmov %vm8074_vm0  ;;  %2975 = vrot.lane.b32.xlu1 %v4529_v28, %s3639_s26 }
 0x3ab   :  { %v2487_v8 = vsel %vm8114_vm10, %v6329_v50, %v6342_v59  ;;  %vm8115_vm4 = vmmov %vm8074_vm0  ;;  %3536 = vmatpush1.msk.msra.mxu1 %vm8089_vm3, %v2481_v13 }
 0x3ac   :  { %v2496_v51 = vsel %vm8115_vm4, %v6247_v36, %v6266_v26  ;;  %vm8116_vm8 = vmmov %vm8074_vm0  ;;  %3537 = vmatprep.subr.msk.mxu1 %vm8082_vm14, %v2504_v44 }
 0x3ad   :  { %3521 = vmatpush1.msk.msra.mxu0 %vm8080_vm11, %v2496_v51  ;;  %v2503_v32 = vsel %vm8116_vm8, %v6372_v23, %v6305_v3  ;;  %vm8117_vm7 = vmmov %vm8074_vm0  ;;  %2991 = vrot.lane.b32.xlu0 %v7949_v54, %s3639_s26  ;;  %v8129_v54 = vld [vmem:[#allocation5_spill] sm:$0xff] }
 0x3ae   :  { %v2480_v36 = vsel %vm8117_vm7, %v6273_v17, %v6295_v35  ;;  %3522 = vmatprep.subr.msk.mxu0 %vm8071_vm12, %v2487_v8  ;;  %vm8118_vm5 = vmmov %vm8074_vm0  ;;  %vm8120_vm12 = vcmp.lt.s32.totalorder %v3782_v15, 112  ;;  %v2719_v35 = vpop.permute.xlu0 %2718  ;;  %3007 = vrot.lane.b32.xlu1 %v7956_v60, %s3639_s26  ;;  %v8133_v60 = vld [vmem:[#allocation40_spill] sm:$0xff] }
 0x3af   :  { %v2479_v62 = vsel %vm8118_vm5, %v6342_v59, %v6372_v23  ;;  %vm8119_vm6 = vmmov %vm8074_vm0  ;;  %3538 = vmatpush1.msk.msra.mxu1 %vm8089_vm3, %v2480_v36  ;;  %v2773_v17 = vsel %vm8120_vm12, %v6420_v57, %v6442_v38  ;;  %vm8130_vm0 = vnez %v8129_v54 }
 0x3b0   :  { %v2495_v26 = vsel %vm8119_vm6, %v6305_v3, %v6329_v50  ;;  %3539 = vmatprep.subr.msk.mxu1 %vm8082_vm14, %v2503_v32  ;;  %v3507_v50 = vld [vmem:[%s7081_s3 + $0x18] sm:$0x7]  ;;  %v8121_v3 = vld [vmem:[#allocation8_spill] sm:$0xff]  ;;  %v3542_v32 = vld [vmem:[%s7081_s3 + $0x1c] sm:$0x7] }
 0x3b1   :  { %3523 = vmatpush1.msk.msra.mxu0 %vm8080_vm11, %v2495_v26  ;;  %3540 = vmatpush1.msk.msra.mxu1 %vm8089_vm3, %v2479_v62  ;;  %vm8122_vm1 = vnez %v8121_v3  ;;  %vm8123_vm11 = vmmov %vm8120_vm12 }
 0x3b2   :  { %3543 = vmatprep.subr.msk.mxu0 %vm8122_vm1, %v2773_v17  ;;  %v2789_v59 = vsel %vm8123_vm11, %v6476_v7, %v6386_v40  ;;  %vm8124_vm14 = vmmov %vm8123_vm11  ;;  %3524 = vmatmul.mubr.msk.f32.vlgmr.msra.gmra.mxu0 %vm1102_vm13, %v3507_v50 }
 0x3b3   :  { %v2781_v28 = vsel %vm8124_vm14, %v6386_v40, %v6420_v57  ;;  %vm8125_vm3 = vmmov %vm8123_vm11  ;;  %3560 = vmatprep.subr.msk.mxu1 %vm8130_vm0, %v2789_v59  ;;  %v2751_v57 = vpop.permute.xlu0 %2750  ;;  %3541 = vmatmul.mubr.msk.f32.vlgmr.msra.gmra.mxu1 %vm1102_vm13, %v3507_v50 }
 0x3b4   :  { %v2772_v23 = vsel %vm8125_vm3, %v6531_v11, %v6543_v37  ;;  %vm8126_vm9 = vmmov %vm8125_vm3  ;;  %3544 = vmatpush1.msk.msra.mxu0 %vm8128_vm2, %v2781_v28  ;;  %3023 = vrot.lane.b32.xlu0 %v8133_v60, %s3639_s26  ;;  %v2778_v21 = vsel %vm8125_vm3, %v2703_v56, %v2719_v35  ;;  %v8165_v28 = vld [vmem:[#allocation26_spill] sm:$0xff] }
 0x3b5   :  { %v2765_v10 = vsel %vm8126_vm9, %v6442_v38, %v6476_v7  ;;  %vm8131_vm15 = vmmov %vm8125_vm3  ;;  %3545 = vmatprep.subr.msk.mxu0 %vm8122_vm1, %v2772_v23  ;;  %v8134_v7 = vld [vmem:[#allocation4_spill] sm:$0xff]  ;;  %2973 = vrot.lane.b32.xlu1 %v8139_v6, %s3639_s26 }
 0x3b6   :  { %v2788_v40 = vsel %vm8131_vm15, %v6572_v52, %v6498_v18  ;;  %vm8132_vm10 = vmmov %vm8125_vm3  ;;  %vm8135_vm4 = vnez %v8134_v7  ;;  %2889 = vmatprep.mubr.f32.mxu0 %v7840_v24  ;;  %2960 = vmatprep.mubr.f32.mxu1 %v7840_v24 }
 0x3b7   :  { %v2764_v38 = vsel %vm8132_vm10, %v6543_v37, %v6572_v52  ;;  %3561 = vmatpush1.msk.msra.mxu1 %vm8135_vm4, %v2765_v10  ;;  %vm8136_vm8 = vmmov %vm8125_vm3  ;;  %v2701_v52 = vpop.permute.xlu1 %2700  ;;  %v2717_v47 = vpop.permute.xlu0 %2716  ;;  %v8167_v10 = vld [vmem:[#allocation29_spill] sm:$0xff] }
 0x3b8   :  { %v2780_v43 = vsel %vm8136_vm8, %v6498_v18, %v6531_v11  ;;  %vm8137_vm7 = vmmov %vm8125_vm3  ;;  %3562 = vmatprep.subr.msk.mxu1 %vm8130_vm0, %v2788_v40  ;;  %2989 = vrot.lane.b32.xlu0 %v8143_v49, %s3639_s26  ;;  %v8171_v40 = vld [vmem:[#allocation27_spill] sm:$0xff] }
 0x3b9   :  { %v2771_v58 = vsel %vm8137_vm7, %v6636_v12, %v6658_v53  ;;  %vm8138_vm5 = vmmov %vm8125_vm3  ;;  %3546 = vmatpush1.msk.msra.mxu0 %vm8128_vm2, %v2780_v43  ;;  %3563 = vmatpush1.msk.msra.mxu1 %vm8135_vm4, %v2764_v38 }
 0x3ba   :  { %v2787_v37 = vsel %vm8138_vm5, %v2753_v33, %v6594_v19  ;;  %vm8140_vm6 = vmmov %vm8125_vm3  ;;  %3547 = vmatprep.subr.msk.mxu0 %vm8122_vm1, %v2771_v58 }
 0x3bb   :  { %v2763_v18 = vsel %vm8140_vm6, %v6658_v53, %v2753_v33  ;;  %vm8141_vm12 = vmmov %vm8125_vm3  ;;  %3564 = vmatprep.subr.msk.mxu1 %vm8130_vm0, %v2787_v37  ;;  %v2733_v1 = vpop.permute.xlu1 %2732  ;;  %v2749_v55 = vpop.permute.xlu0 %2748 }
 0x3bc   :  { %v2770_v11 = vsel %vm8141_vm12, %v2719_v35, %v2735_v14  ;;  %vm8142_vm11 = vmmov %vm8125_vm3  ;;  %3565 = vmatpush1.msk.msra.mxu1 %vm8135_vm4, %v2763_v18  ;;  %3021 = vrot.lane.b32.xlu0 %v8148_v5, %s3639_s26 }
 0x3bd   :  { %v2779_v45 = vsel %vm8142_vm11, %v6594_v19, %v6636_v12  ;;  %vm8144_vm14 = vmmov %vm8125_vm3  ;;  %v8146_v19 = vld [vmem:[#allocation36_spill] sm:$0xff] }
 0x3be   :  { %3548 = vmatpush1.msk.msra.mxu0 %vm8128_vm2, %v2779_v45  ;;  %v2786_v22 = vsel %vm8144_vm14, %v2751_v57, %v2703_v56  ;;  %vm8145_vm9 = vmmov %vm8125_vm3  ;;  %3005 = vrot.lane.b32.xlu1 %v8146_v19, %s3639_s26 }
 0x3bf   :  { %3549 = vmatprep.subr.msk.mxu0 %vm8122_vm1, %v2770_v11  ;;  %v2762_v31 = vsel %vm8145_vm9, %v2735_v14, %v2751_v57  ;;  %3566 = vmatprep.subr.msk.mxu1 %vm8130_vm0, %v2786_v22  ;;  %vm8147_vm15 = vmmov %vm8125_vm3  ;;  %v2699_v34 = vpop.permute.xlu1 %2698  ;;  %v2715_v2 = vpop.permute.xlu0 %2714  ;;  %v8173_v57 = vld [vmem:[#allocation28_spill] sm:$0xff] }
 0x3c0   :  { %3550 = vmatpush1.msk.msra.mxu0 %vm8128_vm2, %v2778_v21  ;;  %v2769_v41 = vsel %vm8147_vm15, %v2717_v47, %v2733_v1  ;;  %3567 = vmatpush1.msk.msra.mxu1 %vm8135_vm4, %v2762_v31  ;;  %vm8149_vm10 = vmmov %vm8125_vm3 }
 0x3c1   :  { %v2777_v9 = vsel %vm8149_vm10, %v2701_v52, %v2717_v47  ;;  %3551 = vmatprep.subr.msk.mxu0 %vm8122_vm1, %v2769_v41  ;;  %vm8150_vm8 = vmmov %vm8125_vm3 }
 0x3c2   :  { %3253 = vperm.xlu1 %3623, %v3250_v30   ;;  %v2761_v20 = vsel %vm8150_vm8, %v2733_v1, %v2749_v55  ;;  %vm8151_vm7 = vmmov %vm8125_vm3  ;;  %3552 = vmatpush1.msk.msra.mxu0 %vm8128_vm2, %v2777_v9 }
 0x3c3   :  { %v2785_v39 = vsel %vm8151_vm7, %v2749_v55, %v2701_v52  ;;  %v2731_v0 = vpop.permute.xlu1 %2730  ;;  %vm8152_vm5 = vmmov %vm8125_vm3  ;;  %v2747_v48 = vpop.permute.xlu0 %2746 }
 0x3c4   :  { %3568 = vmatprep.subr.msk.mxu1 %vm8130_vm0, %v2785_v39  ;;  %v2768_v12 = vsel %vm8152_vm5, %v2715_v2, %v2731_v0  ;;  %vm8153_vm6 = vmmov %vm8125_vm3 }
 0x3c5   :  { %3569 = vmatpush1.msk.msra.mxu1 %vm8135_vm4, %v2761_v20  ;;  %v2776_v29 = vsel %vm8153_vm6, %v2699_v34, %v2715_v2  ;;  %3553 = vmatprep.subr.msk.mxu0 %vm8122_vm1, %v2768_v12  ;;  %vm8154_vm12 = vmmov %vm8125_vm3  ;;  %vm8168_vm6 = vnez %v8167_v10 }
 0x3c6   :  { %3554 = vmatpush1.msk.msra.mxu0 %vm8128_vm2, %v2776_v29  ;;  %v2760_v42 = vsel %vm8154_vm12, %v2731_v0, %v2747_v48  ;;  %vm8155_vm11 = vmmov %vm8125_vm3 }
 0x3c7   :  { %v2784_v53 = vsel %vm8155_vm11, %v2747_v48, %v2699_v34  ;;  %v2697_v16 = vpop.permute.xlu1 %2696  ;;  %v2713_v63 = vpop.permute.xlu0 %2712  ;;  %vm8156_vm14 = vmmov %vm8125_vm3  ;;  %vm8172_vm11 = vnez %v8171_v40 }
 0x3c8   :  { %3570 = vmatprep.subr.msk.mxu1 %vm8130_vm0, %v2784_v53  ;;  %v2775_v13 = vsel %vm8125_vm3, %v2697_v16, %v2713_v63  ;;  %vm8157_vm9 = vmmov %vm8125_vm3 }
 0x3c9   :  { %3571 = vmatpush1.msk.msra.mxu1 %vm8135_vm4, %v2760_v42  ;;  %vm8158_vm15 = vmmov %vm8125_vm3 }
 0x3ca   :  { %vm8159_vm10 = vmmov %vm8125_vm3 }
 0x3cb   :  { %v2729_v61 = vpop.permute.xlu1 %2728  ;;  %vm8160_vm8 = vmmov %vm8125_vm3 }
 0x3cc   :  { %v2767_v46 = vsel %vm8156_vm14, %v2713_v63, %v2729_v61  ;;  %v2745_v27 = vpop.permute.xlu0 %2744  ;;  %vm8161_vm7 = vmmov %vm8125_vm3  ;;  %vm8174_vm14 = vnez %v8173_v57 }
 0x3cd   :  { %3555 = vmatprep.subr.msk.mxu0 %vm8122_vm1, %v2767_v46  ;;  %v2759_v33 = vsel %vm8157_vm9, %v2729_v61, %v2745_v27  ;;  %v2783_v25 = vsel %vm8158_vm15, %v2745_v27, %v2697_v16  ;;  %vm8162_vm5 = vmmov %vm8125_vm3 }
 0x3ce   :  { %3556 = vmatpush1.msk.msra.mxu0 %vm8128_vm2, %v2775_v13  ;;  %3572 = vmatprep.subr.msk.mxu1 %vm8130_vm0, %v2783_v25 }
 0x3cf   :  { %v2695_v44 = vpop.permute.xlu1 %2694  ;;  %3573 = vmatpush1.msk.msra.mxu1 %vm8135_vm4, %v2759_v33 }
 0x3d1   :  { %v2711_v8 = vpop.permute.xlu0 %2710 }
 0x3d2   :  { %v2774_v36 = vsel %vm8160_vm8, %v2695_v44, %v2711_v8 }
 0x3d3   :  { %v2727_v51 = vpop.permute.xlu1 %2726 }
 0x3d4   :  { %v2766_v56 = vsel %vm8159_vm10, %v2711_v8, %v2727_v51 }
 0x3d5   :  { %3557 = vmatprep.subr.msk.mxu0 %vm8122_vm1, %v2766_v56  ;;  %vm8163_vm1 = vcmp.lt.s32.totalorder %v3782_v15, 111 }
 0x3d6   :  { %3558 = vmatpush1.msk.msra.mxu0 %vm8128_vm2, %v2774_v36  ;;  %vm8164_vm2 = vmmov %vm8163_vm1 }
 0x3d7   :  { %3559 = vmatmul.mubr.msk.f32.vlgmr.msra.gmra.mxu0 %vm1102_vm13, %v3542_v32  ;;  %v2988_v35 = vpop.permute.xlu1 %2987  ;;  %vm8170_vm12 = vmmov %vm8163_vm1 }
 0x3d8   :  { %3168 = vmatprep.mubr.f32.mxu0 %v7840_v24  ;;  %vm8175_vm3 = vmmov %vm8163_vm1 }
 0x3d9   :  { %vm8176_vm9 = vmmov %vm8163_vm1 }
 0x3da   :  { %vm8177_vm15 = vmmov %vm8163_vm1 }
 0x3db   :  { %v3020_v14 = vpop.permute.xlu1 %3019  ;;  %vm8178_vm10 = vmmov %vm8163_vm1 }
 0x3dc   :  { %v2743_v62 = vpop.permute.xlu0 %2742  ;;  %vm8179_vm8 = vmmov %vm8163_vm1 }
 0x3dd   :  { %v2758_v26 = vsel %vm8161_vm7, %v2727_v51, %v2743_v62  ;;  %v2782_v17 = vsel %vm8162_vm5, %v2743_v62, %v2695_v44  ;;  %vm8180_vm7 = vmmov %vm8163_vm1 }
 0x3de   :  { %3574 = vmatprep.subr.msk.mxu1 %vm8130_vm0, %v2782_v17  ;;  %vm8166_vm0 = vnez %v8165_v28  ;;  %vm8181_vm5 = vmmov %vm8163_vm1  ;;  %v1172_v28 = vpop.f32.mrf.mxu0 }
 0x3df   :  { %3575 = vmatpush1.msk.msra.mxu1 %vm8135_vm4, %v2758_v26  ;;  %vm8169_vm4 = vmmov %vm8163_vm1 }
 0x3e0   :  { %3576 = vmatmul.mubr.msk.f32.vlgmr.msra.gmra.mxu1 %vm1102_vm13, %v3542_v32 }
 0x3e1   :  { %3239 = vmatprep.mubr.f32.mxu1 %v7840_v24 }
 0x3e2   :  { %v3004_v50 = vpop.permute.xlu0 %3003 }
 0x3e3   :  { %v3052_v3 = vsel %vm8163_vm1, %v3004_v50, %v3020_v14  ;;  %v3060_v59 = vsel %vm8164_vm2, %v2988_v35, %v3004_v50  ;;  %vm8182_vm2 = vmmov %vm8163_vm1  ;;  %v3577_v50 = vld [vmem:[%s7081_s3 + $0x20] sm:$0x7] }
 0x3e4   :  { %3578 = vmatprep.subr.msk.mxu0 %vm8166_vm0, %v3052_v3 }
 0x3e5   :  { %3579 = vmatpush1.msk.msra.mxu0 %vm8168_vm6, %v3060_v59 }
 0x3e7   :  { %v3036_v23 = vpop.permute.xlu0 %3035 }
 0x3e8   :  { %v3044_v4 = vsel %vm8169_vm4, %v3020_v14, %v3036_v23  ;;  %v3068_v24 = vsel %vm8170_vm12, %v3036_v23, %v2988_v35  ;;  %v2986_v54 = vpop.permute.xlu1 %2985  ;;  %vm8183_vm4 = vmmov %vm8163_vm1 }
 0x3e9   :  { %3595 = vmatprep.subr.msk.mxu1 %vm8172_vm11, %v3068_v24  ;;  %vm8184_vm12 = vmmov %vm8163_vm1  ;;  %v1174_v24 = vpop.f32.mrf.mxu0 }
 0x3ea   :  { %3596 = vmatpush1.msk.msra.mxu1 %vm8174_vm14, %v3044_v4  ;;  %v1243_v4 = vpop.f32.mrf.mxu1 }
 0x3ec   :  { %v3002_v38 = vpop.permute.xlu0 %3001 }
 0x3ed   :  { %v3018_v60 = vpop.permute.xlu1 %3017  ;;  %v3059_v43 = vsel %vm8176_vm9, %v2986_v54, %v3002_v38  ;;  %vm8186_vm9 = vmmov %vm8163_vm1 }
 0x3ee   :  { %v3051_v7 = vsel %vm8175_vm3, %v3002_v38, %v3018_v60  ;;  %vm8185_vm3 = vmmov %vm8163_vm1 }
 0x3ef   :  { %3580 = vmatprep.subr.msk.mxu0 %vm8166_vm0, %v3051_v7 }
 0x3f0   :  { %3581 = vmatpush1.msk.msra.mxu0 %vm8168_vm6, %v3059_v43  ;;  %v1317_v38 = vpop.f32.mrf.mxu0 }
 0x3f1   :  { %v3034_v58 = vpop.permute.xlu0 %3033 }
 0x3f2   :  { %v3043_v37 = vsel %vm8177_vm15, %v3018_v60, %v3034_v58  ;;  %v3067_v52 = vsel %vm8178_vm10, %v3034_v58, %v2986_v54  ;;  %v2984_v6 = vpop.permute.xlu1 %2983  ;;  %vm8187_vm15 = vmmov %vm8163_vm1  ;;  %v1245_v54 = vpop.f32.mrf.mxu1 }
 0x3f3   :  { %3597 = vmatprep.subr.msk.mxu1 %vm8172_vm11, %v3067_v52  ;;  %vm8188_vm10 = vmmov %vm8163_vm1  ;;  %v1319_v60 = vpop.f32.mrf.mxu0 }
 0x3f4   :  { %3598 = vmatpush1.msk.msra.mxu1 %vm8174_vm14, %v3043_v37  ;;  %v1388_v15 = vpop.f32.mrf.mxu1 }
 0x3f6   :  { %v3000_v18 = vpop.permute.xlu0 %2999  ;;  %v1390_v7 = vpop.f32.mrf.mxu1 }
 0x3f7   :  { %v3058_v49 = vsel %vm8180_vm7, %v2984_v6, %v3000_v18  ;;  %vm8190_vm7 = vmmov %vm8163_vm1 }
 0x3f9   :  { %v3016_v11 = vpop.permute.xlu1 %3015 }
 0x3fa   :  { %v3050_v45 = vsel %vm8179_vm8, %v3000_v18, %v3016_v11  ;;  %vm8189_vm8 = vmmov %vm8163_vm1 }
 0x3fb   :  { %3582 = vmatprep.subr.msk.mxu0 %vm8166_vm0, %v3050_v45 }
 0x3fc   :  { %3583 = vmatpush1.msk.msra.mxu0 %vm8168_vm6, %v3058_v49  ;;  %v1318_v49 = vadd.f32 %v1317_v38, %v1172_v28 }
 0x3fd   :  { %v3032_v22 = vpop.permute.xlu0 %3031 }
 0x3fe   :  { %v3042_v47 = vsel %vm8181_vm5, %v3016_v11, %v3032_v22  ;;  %v3066_v21 = vsel %vm8163_vm1, %v3032_v22, %v2984_v6  ;;  %v2982_v31 = vpop.permute.xlu1 %2981  ;;  %vm8191_vm5 = vmmov %vm8163_vm1 }
 0x3ff   :  { %3599 = vmatprep.subr.msk.mxu1 %vm8172_vm11, %v3066_v21  ;;  %v1320_v21 = vadd.f32 %v1319_v60, %v1174_v24 }
 0x400   :  { %3600 = vmatpush1.msk.msra.mxu1 %vm8174_vm14, %v3042_v47  ;;  %v1389_v47 = vadd.f32 %v1388_v15, %v1243_v4 }
 0x402   :  { %v2998_v19 = vpop.permute.xlu0 %2997 }
 0x403   :  { %v3014_v1 = vpop.permute.xlu1 %3013  ;;  %v3057_v41 = vsel %vm8183_vm4, %v2982_v31, %v2998_v19  ;;  %vm8193_vm4 = vmmov %vm8163_vm1 }
 0x404   :  { %v3049_v30 = vsel %vm8182_vm2, %v2998_v19, %v3014_v1  ;;  %vm8192_vm2 = vmmov %vm8163_vm1  ;;  %v1391_v19 = vadd.f32 %v1390_v7, %v1245_v54 }
 0x405   :  { %3584 = vmatprep.subr.msk.mxu0 %vm8166_vm0, %v3049_v30 }
 0x406   :  { %3585 = vmatpush1.msk.msra.mxu0 %vm8168_vm6, %v3057_v41 }
 0x407   :  { %v3030_v5 = vpop.permute.xlu0 %3029 }
 0x408   :  { %v3041_v9 = vsel %vm8184_vm12, %v3014_v1, %v3030_v5  ;;  %v3065_v55 = vsel %vm8185_vm3, %v3030_v5, %v2982_v31  ;;  %vm8194_vm12 = vmmov %vm8163_vm1 }
 0x409   :  { %3601 = vmatprep.subr.msk.mxu1 %vm8172_vm11, %v3065_v55  ;;  %v2980_v20 = vpop.permute.xlu1 %2979  ;;  %vm8195_vm3 = vmmov %vm8163_vm1 }
 0x40a   :  { %3602 = vmatpush1.msk.msra.mxu1 %vm8174_vm14, %v3041_v9 }
 0x40e   :  { %v2996_v39 = vpop.permute.xlu0 %2995 }
 0x40f   :  { %v3012_v34 = vpop.permute.xlu1 %3011  ;;  %v3056_v0 = vsel %vm8187_vm15, %v2980_v20, %v2996_v39  ;;  %vm8197_vm15 = vmmov %vm8163_vm1  ;;  %v1592_v10 = vpop.f32.mrf.mxu0 }
 0x410   :  { %v3048_v2 = vsel %vm8186_vm9, %v2996_v39, %v3012_v34  ;;  %vm8196_vm9 = vmmov %vm8163_vm1  ;;  %v1663_v43 = vpop.f32.mrf.mxu1  ;;  %v1668_v1 = vadd.f32 %v1592_v10, %v1318_v49 }
 0x411   :  { %3586 = vmatprep.subr.msk.mxu0 %vm8166_vm0, %v3048_v2  ;;  %v1594_v58 = vpop.f32.mrf.mxu0  ;;  %v1670_v41 = vadd.f32 %v1663_v43, %v1389_v47 }
 0x412   :  { %3587 = vmatpush1.msk.msra.mxu0 %vm8168_vm6, %v3056_v0  ;;  %v1665_v37 = vpop.f32.mrf.mxu1  ;;  %v1669_v5 = vadd.f32 %v1594_v58, %v1320_v21 }
 0x413   :  { %v3028_v12 = vpop.permute.xlu0 %3027  ;;  %v1671_v55 = vadd.f32 %v1665_v37, %v1391_v19 }
 0x414   :  { %v3040_v29 = vsel %vm8188_vm10, %v3012_v34, %v3028_v12  ;;  %v3064_v48 = vsel %vm8189_vm8, %v3028_v12, %v2980_v20  ;;  %v2978_v42 = vpop.permute.xlu1 %2977  ;;  %vm8198_vm10 = vmmov %vm8163_vm1 }
 0x415   :  { %3603 = vmatprep.subr.msk.mxu1 %vm8172_vm11, %v3064_v48  ;;  %vm8199_vm8 = vmmov %vm8163_vm1 }
 0x416   :  { %3604 = vmatpush1.msk.msra.mxu1 %vm8174_vm14, %v3040_v29 }
 0x417   :  { %v2994_v53 = vpop.permute.xlu0 %2993 }
 0x418   :  { %v3010_v16 = vpop.permute.xlu1 %3009  ;;  %v3055_v61 = vsel %vm8191_vm5, %v2978_v42, %v2994_v53 }
 0x419   :  { %v3047_v63 = vsel %vm8190_vm7, %v2994_v53, %v3010_v16  ;;  %vm8200_vm7 = vmmov %vm8163_vm1 }
 0x41a   :  { %3588 = vmatprep.subr.msk.mxu0 %vm8166_vm0, %v3047_v63 }
 0x41b   :  { %v3026_v46 = vpop.permute.xlu0 %3025  ;;  %3589 = vmatpush1.msk.msra.mxu0 %vm8168_vm6, %v3055_v61 }
 0x41c   :  { %v3039_v13 = vsel %vm8163_vm1, %v3010_v16, %v3026_v46  ;;  %v3063_v27 = vsel %vm8192_vm2, %v3026_v46, %v2978_v42  ;;  %v2976_v33 = vpop.permute.xlu1 %2975 }
 0x41d   :  { %3605 = vmatprep.subr.msk.mxu1 %vm8172_vm11, %v3063_v27 }
 0x41e   :  { %3606 = vmatpush1.msk.msra.mxu1 %vm8174_vm14, %v3039_v13 }
 0x41f   :  { %v2992_v25 = vpop.permute.xlu0 %2991 }
 0x420   :  { %v3008_v44 = vpop.permute.xlu1 %3007  ;;  %v3054_v51 = vsel %vm8194_vm12, %v2976_v33, %v2992_v25 }
 0x421   :  { %v3046_v8 = vsel %vm8193_vm4, %v2992_v25, %v3008_v44 }
 0x422   :  { %3590 = vmatprep.subr.msk.mxu0 %vm8166_vm0, %v3046_v8 }
 0x423   :  { %3591 = vmatpush1.msk.msra.mxu0 %vm8168_vm6, %v3054_v51 }
 0x426   :  { %v3024_v56 = vpop.permute.xlu0 %3023 }
 0x427   :  { %v3038_v32 = vsel %vm8195_vm3, %v3008_v44, %v3024_v56  ;;  %v3062_v36 = vsel %vm8196_vm9, %v3024_v56, %v2976_v33  ;;  %v2974_v62 = vpop.permute.xlu1 %2973 }
 0x428   :  { %3607 = vmatprep.subr.msk.mxu1 %vm8172_vm11, %v3062_v36 }
 0x429   :  { %3608 = vmatpush1.msk.msra.mxu1 %vm8174_vm14, %v3038_v32 }
 0x42a   :  { %v2990_v26 = vpop.permute.xlu0 %2989 }
 0x42b   :  { %v3053_v14 = vsel %vm8198_vm10, %v2974_v62, %v2990_v26 }
 0x42c   :  { %v1871_v52 = vpop.f32.mrf.mxu0 }
 0x42d   :  { %v1947_v20 = vadd.f32 %v1871_v52, %v1668_v1 }
 0x42e   :  { %v3022_v3 = vpop.permute.xlu0 %3021  ;;  %v1942_v40 = vpop.f32.mrf.mxu1 }
 0x42f   :  { %v3061_v23 = vsel %vm8200_vm7, %v3022_v3, %v2974_v62  ;;  %v1873_v6 = vpop.f32.mrf.mxu0  ;;  %v1949_v34 = vadd.f32 %v1942_v40, %v1670_v41 }
 0x430   :  { %v3006_v17 = vpop.permute.xlu1 %3005  ;;  %3609 = vmatprep.subr.msk.mxu1 %vm8172_vm11, %v3061_v23  ;;  %v1944_v18 = vpop.f32.mrf.mxu1  ;;  %v1948_v2 = vadd.f32 %v1873_v6, %v1669_v5 }
 0x431   :  { %v3045_v35 = vsel %vm8197_vm15, %v2990_v26, %v3006_v17  ;;  %v3037_v59 = vsel %vm8199_vm8, %v3006_v17, %v3022_v3  ;;  %v1950_v12 = vadd.f32 %v1944_v18, %v1671_v55 }
 0x432   :  { %3592 = vmatprep.subr.msk.mxu0 %vm8166_vm0, %v3045_v35  ;;  %3610 = vmatpush1.msk.msra.mxu1 %vm8174_vm14, %v3037_v59 }
 0x433   :  { %3593 = vmatpush1.msk.msra.mxu0 %vm8168_vm6, %v3053_v14  ;;  %3611 = vmatmul.mubr.msk.f32.vlgmr.msra.gmra.mxu1 %vm1102_vm13, %v3577_v50 }
 0x434   :  { %3594 = vmatmul.mubr.msk.f32.vlgmr.msra.gmra.mxu0 %vm1102_vm13, %v3577_v50 }
 0x43d   :  { %v3254_v17 = vpop.permute.xlu1 %3253 }
 0x441   :  { %v2054_v57 = vpop.f32.mrf.mxu0 }
 0x442   :  { %v2130_v29 = vadd.f32 %v2054_v57, %v1947_v20 }
 0x443   :  { %v2125_v11 = vpop.f32.mrf.mxu1  ;;  %v2056_v45 = vpop.f32.mrf.mxu0 }
 0x444   :  { %v2132_v42 = vadd.f32 %v2125_v11, %v1949_v34  ;;  %v2131_v53 = vadd.f32 %v2056_v45, %v1948_v2 }
 0x445   :  { %v2127_v22 = vpop.f32.mrf.mxu1 }
 0x446   :  { %v2133_v63 = vadd.f32 %v2127_v22, %v1950_v12 }
 0x458   :  { %v2333_v31 = vpop.f32.mrf.mxu0 }
 0x459   :  { %v2404_v30 = vpop.f32.mrf.mxu1  ;;  %v2409_v61 = vadd.f32 %v2333_v31, %v2130_v29 }
 0x45a   :  { %v2335_v9 = vpop.f32.mrf.mxu0  ;;  %v2411_v27 = vadd.f32 %v2404_v30, %v2132_v42 }
 0x45b   :  { %v2406_v39 = vpop.f32.mrf.mxu1  ;;  %v2410_v33 = vadd.f32 %v2335_v9, %v2131_v53 }
 0x45c   :  { %v2412_v44 = vadd.f32 %v2406_v39, %v2133_v63 }
 0x472   :  { %v2612_v0 = vpop.f32.mrf.mxu0 }
 0x473   :  { %v2683_v48 = vpop.f32.mrf.mxu1  ;;  %v2688_v8 = vadd.f32 %v2612_v0, %v2409_v61 }
 0x474   :  { %v2614_v16 = vpop.f32.mrf.mxu0  ;;  %v2690_v56 = vadd.f32 %v2683_v48, %v2411_v27 }
 0x475   :  { %v2685_v46 = vpop.f32.mrf.mxu1  ;;  %v2689_v32 = vadd.f32 %v2614_v16, %v2410_v33 }
 0x476   :  { %v2691_v35 = vadd.f32 %v2685_v46, %v2412_v44 }
 0x497   :  { %v2891_v13 = vpop.f32.mrf.mxu0 }
 0x498   :  { %v2967_v36 = vadd.f32 %v2891_v13, %v2688_v8 }
 0x499   :  { %v2893_v51 = vpop.f32.mrf.mxu0 }
 0x49a   :  { %v2968_v50 = vadd.f32 %v2893_v51, %v2689_v32 }
 0x4a0   :  { %v2962_v25 = vpop.f32.mrf.mxu1 }
 0x4a1   :  { %v2969_v14 = vadd.f32 %v2962_v25, %v2690_v56 }
 0x4a2   :  { %v2964_v62 = vpop.f32.mrf.mxu1 }
 0x4a3   :  { %v2970_v28 = vadd.f32 %v2964_v62, %v2691_v35 }
 0x4f3   :  { %v3241_v23 = vpop.f32.mrf.mxu1 }
 0x4f4   :  { %v3170_v26 = vpop.f32.mrf.mxu0  ;;  %v3248_v54 = vadd.f32 %v3241_v23, %v2969_v14 }
 0x4f5   :  { %v3246_v3 = vadd.f32 %v3170_v26, %v2967_v36  ;;  %v3243_v38 = vpop.f32.mrf.mxu1 }
 0x4f6   :  { %v3172_v59 = vpop.f32.mrf.mxu0  ;;  %v3258_v60 = vadd.f32 %v3254_v17, %v3248_v54  ;;  %v3249_v7 = vadd.f32 %v3243_v38, %v2970_v28 }
 0x4f7   :  { %v3256_v4 = vadd.f32 %v3254_v17, %v3246_v3  ;;  %v3247_v24 = vadd.f32 %v3172_v59, %v2968_v50 }
 0x4f8   :  { %v3259_v10 = vadd.f32 %v3254_v17, %v3249_v7 }
 0x4f9   :  { %v3257_v15 = vadd.f32 %v3254_v17, %v3247_v24  ;;  %3626 = vtanh.f32 %v3256_v4 }
 0x4fb   :  { %3628 = vtanh.f32 %v3257_v15 }
 0x4fc   :  { %3630 = vtanh.f32 %v3258_v60 }
 0x4fd   :  { %3632 = vtanh.f32 %v3259_v10 }
 0x506   :  { %v3627_v43 = vpop.eup %3626 }
 0x508   :  { %v3629_v58 = vpop.eup %3628 }
 0x509   :  { %v3631_v37 = vpop.eup %3630  ;;  %v3268_v52 = vcombine.low %v3627_v43, %v3629_v58 }
 0x50a   :  { %v3633_v40 = vpop.eup %3632 }
 0x50b   :  { %3272 = vst [vmem:[%s7083_s5] sm:$0x77] %v3268_v52  ;;  %v3269_v6 = vcombine.low %v3631_v37, %v3633_v40 }
 0x50d   :  { %3273 = vst [vmem:[%s7083_s5 + $0x8] sm:$0x77] %v3269_v6 }

</bundles_post_ra>
